<compile_context>
chip_gen: v7x
topology: tpu7x:2x2x1
jax: 0.10.0
libtpu: 0.0.40
codegen_flags: <defaults>
</compile_context>

<pallas_src>
import functools
import math

import jax
import jax.numpy as jnp
from jax.experimental import pallas as pl
from jax.experimental.pallas import tpu as pltpu

LANE = 128  # TPU lane width; tiny task heads / pooled output padded to this.


# ----------------------------- Pallas kernel --------------------------------

def _layernorm(h, gamma, beta, eps):
    mu = jnp.mean(h, axis=-1, keepdims=True)
    d = h - mu
    var = jnp.mean(d * d, axis=-1, keepdims=True)
    return d * jax.lax.rsqrt(var + eps) * gamma + beta


def _fused_bert_kernel(ids_ref, mask_ref, wemb_ref, pt_ref, eg_ref, eb_ref,
                       wqkv_ref, bqkv_ref, wo_ref, bo_ref, g1_ref, b1_ref,
                       wi_ref, bi_ref, wd_ref, bd_ref, g2_ref, b2_ref,
                       pw_ref, pb_ref, hw_ref, hb_ref,
                       pooled_ref, logits_ref, *, num_heads, eps):
    """Whole MultitaskBERT forward for the whole batch, fully fused in VMEM.

    ids_ref:  [B, S, 1] int32 token ids
    mask_ref: [B, 1, S] f32 additive attention mask
    wemb_ref: [V, H] f32 word-embedding table (gather done as one-hot matmul)
    pt_ref:   [S, H] f32 position+token-type embeddings
    stacked per-layer weights: leading [L, ...] axis, statically indexed.
    pooled_ref / logits_ref: [B, 128] f32 lane-dense outputs.
    """
    B, S, _ = ids_ref.shape
    V, H = wemb_ref.shape
    L = wqkv_ref.shape[0]
    dh = H // num_heads
    scale = 1.0 / math.sqrt(dh)
    bf16 = jnp.bfloat16

    lane_iota = jax.lax.broadcasted_iota(jnp.int32, (S, V), 1)

    pooled_rows = []
    logit_rows = []
    for b in range(B):                                   # B=2: unrolled in-kernel
        # --- embedding gather as one-hot MXU matmul + embed LayerNorm ---
        onehot = jnp.where(lane_iota == ids_ref[b], 1.0, 0.0).astype(jnp.float32)
        word_e = jnp.dot(onehot, wemb_ref[...], preferred_element_type=jnp.float32)
        hs = _layernorm(word_e + pt_ref[...], eg_ref[...], eb_ref[...], eps)
        mask_b = mask_ref[b]                              # [1, S], broadcasts over q

        # --- encoder layers (L=2: unrolled) ---
        for l in range(L):
            qkv = jnp.dot(hs.astype(bf16), wqkv_ref[l],
                          preferred_element_type=jnp.float32) + bqkv_ref[l]
            qkv_bf = qkv.astype(bf16)                     # single cast, sliced below
            heads = []
            for h in range(num_heads):
                q_h = qkv_bf[:, h * dh:(h + 1) * dh]
                k_h = qkv_bf[:, H + h * dh:H + (h + 1) * dh]
                v_h = qkv_bf[:, 2 * H + h * dh:2 * H + (h + 1) * dh]
                # q @ k^T without an explicit transpose: contract last dims.
                s = jax.lax.dot_general(
                    q_h, k_h, dimension_numbers=(((1,), (1,)), ((), ())),
                    preferred_element_type=jnp.float32) * scale + mask_b
                s = s - jnp.max(s, axis=-1, keepdims=True)
                p = jnp.exp(s)
                p = p * pl.reciprocal(jnp.sum(p, axis=-1, keepdims=True), approx=True)
                heads.append(jnp.dot(p.astype(bf16), v_h,
                                     preferred_element_type=jnp.float32))
            ctx = jnp.concatenate(heads, axis=-1)         # [S, H], stays in vregs

            attn = jnp.dot(ctx.astype(bf16), wo_ref[l],
                           preferred_element_type=jnp.float32) + bo_ref[l]
            h1 = _layernorm(attn + hs, g1_ref[l], b1_ref[l], eps)

            inter = jnp.dot(h1.astype(bf16), wi_ref[l],
                            preferred_element_type=jnp.float32) + bi_ref[l]
            # TODO(synk): HF BERT uses exact erf-GELU; tanh approximation used here.
            inter = jax.nn.gelu(inter, approximate=True)
            ffn = jnp.dot(inter.astype(bf16), wd_ref[l],
                          preferred_element_type=jnp.float32) + bd_ref[l]
            hs = _layernorm(ffn + h1, g2_ref[l], b2_ref[l], eps)

        # --- pooler + task head (lane-padded to 128) ---
        cls = hs[0:1, :]                                  # [1, H]
        pooled = jnp.tanh(jnp.dot(cls.astype(bf16), pw_ref[...],
                                  preferred_element_type=jnp.float32) + pb_ref[...])
        pooled_rows.append(pooled)                        # [1, 128]
        logit_rows.append(jnp.dot(pooled.astype(bf16), hw_ref[...],
                                  preferred_element_type=jnp.float32) + hb_ref[...])

    pooled_ref[...] = jnp.concatenate(pooled_rows, axis=0)
    logits_ref[...] = jnp.concatenate(logit_rows, axis=0)


def pallas_multitask_bert(ids3, mask_add, weights, head_w, head_b,
                          *, num_heads, eps):
    """Single fused pallas_call for the whole model; returns (pooled, logits)."""
    B = ids3.shape[0]
    args = [ids3, mask_add,
            weights["word_emb"], weights["pos_type_s"],
            weights["emb_ln_g"], weights["emb_ln_b"],
            weights["w_qkv"], weights["b_qkv"], weights["w_o"], weights["b_o"],
            weights["ln1_g"], weights["ln1_b"], weights["w_i"], weights["b_i"],
            weights["w_d"], weights["b_d"], weights["ln2_g"], weights["ln2_b"],
            weights["pool_w"], weights["pool_b"], head_w, head_b]
    vmem = pl.BlockSpec(memory_space=pltpu.MemorySpace.VMEM)
    pooled_pad, logits_pad = pl.pallas_call(
        functools.partial(_fused_bert_kernel, num_heads=num_heads, eps=eps),
        out_shape=(jax.ShapeDtypeStruct((B, LANE), jnp.float32),
                   jax.ShapeDtypeStruct((B, LANE), jnp.float32)),
        in_specs=[vmem] * len(args),
        out_specs=(vmem, vmem),
    )(*args)
    return pooled_pad, logits_pad


# ------------------------------ Model (glue) --------------------------------

class Config:
    hidden_size = 32
    num_hidden_layers = 2
    num_attention_heads = 2
    intermediate_size = 64
    vocab_size = 128          # must exceed SEP id 102
    max_position_embeddings = 64
    type_vocab_size = 2
    layer_norm_eps = 1e-12


def init_params(cfg, key):
    """Raw (PyTorch-layout) parameters; nn.Linear weights stored [in, out]."""
    def nrm(k, shape):
        return 0.02 * jax.random.normal(k, shape, jnp.float32)

    keys = iter(jax.random.split(key, 256))
    H, I = cfg.hidden_size, cfg.intermediate_size
    p = {
        "word_emb": nrm(next(keys), (cfg.vocab_size, H)),
        "pos_emb": nrm(next(keys), (cfg.max_position_embeddings, H)),
        "type_emb": nrm(next(keys), (cfg.type_vocab_size, H)),
        "emb_ln_g": jnp.ones((H,), jnp.float32),
        "emb_ln_b": jnp.zeros((H,), jnp.float32),
    }
    layers = []
    for _ in range(cfg.num_hidden_layers):
        layers.append({
            "q_w": nrm(next(keys), (H, H)), "q_b": jnp.zeros((H,), jnp.float32),
            "k_w": nrm(next(keys), (H, H)), "k_b": jnp.zeros((H,), jnp.float32),
            "v_w": nrm(next(keys), (H, H)), "v_b": jnp.zeros((H,), jnp.float32),
            "o_w": nrm(next(keys), (H, H)), "o_b": jnp.zeros((H,), jnp.float32),
            "ln1_g": jnp.ones((H,), jnp.float32), "ln1_b": jnp.zeros((H,), jnp.float32),
            "i_w": nrm(next(keys), (H, I)), "i_b": jnp.zeros((I,), jnp.float32),
            "d_w": nrm(next(keys), (I, H)), "d_b": jnp.zeros((H,), jnp.float32),
            "ln2_g": jnp.ones((H,), jnp.float32), "ln2_b": jnp.zeros((H,), jnp.float32),
        })
    p["layers"] = layers
    p["pool_w"] = nrm(next(keys), (H, H))
    p["pool_b"] = jnp.zeros((H,), jnp.float32)
    p["sent_w"] = nrm(next(keys), (H, 5)); p["sent_b"] = jnp.zeros((5,), jnp.float32)
    p["para_w"] = nrm(next(keys), (H, 2)); p["para_b"] = jnp.zeros((2,), jnp.float32)
    p["sim_w"] = nrm(next(keys), (H, 26)); p["sim_b"] = jnp.zeros((26,), jnp.float32)
    return p


class MultitaskBERTPallas:
    def __init__(self, cfg, params):
        self.cfg = cfg
        self.p = self._prepare(cfg, params)

    # --- one-time parameter prep: fuse QKV, stack layers on a leading [L,...]
    #     axis, cast matmul weights to bf16, reshape biases/LN params to (1,N),
    #     pre-add pos+type embeddings, lane-pad pooler + tiny task heads. ---
    @staticmethod
    def _prepare(cfg, p):
        H = cfg.hidden_size
        bf = lambda a: a.astype(jnp.bfloat16)
        row = lambda a: a.reshape(1, -1).astype(jnp.float32)

        layers = p["layers"]
        q = {
            "word_emb": p["word_emb"].astype(jnp.float32),                 # [V,H]
            "pos_type": (p["pos_emb"]
                         + p["type_emb"][0][None, :]).astype(jnp.float32), # [P,H]
            "emb_ln_g": row(p["emb_ln_g"]), "emb_ln_b": row(p["emb_ln_b"]),
            "w_qkv": jnp.stack([bf(jnp.concatenate([lp["q_w"], lp["k_w"], lp["v_w"]],
                                                   axis=1)) for lp in layers]),
            "b_qkv": jnp.stack([row(jnp.concatenate([lp["q_b"], lp["k_b"], lp["v_b"]]))
                                for lp in layers]),
            "w_o": jnp.stack([bf(lp["o_w"]) for lp in layers]),
            "b_o": jnp.stack([row(lp["o_b"]) for lp in layers]),
            "ln1_g": jnp.stack([row(lp["ln1_g"]) for lp in layers]),
            "ln1_b": jnp.stack([row(lp["ln1_b"]) for lp in layers]),
            "w_i": jnp.stack([bf(lp["i_w"]) for lp in layers]),
            "b_i": jnp.stack([row(lp["i_b"]) for lp in layers]),
            "w_d": jnp.stack([bf(lp["d_w"]) for lp in layers]),
            "b_d": jnp.stack([row(lp["d_b"]) for lp in layers]),
            "ln2_g": jnp.stack([row(lp["ln2_g"]) for lp in layers]),
            "ln2_b": jnp.stack([row(lp["ln2_b"]) for lp in layers]),
        }

        # Pooler padded to 128 lanes (extra columns are zero -> tanh(0)=0).
        pool_w = jnp.zeros((H, LANE), jnp.float32).at[:, :H].set(p["pool_w"])
        pool_b = jnp.zeros((1, LANE), jnp.float32).at[:, :H].set(p["pool_b"])
        q["pool_w"], q["pool_b"] = bf(pool_w), pool_b

        # Task heads padded to [128, 128] (rows >= H and cols >= n_out are zero).
        def pad_head(w, b):
            n = w.shape[1]
            wp = jnp.zeros((LANE, LANE), jnp.float32).at[:H, :n].set(w)
            bp = jnp.zeros((1, LANE), jnp.float32).at[:, :n].set(b)
            return bf(wp), bp, n

        q["sent"] = pad_head(p["sent_w"], p["sent_b"])
        q["para"] = pad_head(p["para_w"], p["para_b"])
        q["sim"] = pad_head(p["sim_w"], p["sim_b"])
        return q

    # --- single fused kernel call: embeddings -> encoder -> pooler -> head ---
    def _fused(self, input_ids, attention_mask, head_w, head_b):
        cfg, p = self.cfg, self.p
        B, S = input_ids.shape
        ids3 = input_ids.astype(jnp.int32)[:, :, None]                     # [B,S,1]
        mask_add = (1.0 - attention_mask.astype(jnp.float32))[:, None, :] * -10000.0
        weights = dict(p)
        weights["pos_type_s"] = p["pos_type"][:S]                          # [S,H]
        return pallas_multitask_bert(ids3, mask_add, weights, head_w, head_b,
                                     num_heads=cfg.num_attention_heads,
                                     eps=cfg.layer_norm_eps)

    def forward(self, input_ids, attention_mask):
        """Returns BERT pooler_output (tanh(W @ h_cls + b))."""
        w, b, _ = self.p["sent"]            # head irrelevant for pooled output
        pooled, _ = self._fused(input_ids, attention_mask, w, b)
        return pooled[:, :self.cfg.hidden_size]

    # --- task heads ---
    def predict_sentiment(self, input_ids, attention_mask):
        w, b, n = self.p["sent"]
        _, logits = self._fused(input_ids, attention_mask, w, b)
        return logits[:, :n]

    def predict_paraphrase(self, ids1, m1, ids2, m2):
        ids, m = self.combine_two_inputs_using_sep(ids1, m1, ids2, m2)
        w, b, n = self.p["para"]
        _, logits = self._fused(ids, m, w, b)
        return logits[:, :n]

    def predict_similarity(self, ids1, m1, ids2, m2):
        ids, m = self.combine_two_inputs_using_sep(ids1, m1, ids2, m2)
        w, b, n = self.p["sim"]
        _, logits = self._fused(ids, m, w, b)
        return logits[:, :n]

    @staticmethod
    def combine_two_inputs_using_sep(ids1, m1, ids2, m2, max_length=512):
        # Matches the PyTorch reference exactly (including NOT forcing m2[:,0]=1).
        half = max_length // 2
        ids2 = ids2.at[:, 0].set(102)         # SEP token id
        ids1, m1 = ids1[:, :half], m1[:, :half]
        ids2, m2 = ids2[:, :half], m2[:, :half]
        return (jnp.concatenate([ids1, ids2], axis=1),
                jnp.concatenate([m1, m2], axis=1))


# --------------------------------- main --------------------------------------

if __name__ == "__main__":
    cfg = Config()
    root = jax.random.PRNGKey(0)
    pkey, dkey = jax.random.split(root)
    params = init_params(cfg, pkey)
    model = MultitaskBERTPallas(cfg, params)

    B, S = 2, 8
    k1, k2 = jax.random.split(dkey)
    ids1 = jax.random.randint(k1, (B, S), 0, cfg.vocab_size, dtype=jnp.int32)
    ids2 = jax.random.randint(k2, (B, S), 0, cfg.vocab_size, dtype=jnp.int32)
    mask1 = jnp.ones((B, S), jnp.int32)
    mask2 = jnp.ones((B, S), jnp.int32)

    predict_sentiment = jax.jit(model.predict_sentiment)
    predict_paraphrase = jax.jit(model.predict_paraphrase)
    predict_similarity = jax.jit(model.predict_similarity)

    sent = predict_sentiment(ids1, mask1)                  # [B, 5]
    para = predict_paraphrase(ids1, mask1, ids2, mask2)    # [B, 2]
    sim = predict_similarity(ids1, mask1, ids2, mask2)     # [B, 26]

    jax.block_until_ready((sent, para, sim))
    assert sent.shape == (B, 5)
    assert para.shape == (B, 2)
    assert sim.shape == (B, 26)
    assert jnp.all(jnp.isfinite(sent)) and jnp.all(jnp.isfinite(para)) and jnp.all(jnp.isfinite(sim))
    print("KERNEL_OK")
</pallas_src>

<mosaic_0001>
module attributes {stable_mosaic.version = 11 : i64} {
  func.func @_fused_bert_kernel(%arg0: memref<2x8x1xi32, #tpu.memory_space<vmem>>, %arg1: memref<2x1x8xf32, #tpu.memory_space<vmem>>, %arg2: memref<128x32xf32, #tpu.memory_space<vmem>>, %arg3: memref<8x32xf32, #tpu.memory_space<vmem>>, %arg4: memref<1x32xf32, #tpu.memory_space<vmem>>, %arg5: memref<1x32xf32, #tpu.memory_space<vmem>>, %arg6: memref<2x32x96xbf16, #tpu.memory_space<vmem>>, %arg7: memref<2x1x96xf32, #tpu.memory_space<vmem>>, %arg8: memref<2x32x32xbf16, #tpu.memory_space<vmem>>, %arg9: memref<2x1x32xf32, #tpu.memory_space<vmem>>, %arg10: memref<2x1x32xf32, #tpu.memory_space<vmem>>, %arg11: memref<2x1x32xf32, #tpu.memory_space<vmem>>, %arg12: memref<2x32x64xbf16, #tpu.memory_space<vmem>>, %arg13: memref<2x1x64xf32, #tpu.memory_space<vmem>>, %arg14: memref<2x64x32xbf16, #tpu.memory_space<vmem>>, %arg15: memref<2x1x32xf32, #tpu.memory_space<vmem>>, %arg16: memref<2x1x32xf32, #tpu.memory_space<vmem>>, %arg17: memref<2x1x32xf32, #tpu.memory_space<vmem>>, %arg18: memref<32x128xbf16, #tpu.memory_space<vmem>>, %arg19: memref<1x128xf32, #tpu.memory_space<vmem>>, %arg20: memref<128x128xbf16, #tpu.memory_space<vmem>>, %arg21: memref<1x128xf32, #tpu.memory_space<vmem>>, %arg22: memref<2x128xf32, #tpu.memory_space<vmem>>, %arg23: memref<2x128xf32, #tpu.memory_space<vmem>>) attributes {dimension_semantics = [], scalar_prefetch = 0 : i64, scratch_operands = 0 : i64, tpu.core_type = #tpu.core_type<tc>} {
    %0 = tpu.iota {dimensions = array<i32: 1>} : vector<8x128xi32>
    %c0 = arith.constant 0 : index
    %c0_0 = arith.constant 0 : index
    %c0_1 = arith.constant 0 : index
    %1 = vector.load %arg0[%c0, %c0_0, %c0_1] : memref<2x8x1xi32, #tpu.memory_space<vmem>>, vector<1x8x1xi32>
    %2 = vector.shape_cast %1 : vector<1x8x1xi32> to vector<8x1xi32>
    %3 = vector.broadcast %2 : vector<8x1xi32> to vector<8x128xi32>
    %4 = arith.cmpi eq, %0, %3 : vector<8x128xi32>
    %cst = arith.constant 1.000000e+00 : f32
    %cst_2 = arith.constant 0.000000e+00 : f32
    %5 = vector.broadcast %cst : f32 to vector<8x128xf32>
    %6 = vector.broadcast %cst_2 : f32 to vector<8x128xf32>
    %7 = arith.select %4, %5, %6 : vector<8x128xi1>, vector<8x128xf32>
    %c0_3 = arith.constant 0 : index
    %c0_4 = arith.constant 0 : index
    %8 = vector.load %arg2[%c0_3, %c0_4] : memref<128x32xf32, #tpu.memory_space<vmem>>, vector<128x32xf32>
    %cst_5 = arith.constant dense<0.000000e+00> : vector<8x32xf32>
    %9 = tpu.matmul %7, %8, %cst_5 {dimension_numbers = #tpu.dot_dimension_numbers<[1], [0], [0], [1], [0, 0, 1, 1], [], []>} : vector<8x128xf32>, vector<128x32xf32>, vector<8x32xf32> -> vector<8x32xf32>
    %c0_6 = arith.constant 0 : index
    %c0_7 = arith.constant 0 : index
    %10 = vector.load %arg3[%c0_6, %c0_7] : memref<8x32xf32, #tpu.memory_space<vmem>>, vector<8x32xf32>
    %11 = arith.addf %9, %10 : vector<8x32xf32>
    %c0_8 = arith.constant 0 : index
    %c0_9 = arith.constant 0 : index
    %12 = vector.load %arg4[%c0_8, %c0_9] : memref<1x32xf32, #tpu.memory_space<vmem>>, vector<1x32xf32>
    %c0_10 = arith.constant 0 : index
    %c0_11 = arith.constant 0 : index
    %13 = vector.load %arg5[%c0_10, %c0_11] : memref<1x32xf32, #tpu.memory_space<vmem>>, vector<1x32xf32>
    %cst_12 = arith.constant dense<0.000000e+00> : vector<8xf32>
    %14 = vector.multi_reduction <add>, %11, %cst_12 [1] : vector<8x32xf32> to vector<8xf32>
    %15 = vector.shape_cast %14 : vector<8xf32> to vector<8x1xf32>
    %cst_13 = arith.constant 3.200000e+01 : f32
    %16 = vector.broadcast %cst_13 : f32 to vector<8x1xf32>
    %17 = arith.divf %15, %16 : vector<8x1xf32>
    %18 = vector.broadcast %17 : vector<8x1xf32> to vector<8x32xf32>
    %19 = arith.subf %11, %18 : vector<8x32xf32>
    %20 = arith.mulf %19, %19 : vector<8x32xf32>
    %cst_14 = arith.constant dense<0.000000e+00> : vector<8xf32>
    %21 = vector.multi_reduction <add>, %20, %cst_14 [1] : vector<8x32xf32> to vector<8xf32>
    %22 = vector.shape_cast %21 : vector<8xf32> to vector<8x1xf32>
    %cst_15 = arith.constant 3.200000e+01 : f32
    %23 = vector.broadcast %cst_15 : f32 to vector<8x1xf32>
    %24 = arith.divf %22, %23 : vector<8x1xf32>
    %cst_16 = arith.constant 9.99999996E-13 : f32
    %25 = vector.broadcast %cst_16 : f32 to vector<8x1xf32>
    %26 = arith.addf %24, %25 : vector<8x1xf32>
    %27 = math.rsqrt %26 : vector<8x1xf32>
    %28 = vector.broadcast %27 : vector<8x1xf32> to vector<8x32xf32>
    %29 = arith.mulf %19, %28 : vector<8x32xf32>
    %30 = vector.broadcast %12 : vector<1x32xf32> to vector<8x32xf32>
    %31 = arith.mulf %29, %30 : vector<8x32xf32>
    %32 = vector.broadcast %13 : vector<1x32xf32> to vector<8x32xf32>
    %33 = arith.addf %31, %32 : vector<8x32xf32>
    %c0_17 = arith.constant 0 : index
    %c0_18 = arith.constant 0 : index
    %c0_19 = arith.constant 0 : index
    %34 = vector.load %arg1[%c0_17, %c0_18, %c0_19] : memref<2x1x8xf32, #tpu.memory_space<vmem>>, vector<1x1x8xf32>
    %35 = vector.shape_cast %34 : vector<1x1x8xf32> to vector<1x8xf32>
    %36 = arith.truncf %33 : vector<8x32xf32> to vector<8x32xbf16>
    %c0_20 = arith.constant 0 : index
    %c0_21 = arith.constant 0 : index
    %c0_22 = arith.constant 0 : index
    %37 = vector.load %arg6[%c0_20, %c0_21, %c0_22] : memref<2x32x96xbf16, #tpu.memory_space<vmem>>, vector<1x32x96xbf16>
    %38 = vector.shape_cast %37 : vector<1x32x96xbf16> to vector<32x96xbf16>
    %cst_23 = arith.constant dense<0.000000e+00> : vector<8x96xf32>
    %39 = tpu.matmul %36, %38, %cst_23 {dimension_numbers = #tpu.dot_dimension_numbers<[1], [0], [0], [1], [0, 0, 1, 1], [], []>} : vector<8x32xbf16>, vector<32x96xbf16>, vector<8x96xf32> -> vector<8x96xf32>
    %c0_24 = arith.constant 0 : index
    %c0_25 = arith.constant 0 : index
    %c0_26 = arith.constant 0 : index
    %40 = vector.load %arg7[%c0_24, %c0_25, %c0_26] : memref<2x1x96xf32, #tpu.memory_space<vmem>>, vector<1x1x96xf32>
    %41 = vector.shape_cast %40 : vector<1x1x96xf32> to vector<1x96xf32>
    %42 = vector.broadcast %41 : vector<1x96xf32> to vector<8x96xf32>
    %43 = arith.addf %39, %42 : vector<8x96xf32>
    %44 = arith.truncf %43 : vector<8x96xf32> to vector<8x96xbf16>
    %45 = vector.extract_strided_slice %44 {offsets = [0, 0], sizes = [8, 16], strides = [1, 1]} : vector<8x96xbf16> to vector<8x16xbf16>
    %46 = vector.extract_strided_slice %44 {offsets = [0, 32], sizes = [8, 16], strides = [1, 1]} : vector<8x96xbf16> to vector<8x16xbf16>
    %47 = vector.extract_strided_slice %44 {offsets = [0, 64], sizes = [8, 16], strides = [1, 1]} : vector<8x96xbf16> to vector<8x16xbf16>
    %cst_27 = arith.constant dense<0.000000e+00> : vector<8x8xf32>
    %48 = tpu.matmul %45, %46, %cst_27 {dimension_numbers = #tpu.dot_dimension_numbers<[1], [1], [0], [0], [0, 0, 1, 0], [], []>} : vector<8x16xbf16>, vector<8x16xbf16>, vector<8x8xf32> -> vector<8x8xf32>
    %cst_28 = arith.constant 2.500000e-01 : f32
    %49 = vector.broadcast %cst_28 : f32 to vector<8x8xf32>
    %50 = arith.mulf %48, %49 : vector<8x8xf32>
    %51 = vector.broadcast %35 : vector<1x8xf32> to vector<8x8xf32>
    %52 = arith.addf %50, %51 : vector<8x8xf32>
    %cst_29 = arith.constant dense<0xFF800000> : vector<8xf32>
    %53 = vector.multi_reduction <maximumf>, %52, %cst_29 [1] : vector<8x8xf32> to vector<8xf32>
    %54 = vector.shape_cast %53 : vector<8xf32> to vector<8x1xf32>
    %55 = vector.broadcast %54 : vector<8x1xf32> to vector<8x8xf32>
    %56 = arith.subf %52, %55 : vector<8x8xf32>
    %57 = math.exp %56 : vector<8x8xf32>
    %cst_30 = arith.constant dense<0.000000e+00> : vector<8xf32>
    %58 = vector.multi_reduction <add>, %57, %cst_30 [1] : vector<8x8xf32> to vector<8xf32>
    %59 = vector.shape_cast %58 : vector<8xf32> to vector<8x1xf32>
    %60 = tpu.reciprocal %59 {approx = true} : vector<8x1xf32> -> vector<8x1xf32>
    %61 = vector.broadcast %60 : vector<8x1xf32> to vector<8x8xf32>
    %62 = arith.mulf %57, %61 : vector<8x8xf32>
    %63 = arith.truncf %62 : vector<8x8xf32> to vector<8x8xbf16>
    %cst_31 = arith.constant dense<0.000000e+00> : vector<8x16xf32>
    %64 = tpu.matmul %63, %47, %cst_31 {dimension_numbers = #tpu.dot_dimension_numbers<[1], [0], [0], [1], [0, 0, 1, 1], [], []>} : vector<8x8xbf16>, vector<8x16xbf16>, vector<8x16xf32> -> vector<8x16xf32>
    %65 = vector.extract_strided_slice %44 {offsets = [0, 16], sizes = [8, 16], strides = [1, 1]} : vector<8x96xbf16> to vector<8x16xbf16>
    %66 = vector.extract_strided_slice %44 {offsets = [0, 48], sizes = [8, 16], strides = [1, 1]} : vector<8x96xbf16> to vector<8x16xbf16>
    %67 = vector.extract_strided_slice %44 {offsets = [0, 80], sizes = [8, 16], strides = [1, 1]} : vector<8x96xbf16> to vector<8x16xbf16>
    %cst_32 = arith.constant dense<0.000000e+00> : vector<8x8xf32>
    %68 = tpu.matmul %65, %66, %cst_32 {dimension_numbers = #tpu.dot_dimension_numbers<[1], [1], [0], [0], [0, 0, 1, 0], [], []>} : vector<8x16xbf16>, vector<8x16xbf16>, vector<8x8xf32> -> vector<8x8xf32>
    %cst_33 = arith.constant 2.500000e-01 : f32
    %69 = vector.broadcast %cst_33 : f32 to vector<8x8xf32>
    %70 = arith.mulf %68, %69 : vector<8x8xf32>
    %71 = vector.broadcast %35 : vector<1x8xf32> to vector<8x8xf32>
    %72 = arith.addf %70, %71 : vector<8x8xf32>
    %cst_34 = arith.constant dense<0xFF800000> : vector<8xf32>
    %73 = vector.multi_reduction <maximumf>, %72, %cst_34 [1] : vector<8x8xf32> to vector<8xf32>
    %74 = vector.shape_cast %73 : vector<8xf32> to vector<8x1xf32>
    %75 = vector.broadcast %74 : vector<8x1xf32> to vector<8x8xf32>
    %76 = arith.subf %72, %75 : vector<8x8xf32>
    %77 = math.exp %76 : vector<8x8xf32>
    %cst_35 = arith.constant dense<0.000000e+00> : vector<8xf32>
    %78 = vector.multi_reduction <add>, %77, %cst_35 [1] : vector<8x8xf32> to vector<8xf32>
    %79 = vector.shape_cast %78 : vector<8xf32> to vector<8x1xf32>
    %80 = tpu.reciprocal %79 {approx = true} : vector<8x1xf32> -> vector<8x1xf32>
    %81 = vector.broadcast %80 : vector<8x1xf32> to vector<8x8xf32>
    %82 = arith.mulf %77, %81 : vector<8x8xf32>
    %83 = arith.truncf %82 : vector<8x8xf32> to vector<8x8xbf16>
    %cst_36 = arith.constant dense<0.000000e+00> : vector<8x16xf32>
    %84 = tpu.matmul %83, %67, %cst_36 {dimension_numbers = #tpu.dot_dimension_numbers<[1], [0], [0], [1], [0, 0, 1, 1], [], []>} : vector<8x8xbf16>, vector<8x16xbf16>, vector<8x16xf32> -> vector<8x16xf32>
    %85 = tpu.concatenate %64, %84 in 1 : vector<8x16xf32>, vector<8x16xf32> -> vector<8x32xf32>
    %86 = arith.truncf %85 : vector<8x32xf32> to vector<8x32xbf16>
    %c0_37 = arith.constant 0 : index
    %c0_38 = arith.constant 0 : index
    %c0_39 = arith.constant 0 : index
    %87 = vector.load %arg8[%c0_37, %c0_38, %c0_39] : memref<2x32x32xbf16, #tpu.memory_space<vmem>>, vector<1x32x32xbf16>
    %88 = vector.shape_cast %87 : vector<1x32x32xbf16> to vector<32x32xbf16>
    %cst_40 = arith.constant dense<0.000000e+00> : vector<8x32xf32>
    %89 = tpu.matmul %86, %88, %cst_40 {dimension_numbers = #tpu.dot_dimension_numbers<[1], [0], [0], [1], [0, 0, 1, 1], [], []>} : vector<8x32xbf16>, vector<32x32xbf16>, vector<8x32xf32> -> vector<8x32xf32>
    %c0_41 = arith.constant 0 : index
    %c0_42 = arith.constant 0 : index
    %c0_43 = arith.constant 0 : index
    %90 = vector.load %arg9[%c0_41, %c0_42, %c0_43] : memref<2x1x32xf32, #tpu.memory_space<vmem>>, vector<1x1x32xf32>
    %91 = vector.shape_cast %90 : vector<1x1x32xf32> to vector<1x32xf32>
    %92 = vector.broadcast %91 : vector<1x32xf32> to vector<8x32xf32>
    %93 = arith.addf %89, %92 : vector<8x32xf32>
    %94 = arith.addf %93, %33 : vector<8x32xf32>
    %c0_44 = arith.constant 0 : index
    %c0_45 = arith.constant 0 : index
    %c0_46 = arith.constant 0 : index
    %95 = vector.load %arg10[%c0_44, %c0_45, %c0_46] : memref<2x1x32xf32, #tpu.memory_space<vmem>>, vector<1x1x32xf32>
    %96 = vector.shape_cast %95 : vector<1x1x32xf32> to vector<1x32xf32>
    %c0_47 = arith.constant 0 : index
    %c0_48 = arith.constant 0 : index
    %c0_49 = arith.constant 0 : index
    %97 = vector.load %arg11[%c0_47, %c0_48, %c0_49] : memref<2x1x32xf32, #tpu.memory_space<vmem>>, vector<1x1x32xf32>
    %98 = vector.shape_cast %97 : vector<1x1x32xf32> to vector<1x32xf32>
    %cst_50 = arith.constant dense<0.000000e+00> : vector<8xf32>
    %99 = vector.multi_reduction <add>, %94, %cst_50 [1] : vector<8x32xf32> to vector<8xf32>
    %100 = vector.shape_cast %99 : vector<8xf32> to vector<8x1xf32>
    %cst_51 = arith.constant 3.200000e+01 : f32
    %101 = vector.broadcast %cst_51 : f32 to vector<8x1xf32>
    %102 = arith.divf %100, %101 : vector<8x1xf32>
    %103 = vector.broadcast %102 : vector<8x1xf32> to vector<8x32xf32>
    %104 = arith.subf %94, %103 : vector<8x32xf32>
    %105 = arith.mulf %104, %104 : vector<8x32xf32>
    %cst_52 = arith.constant dense<0.000000e+00> : vector<8xf32>
    %106 = vector.multi_reduction <add>, %105, %cst_52 [1] : vector<8x32xf32> to vector<8xf32>
    %107 = vector.shape_cast %106 : vector<8xf32> to vector<8x1xf32>
    %cst_53 = arith.constant 3.200000e+01 : f32
    %108 = vector.broadcast %cst_53 : f32 to vector<8x1xf32>
    %109 = arith.divf %107, %108 : vector<8x1xf32>
    %cst_54 = arith.constant 9.99999996E-13 : f32
    %110 = vector.broadcast %cst_54 : f32 to vector<8x1xf32>
    %111 = arith.addf %109, %110 : vector<8x1xf32>
    %112 = math.rsqrt %111 : vector<8x1xf32>
    %113 = vector.broadcast %112 : vector<8x1xf32> to vector<8x32xf32>
    %114 = arith.mulf %104, %113 : vector<8x32xf32>
    %115 = vector.broadcast %96 : vector<1x32xf32> to vector<8x32xf32>
    %116 = arith.mulf %114, %115 : vector<8x32xf32>
    %117 = vector.broadcast %98 : vector<1x32xf32> to vector<8x32xf32>
    %118 = arith.addf %116, %117 : vector<8x32xf32>
    %119 = arith.truncf %118 : vector<8x32xf32> to vector<8x32xbf16>
    %c0_55 = arith.constant 0 : index
    %c0_56 = arith.constant 0 : index
    %c0_57 = arith.constant 0 : index
    %120 = vector.load %arg12[%c0_55, %c0_56, %c0_57] : memref<2x32x64xbf16, #tpu.memory_space<vmem>>, vector<1x32x64xbf16>
    %121 = vector.shape_cast %120 : vector<1x32x64xbf16> to vector<32x64xbf16>
    %cst_58 = arith.constant dense<0.000000e+00> : vector<8x64xf32>
    %122 = tpu.matmul %119, %121, %cst_58 {dimension_numbers = #tpu.dot_dimension_numbers<[1], [0], [0], [1], [0, 0, 1, 1], [], []>} : vector<8x32xbf16>, vector<32x64xbf16>, vector<8x64xf32> -> vector<8x64xf32>
    %c0_59 = arith.constant 0 : index
    %c0_60 = arith.constant 0 : index
    %c0_61 = arith.constant 0 : index
    %123 = vector.load %arg13[%c0_59, %c0_60, %c0_61] : memref<2x1x64xf32, #tpu.memory_space<vmem>>, vector<1x1x64xf32>
    %124 = vector.shape_cast %123 : vector<1x1x64xf32> to vector<1x64xf32>
    %125 = vector.broadcast %124 : vector<1x64xf32> to vector<8x64xf32>
    %126 = arith.addf %122, %125 : vector<8x64xf32>
    %127 = arith.mulf %126, %126 : vector<8x64xf32>
    %128 = arith.mulf %126, %127 : vector<8x64xf32>
    %cst_62 = arith.constant 4.471500e-02 : f32
    %129 = vector.broadcast %cst_62 : f32 to vector<8x64xf32>
    %130 = arith.mulf %129, %128 : vector<8x64xf32>
    %131 = arith.addf %126, %130 : vector<8x64xf32>
    %cst_63 = arith.constant 0.797884583 : f32
    %132 = vector.broadcast %cst_63 : f32 to vector<8x64xf32>
    %133 = arith.mulf %132, %131 : vector<8x64xf32>
    %134 = math.tanh %133 : vector<8x64xf32>
    %cst_64 = arith.constant 1.000000e+00 : f32
    %135 = vector.broadcast %cst_64 : f32 to vector<8x64xf32>
    %136 = arith.addf %135, %134 : vector<8x64xf32>
    %cst_65 = arith.constant 5.000000e-01 : f32
    %137 = vector.broadcast %cst_65 : f32 to vector<8x64xf32>
    %138 = arith.mulf %137, %136 : vector<8x64xf32>
    %139 = arith.mulf %126, %138 : vector<8x64xf32>
    %140 = arith.truncf %139 : vector<8x64xf32> to vector<8x64xbf16>
    %c0_66 = arith.constant 0 : index
    %c0_67 = arith.constant 0 : index
    %c0_68 = arith.constant 0 : index
    %141 = vector.load %arg14[%c0_66, %c0_67, %c0_68] : memref<2x64x32xbf16, #tpu.memory_space<vmem>>, vector<1x64x32xbf16>
    %142 = vector.shape_cast %141 : vector<1x64x32xbf16> to vector<64x32xbf16>
    %cst_69 = arith.constant dense<0.000000e+00> : vector<8x32xf32>
    %143 = tpu.matmul %140, %142, %cst_69 {dimension_numbers = #tpu.dot_dimension_numbers<[1], [0], [0], [1], [0, 0, 1, 1], [], []>} : vector<8x64xbf16>, vector<64x32xbf16>, vector<8x32xf32> -> vector<8x32xf32>
    %c0_70 = arith.constant 0 : index
    %c0_71 = arith.constant 0 : index
    %c0_72 = arith.constant 0 : index
    %144 = vector.load %arg15[%c0_70, %c0_71, %c0_72] : memref<2x1x32xf32, #tpu.memory_space<vmem>>, vector<1x1x32xf32>
    %145 = vector.shape_cast %144 : vector<1x1x32xf32> to vector<1x32xf32>
    %146 = vector.broadcast %145 : vector<1x32xf32> to vector<8x32xf32>
    %147 = arith.addf %143, %146 : vector<8x32xf32>
    %148 = arith.addf %147, %118 : vector<8x32xf32>
    %c0_73 = arith.constant 0 : index
    %c0_74 = arith.constant 0 : index
    %c0_75 = arith.constant 0 : index
    %149 = vector.load %arg16[%c0_73, %c0_74, %c0_75] : memref<2x1x32xf32, #tpu.memory_space<vmem>>, vector<1x1x32xf32>
    %150 = vector.shape_cast %149 : vector<1x1x32xf32> to vector<1x32xf32>
    %c0_76 = arith.constant 0 : index
    %c0_77 = arith.constant 0 : index
    %c0_78 = arith.constant 0 : index
    %151 = vector.load %arg17[%c0_76, %c0_77, %c0_78] : memref<2x1x32xf32, #tpu.memory_space<vmem>>, vector<1x1x32xf32>
    %152 = vector.shape_cast %151 : vector<1x1x32xf32> to vector<1x32xf32>
    %cst_79 = arith.constant dense<0.000000e+00> : vector<8xf32>
    %153 = vector.multi_reduction <add>, %148, %cst_79 [1] : vector<8x32xf32> to vector<8xf32>
    %154 = vector.shape_cast %153 : vector<8xf32> to vector<8x1xf32>
    %cst_80 = arith.constant 3.200000e+01 : f32
    %155 = vector.broadcast %cst_80 : f32 to vector<8x1xf32>
    %156 = arith.divf %154, %155 : vector<8x1xf32>
    %157 = vector.broadcast %156 : vector<8x1xf32> to vector<8x32xf32>
    %158 = arith.subf %148, %157 : vector<8x32xf32>
    %159 = arith.mulf %158, %158 : vector<8x32xf32>
    %cst_81 = arith.constant dense<0.000000e+00> : vector<8xf32>
    %160 = vector.multi_reduction <add>, %159, %cst_81 [1] : vector<8x32xf32> to vector<8xf32>
    %161 = vector.shape_cast %160 : vector<8xf32> to vector<8x1xf32>
    %cst_82 = arith.constant 3.200000e+01 : f32
    %162 = vector.broadcast %cst_82 : f32 to vector<8x1xf32>
    %163 = arith.divf %161, %162 : vector<8x1xf32>
    %cst_83 = arith.constant 9.99999996E-13 : f32
    %164 = vector.broadcast %cst_83 : f32 to vector<8x1xf32>
    %165 = arith.addf %163, %164 : vector<8x1xf32>
    %166 = math.rsqrt %165 : vector<8x1xf32>
    %167 = vector.broadcast %166 : vector<8x1xf32> to vector<8x32xf32>
    %168 = arith.mulf %158, %167 : vector<8x32xf32>
    %169 = vector.broadcast %150 : vector<1x32xf32> to vector<8x32xf32>
    %170 = arith.mulf %168, %169 : vector<8x32xf32>
    %171 = vector.broadcast %152 : vector<1x32xf32> to vector<8x32xf32>
    %172 = arith.addf %170, %171 : vector<8x32xf32>
    %173 = arith.truncf %172 : vector<8x32xf32> to vector<8x32xbf16>
    %c1 = arith.constant 1 : index
    %c0_84 = arith.constant 0 : index
    %c0_85 = arith.constant 0 : index
    %174 = vector.load %arg6[%c1, %c0_84, %c0_85] : memref<2x32x96xbf16, #tpu.memory_space<vmem>>, vector<1x32x96xbf16>
    %175 = vector.shape_cast %174 : vector<1x32x96xbf16> to vector<32x96xbf16>
    %cst_86 = arith.constant dense<0.000000e+00> : vector<8x96xf32>
    %176 = tpu.matmul %173, %175, %cst_86 {dimension_numbers = #tpu.dot_dimension_numbers<[1], [0], [0], [1], [0, 0, 1, 1], [], []>} : vector<8x32xbf16>, vector<32x96xbf16>, vector<8x96xf32> -> vector<8x96xf32>
    %c1_87 = arith.constant 1 : index
    %c0_88 = arith.constant 0 : index
    %c0_89 = arith.constant 0 : index
    %177 = vector.load %arg7[%c1_87, %c0_88, %c0_89] : memref<2x1x96xf32, #tpu.memory_space<vmem>>, vector<1x1x96xf32>
    %178 = vector.shape_cast %177 : vector<1x1x96xf32> to vector<1x96xf32>
    %179 = vector.broadcast %178 : vector<1x96xf32> to vector<8x96xf32>
    %180 = arith.addf %176, %179 : vector<8x96xf32>
    %181 = arith.truncf %180 : vector<8x96xf32> to vector<8x96xbf16>
    %182 = vector.extract_strided_slice %181 {offsets = [0, 0], sizes = [8, 16], strides = [1, 1]} : vector<8x96xbf16> to vector<8x16xbf16>
    %183 = vector.extract_strided_slice %181 {offsets = [0, 32], sizes = [8, 16], strides = [1, 1]} : vector<8x96xbf16> to vector<8x16xbf16>
    %184 = vector.extract_strided_slice %181 {offsets = [0, 64], sizes = [8, 16], strides = [1, 1]} : vector<8x96xbf16> to vector<8x16xbf16>
    %cst_90 = arith.constant dense<0.000000e+00> : vector<8x8xf32>
    %185 = tpu.matmul %182, %183, %cst_90 {dimension_numbers = #tpu.dot_dimension_numbers<[1], [1], [0], [0], [0, 0, 1, 0], [], []>} : vector<8x16xbf16>, vector<8x16xbf16>, vector<8x8xf32> -> vector<8x8xf32>
    %cst_91 = arith.constant 2.500000e-01 : f32
    %186 = vector.broadcast %cst_91 : f32 to vector<8x8xf32>
    %187 = arith.mulf %185, %186 : vector<8x8xf32>
    %188 = vector.broadcast %35 : vector<1x8xf32> to vector<8x8xf32>
    %189 = arith.addf %187, %188 : vector<8x8xf32>
    %cst_92 = arith.constant dense<0xFF800000> : vector<8xf32>
    %190 = vector.multi_reduction <maximumf>, %189, %cst_92 [1] : vector<8x8xf32> to vector<8xf32>
    %191 = vector.shape_cast %190 : vector<8xf32> to vector<8x1xf32>
    %192 = vector.broadcast %191 : vector<8x1xf32> to vector<8x8xf32>
    %193 = arith.subf %189, %192 : vector<8x8xf32>
    %194 = math.exp %193 : vector<8x8xf32>
    %cst_93 = arith.constant dense<0.000000e+00> : vector<8xf32>
    %195 = vector.multi_reduction <add>, %194, %cst_93 [1] : vector<8x8xf32> to vector<8xf32>
    %196 = vector.shape_cast %195 : vector<8xf32> to vector<8x1xf32>
    %197 = tpu.reciprocal %196 {approx = true} : vector<8x1xf32> -> vector<8x1xf32>
    %198 = vector.broadcast %197 : vector<8x1xf32> to vector<8x8xf32>
    %199 = arith.mulf %194, %198 : vector<8x8xf32>
    %200 = arith.truncf %199 : vector<8x8xf32> to vector<8x8xbf16>
    %cst_94 = arith.constant dense<0.000000e+00> : vector<8x16xf32>
    %201 = tpu.matmul %200, %184, %cst_94 {dimension_numbers = #tpu.dot_dimension_numbers<[1], [0], [0], [1], [0, 0, 1, 1], [], []>} : vector<8x8xbf16>, vector<8x16xbf16>, vector<8x16xf32> -> vector<8x16xf32>
    %202 = vector.extract_strided_slice %181 {offsets = [0, 16], sizes = [8, 16], strides = [1, 1]} : vector<8x96xbf16> to vector<8x16xbf16>
    %203 = vector.extract_strided_slice %181 {offsets = [0, 48], sizes = [8, 16], strides = [1, 1]} : vector<8x96xbf16> to vector<8x16xbf16>
    %204 = vector.extract_strided_slice %181 {offsets = [0, 80], sizes = [8, 16], strides = [1, 1]} : vector<8x96xbf16> to vector<8x16xbf16>
    %cst_95 = arith.constant dense<0.000000e+00> : vector<8x8xf32>
    %205 = tpu.matmul %202, %203, %cst_95 {dimension_numbers = #tpu.dot_dimension_numbers<[1], [1], [0], [0], [0, 0, 1, 0], [], []>} : vector<8x16xbf16>, vector<8x16xbf16>, vector<8x8xf32> -> vector<8x8xf32>
    %cst_96 = arith.constant 2.500000e-01 : f32
    %206 = vector.broadcast %cst_96 : f32 to vector<8x8xf32>
    %207 = arith.mulf %205, %206 : vector<8x8xf32>
    %208 = vector.broadcast %35 : vector<1x8xf32> to vector<8x8xf32>
    %209 = arith.addf %207, %208 : vector<8x8xf32>
    %cst_97 = arith.constant dense<0xFF800000> : vector<8xf32>
    %210 = vector.multi_reduction <maximumf>, %209, %cst_97 [1] : vector<8x8xf32> to vector<8xf32>
    %211 = vector.shape_cast %210 : vector<8xf32> to vector<8x1xf32>
    %212 = vector.broadcast %211 : vector<8x1xf32> to vector<8x8xf32>
    %213 = arith.subf %209, %212 : vector<8x8xf32>
    %214 = math.exp %213 : vector<8x8xf32>
    %cst_98 = arith.constant dense<0.000000e+00> : vector<8xf32>
    %215 = vector.multi_reduction <add>, %214, %cst_98 [1] : vector<8x8xf32> to vector<8xf32>
    %216 = vector.shape_cast %215 : vector<8xf32> to vector<8x1xf32>
    %217 = tpu.reciprocal %216 {approx = true} : vector<8x1xf32> -> vector<8x1xf32>
    %218 = vector.broadcast %217 : vector<8x1xf32> to vector<8x8xf32>
    %219 = arith.mulf %214, %218 : vector<8x8xf32>
    %220 = arith.truncf %219 : vector<8x8xf32> to vector<8x8xbf16>
    %cst_99 = arith.constant dense<0.000000e+00> : vector<8x16xf32>
    %221 = tpu.matmul %220, %204, %cst_99 {dimension_numbers = #tpu.dot_dimension_numbers<[1], [0], [0], [1], [0, 0, 1, 1], [], []>} : vector<8x8xbf16>, vector<8x16xbf16>, vector<8x16xf32> -> vector<8x16xf32>
    %222 = tpu.concatenate %201, %221 in 1 : vector<8x16xf32>, vector<8x16xf32> -> vector<8x32xf32>
    %223 = arith.truncf %222 : vector<8x32xf32> to vector<8x32xbf16>
    %c1_100 = arith.constant 1 : index
    %c0_101 = arith.constant 0 : index
    %c0_102 = arith.constant 0 : index
    %224 = vector.load %arg8[%c1_100, %c0_101, %c0_102] : memref<2x32x32xbf16, #tpu.memory_space<vmem>>, vector<1x32x32xbf16>
    %225 = vector.shape_cast %224 : vector<1x32x32xbf16> to vector<32x32xbf16>
    %cst_103 = arith.constant dense<0.000000e+00> : vector<8x32xf32>
    %226 = tpu.matmul %223, %225, %cst_103 {dimension_numbers = #tpu.dot_dimension_numbers<[1], [0], [0], [1], [0, 0, 1, 1], [], []>} : vector<8x32xbf16>, vector<32x32xbf16>, vector<8x32xf32> -> vector<8x32xf32>
    %c1_104 = arith.constant 1 : index
    %c0_105 = arith.constant 0 : index
    %c0_106 = arith.constant 0 : index
    %227 = vector.load %arg9[%c1_104, %c0_105, %c0_106] : memref<2x1x32xf32, #tpu.memory_space<vmem>>, vector<1x1x32xf32>
    %228 = vector.shape_cast %227 : vector<1x1x32xf32> to vector<1x32xf32>
    %229 = vector.broadcast %228 : vector<1x32xf32> to vector<8x32xf32>
    %230 = arith.addf %226, %229 : vector<8x32xf32>
    %231 = arith.addf %230, %172 : vector<8x32xf32>
    %c1_107 = arith.constant 1 : index
    %c0_108 = arith.constant 0 : index
    %c0_109 = arith.constant 0 : index
    %232 = vector.load %arg10[%c1_107, %c0_108, %c0_109] : memref<2x1x32xf32, #tpu.memory_space<vmem>>, vector<1x1x32xf32>
    %233 = vector.shape_cast %232 : vector<1x1x32xf32> to vector<1x32xf32>
    %c1_110 = arith.constant 1 : index
    %c0_111 = arith.constant 0 : index
    %c0_112 = arith.constant 0 : index
    %234 = vector.load %arg11[%c1_110, %c0_111, %c0_112] : memref<2x1x32xf32, #tpu.memory_space<vmem>>, vector<1x1x32xf32>
    %235 = vector.shape_cast %234 : vector<1x1x32xf32> to vector<1x32xf32>
    %cst_113 = arith.constant dense<0.000000e+00> : vector<8xf32>
    %236 = vector.multi_reduction <add>, %231, %cst_113 [1] : vector<8x32xf32> to vector<8xf32>
    %237 = vector.shape_cast %236 : vector<8xf32> to vector<8x1xf32>
    %cst_114 = arith.constant 3.200000e+01 : f32
    %238 = vector.broadcast %cst_114 : f32 to vector<8x1xf32>
    %239 = arith.divf %237, %238 : vector<8x1xf32>
    %240 = vector.broadcast %239 : vector<8x1xf32> to vector<8x32xf32>
    %241 = arith.subf %231, %240 : vector<8x32xf32>
    %242 = arith.mulf %241, %241 : vector<8x32xf32>
    %cst_115 = arith.constant dense<0.000000e+00> : vector<8xf32>
    %243 = vector.multi_reduction <add>, %242, %cst_115 [1] : vector<8x32xf32> to vector<8xf32>
    %244 = vector.shape_cast %243 : vector<8xf32> to vector<8x1xf32>
    %cst_116 = arith.constant 3.200000e+01 : f32
    %245 = vector.broadcast %cst_116 : f32 to vector<8x1xf32>
    %246 = arith.divf %244, %245 : vector<8x1xf32>
    %cst_117 = arith.constant 9.99999996E-13 : f32
    %247 = vector.broadcast %cst_117 : f32 to vector<8x1xf32>
    %248 = arith.addf %246, %247 : vector<8x1xf32>
    %249 = math.rsqrt %248 : vector<8x1xf32>
    %250 = vector.broadcast %249 : vector<8x1xf32> to vector<8x32xf32>
    %251 = arith.mulf %241, %250 : vector<8x32xf32>
    %252 = vector.broadcast %233 : vector<1x32xf32> to vector<8x32xf32>
    %253 = arith.mulf %251, %252 : vector<8x32xf32>
    %254 = vector.broadcast %235 : vector<1x32xf32> to vector<8x32xf32>
    %255 = arith.addf %253, %254 : vector<8x32xf32>
    %256 = arith.truncf %255 : vector<8x32xf32> to vector<8x32xbf16>
    %c1_118 = arith.constant 1 : index
    %c0_119 = arith.constant 0 : index
    %c0_120 = arith.constant 0 : index
    %257 = vector.load %arg12[%c1_118, %c0_119, %c0_120] : memref<2x32x64xbf16, #tpu.memory_space<vmem>>, vector<1x32x64xbf16>
    %258 = vector.shape_cast %257 : vector<1x32x64xbf16> to vector<32x64xbf16>
    %cst_121 = arith.constant dense<0.000000e+00> : vector<8x64xf32>
    %259 = tpu.matmul %256, %258, %cst_121 {dimension_numbers = #tpu.dot_dimension_numbers<[1], [0], [0], [1], [0, 0, 1, 1], [], []>} : vector<8x32xbf16>, vector<32x64xbf16>, vector<8x64xf32> -> vector<8x64xf32>
    %c1_122 = arith.constant 1 : index
    %c0_123 = arith.constant 0 : index
    %c0_124 = arith.constant 0 : index
    %260 = vector.load %arg13[%c1_122, %c0_123, %c0_124] : memref<2x1x64xf32, #tpu.memory_space<vmem>>, vector<1x1x64xf32>
    %261 = vector.shape_cast %260 : vector<1x1x64xf32> to vector<1x64xf32>
    %262 = vector.broadcast %261 : vector<1x64xf32> to vector<8x64xf32>
    %263 = arith.addf %259, %262 : vector<8x64xf32>
    %264 = arith.mulf %263, %263 : vector<8x64xf32>
    %265 = arith.mulf %263, %264 : vector<8x64xf32>
    %cst_125 = arith.constant 4.471500e-02 : f32
    %266 = vector.broadcast %cst_125 : f32 to vector<8x64xf32>
    %267 = arith.mulf %266, %265 : vector<8x64xf32>
    %268 = arith.addf %263, %267 : vector<8x64xf32>
    %cst_126 = arith.constant 0.797884583 : f32
    %269 = vector.broadcast %cst_126 : f32 to vector<8x64xf32>
    %270 = arith.mulf %269, %268 : vector<8x64xf32>
    %271 = math.tanh %270 : vector<8x64xf32>
    %cst_127 = arith.constant 1.000000e+00 : f32
    %272 = vector.broadcast %cst_127 : f32 to vector<8x64xf32>
    %273 = arith.addf %272, %271 : vector<8x64xf32>
    %cst_128 = arith.constant 5.000000e-01 : f32
    %274 = vector.broadcast %cst_128 : f32 to vector<8x64xf32>
    %275 = arith.mulf %274, %273 : vector<8x64xf32>
    %276 = arith.mulf %263, %275 : vector<8x64xf32>
    %277 = arith.truncf %276 : vector<8x64xf32> to vector<8x64xbf16>
    %c1_129 = arith.constant 1 : index
    %c0_130 = arith.constant 0 : index
    %c0_131 = arith.constant 0 : index
    %278 = vector.load %arg14[%c1_129, %c0_130, %c0_131] : memref<2x64x32xbf16, #tpu.memory_space<vmem>>, vector<1x64x32xbf16>
    %279 = vector.shape_cast %278 : vector<1x64x32xbf16> to vector<64x32xbf16>
    %cst_132 = arith.constant dense<0.000000e+00> : vector<8x32xf32>
    %280 = tpu.matmul %277, %279, %cst_132 {dimension_numbers = #tpu.dot_dimension_numbers<[1], [0], [0], [1], [0, 0, 1, 1], [], []>} : vector<8x64xbf16>, vector<64x32xbf16>, vector<8x32xf32> -> vector<8x32xf32>
    %c1_133 = arith.constant 1 : index
    %c0_134 = arith.constant 0 : index
    %c0_135 = arith.constant 0 : index
    %281 = vector.load %arg15[%c1_133, %c0_134, %c0_135] : memref<2x1x32xf32, #tpu.memory_space<vmem>>, vector<1x1x32xf32>
    %282 = vector.shape_cast %281 : vector<1x1x32xf32> to vector<1x32xf32>
    %283 = vector.broadcast %282 : vector<1x32xf32> to vector<8x32xf32>
    %284 = arith.addf %280, %283 : vector<8x32xf32>
    %285 = arith.addf %284, %255 : vector<8x32xf32>
    %c1_136 = arith.constant 1 : index
    %c0_137 = arith.constant 0 : index
    %c0_138 = arith.constant 0 : index
    %286 = vector.load %arg16[%c1_136, %c0_137, %c0_138] : memref<2x1x32xf32, #tpu.memory_space<vmem>>, vector<1x1x32xf32>
    %287 = vector.shape_cast %286 : vector<1x1x32xf32> to vector<1x32xf32>
    %c1_139 = arith.constant 1 : index
    %c0_140 = arith.constant 0 : index
    %c0_141 = arith.constant 0 : index
    %288 = vector.load %arg17[%c1_139, %c0_140, %c0_141] : memref<2x1x32xf32, #tpu.memory_space<vmem>>, vector<1x1x32xf32>
    %289 = vector.shape_cast %288 : vector<1x1x32xf32> to vector<1x32xf32>
    %cst_142 = arith.constant dense<0.000000e+00> : vector<8xf32>
    %290 = vector.multi_reduction <add>, %285, %cst_142 [1] : vector<8x32xf32> to vector<8xf32>
    %291 = vector.shape_cast %290 : vector<8xf32> to vector<8x1xf32>
    %cst_143 = arith.constant 3.200000e+01 : f32
    %292 = vector.broadcast %cst_143 : f32 to vector<8x1xf32>
    %293 = arith.divf %291, %292 : vector<8x1xf32>
    %294 = vector.broadcast %293 : vector<8x1xf32> to vector<8x32xf32>
    %295 = arith.subf %285, %294 : vector<8x32xf32>
    %296 = arith.mulf %295, %295 : vector<8x32xf32>
    %cst_144 = arith.constant dense<0.000000e+00> : vector<8xf32>
    %297 = vector.multi_reduction <add>, %296, %cst_144 [1] : vector<8x32xf32> to vector<8xf32>
    %298 = vector.shape_cast %297 : vector<8xf32> to vector<8x1xf32>
    %cst_145 = arith.constant 3.200000e+01 : f32
    %299 = vector.broadcast %cst_145 : f32 to vector<8x1xf32>
    %300 = arith.divf %298, %299 : vector<8x1xf32>
    %cst_146 = arith.constant 9.99999996E-13 : f32
    %301 = vector.broadcast %cst_146 : f32 to vector<8x1xf32>
    %302 = arith.addf %300, %301 : vector<8x1xf32>
    %303 = math.rsqrt %302 : vector<8x1xf32>
    %304 = vector.broadcast %303 : vector<8x1xf32> to vector<8x32xf32>
    %305 = arith.mulf %295, %304 : vector<8x32xf32>
    %306 = vector.broadcast %287 : vector<1x32xf32> to vector<8x32xf32>
    %307 = arith.mulf %305, %306 : vector<8x32xf32>
    %308 = vector.broadcast %289 : vector<1x32xf32> to vector<8x32xf32>
    %309 = arith.addf %307, %308 : vector<8x32xf32>
    %310 = vector.extract_strided_slice %309 {offsets = [0, 0], sizes = [1, 32], strides = [1, 1]} : vector<8x32xf32> to vector<1x32xf32>
    %311 = arith.truncf %310 : vector<1x32xf32> to vector<1x32xbf16>
    %c0_147 = arith.constant 0 : index
    %c0_148 = arith.constant 0 : index
    %312 = vector.load %arg18[%c0_147, %c0_148] : memref<32x128xbf16, #tpu.memory_space<vmem>>, vector<32x128xbf16>
    %cst_149 = arith.constant dense<0.000000e+00> : vector<1x128xf32>
    %313 = tpu.matmul %311, %312, %cst_149 {dimension_numbers = #tpu.dot_dimension_numbers<[1], [0], [0], [1], [0, 0, 1, 1], [], []>} : vector<1x32xbf16>, vector<32x128xbf16>, vector<1x128xf32> -> vector<1x128xf32>
    %c0_150 = arith.constant 0 : index
    %c0_151 = arith.constant 0 : index
    %314 = vector.load %arg19[%c0_150, %c0_151] : memref<1x128xf32, #tpu.memory_space<vmem>>, vector<1x128xf32>
    %315 = arith.addf %313, %314 : vector<1x128xf32>
    %316 = math.tanh %315 : vector<1x128xf32>
    %317 = arith.truncf %316 : vector<1x128xf32> to vector<1x128xbf16>
    %c0_152 = arith.constant 0 : index
    %c0_153 = arith.constant 0 : index
    %318 = vector.load %arg20[%c0_152, %c0_153] : memref<128x128xbf16, #tpu.memory_space<vmem>>, vector<128x128xbf16>
    %cst_154 = arith.constant dense<0.000000e+00> : vector<1x128xf32>
    %319 = tpu.matmul %317, %318, %cst_154 {dimension_numbers = #tpu.dot_dimension_numbers<[1], [0], [0], [1], [0, 0, 1, 1], [], []>} : vector<1x128xbf16>, vector<128x128xbf16>, vector<1x128xf32> -> vector<1x128xf32>
    %c0_155 = arith.constant 0 : index
    %c0_156 = arith.constant 0 : index
    %320 = vector.load %arg21[%c0_155, %c0_156] : memref<1x128xf32, #tpu.memory_space<vmem>>, vector<1x128xf32>
    %321 = arith.addf %319, %320 : vector<1x128xf32>
    %c1_157 = arith.constant 1 : index
    %c0_158 = arith.constant 0 : index
    %c0_159 = arith.constant 0 : index
    %322 = vector.load %arg0[%c1_157, %c0_158, %c0_159] : memref<2x8x1xi32, #tpu.memory_space<vmem>>, vector<1x8x1xi32>
    %323 = vector.shape_cast %322 : vector<1x8x1xi32> to vector<8x1xi32>
    %324 = vector.broadcast %323 : vector<8x1xi32> to vector<8x128xi32>
    %325 = arith.cmpi eq, %0, %324 : vector<8x128xi32>
    %cst_160 = arith.constant 1.000000e+00 : f32
    %cst_161 = arith.constant 0.000000e+00 : f32
    %326 = vector.broadcast %cst_160 : f32 to vector<8x128xf32>
    %327 = vector.broadcast %cst_161 : f32 to vector<8x128xf32>
    %328 = arith.select %325, %326, %327 : vector<8x128xi1>, vector<8x128xf32>
    %c0_162 = arith.constant 0 : index
    %c0_163 = arith.constant 0 : index
    %329 = vector.load %arg2[%c0_162, %c0_163] : memref<128x32xf32, #tpu.memory_space<vmem>>, vector<128x32xf32>
    %cst_164 = arith.constant dense<0.000000e+00> : vector<8x32xf32>
    %330 = tpu.matmul %328, %329, %cst_164 {dimension_numbers = #tpu.dot_dimension_numbers<[1], [0], [0], [1], [0, 0, 1, 1], [], []>} : vector<8x128xf32>, vector<128x32xf32>, vector<8x32xf32> -> vector<8x32xf32>
    %c0_165 = arith.constant 0 : index
    %c0_166 = arith.constant 0 : index
    %331 = vector.load %arg3[%c0_165, %c0_166] : memref<8x32xf32, #tpu.memory_space<vmem>>, vector<8x32xf32>
    %332 = arith.addf %330, %331 : vector<8x32xf32>
    %c0_167 = arith.constant 0 : index
    %c0_168 = arith.constant 0 : index
    %333 = vector.load %arg4[%c0_167, %c0_168] : memref<1x32xf32, #tpu.memory_space<vmem>>, vector<1x32xf32>
    %c0_169 = arith.constant 0 : index
    %c0_170 = arith.constant 0 : index
    %334 = vector.load %arg5[%c0_169, %c0_170] : memref<1x32xf32, #tpu.memory_space<vmem>>, vector<1x32xf32>
    %cst_171 = arith.constant dense<0.000000e+00> : vector<8xf32>
    %335 = vector.multi_reduction <add>, %332, %cst_171 [1] : vector<8x32xf32> to vector<8xf32>
    %336 = vector.shape_cast %335 : vector<8xf32> to vector<8x1xf32>
    %cst_172 = arith.constant 3.200000e+01 : f32
    %337 = vector.broadcast %cst_172 : f32 to vector<8x1xf32>
    %338 = arith.divf %336, %337 : vector<8x1xf32>
    %339 = vector.broadcast %338 : vector<8x1xf32> to vector<8x32xf32>
    %340 = arith.subf %332, %339 : vector<8x32xf32>
    %341 = arith.mulf %340, %340 : vector<8x32xf32>
    %cst_173 = arith.constant dense<0.000000e+00> : vector<8xf32>
    %342 = vector.multi_reduction <add>, %341, %cst_173 [1] : vector<8x32xf32> to vector<8xf32>
    %343 = vector.shape_cast %342 : vector<8xf32> to vector<8x1xf32>
    %cst_174 = arith.constant 3.200000e+01 : f32
    %344 = vector.broadcast %cst_174 : f32 to vector<8x1xf32>
    %345 = arith.divf %343, %344 : vector<8x1xf32>
    %cst_175 = arith.constant 9.99999996E-13 : f32
    %346 = vector.broadcast %cst_175 : f32 to vector<8x1xf32>
    %347 = arith.addf %345, %346 : vector<8x1xf32>
    %348 = math.rsqrt %347 : vector<8x1xf32>
    %349 = vector.broadcast %348 : vector<8x1xf32> to vector<8x32xf32>
    %350 = arith.mulf %340, %349 : vector<8x32xf32>
    %351 = vector.broadcast %333 : vector<1x32xf32> to vector<8x32xf32>
    %352 = arith.mulf %350, %351 : vector<8x32xf32>
    %353 = vector.broadcast %334 : vector<1x32xf32> to vector<8x32xf32>
    %354 = arith.addf %352, %353 : vector<8x32xf32>
    %c1_176 = arith.constant 1 : index
    %c0_177 = arith.constant 0 : index
    %c0_178 = arith.constant 0 : index
    %355 = vector.load %arg1[%c1_176, %c0_177, %c0_178] : memref<2x1x8xf32, #tpu.memory_space<vmem>>, vector<1x1x8xf32>
    %356 = vector.shape_cast %355 : vector<1x1x8xf32> to vector<1x8xf32>
    %357 = arith.truncf %354 : vector<8x32xf32> to vector<8x32xbf16>
    %c0_179 = arith.constant 0 : index
    %c0_180 = arith.constant 0 : index
    %c0_181 = arith.constant 0 : index
    %358 = vector.load %arg6[%c0_179, %c0_180, %c0_181] : memref<2x32x96xbf16, #tpu.memory_space<vmem>>, vector<1x32x96xbf16>
    %359 = vector.shape_cast %358 : vector<1x32x96xbf16> to vector<32x96xbf16>
    %cst_182 = arith.constant dense<0.000000e+00> : vector<8x96xf32>
    %360 = tpu.matmul %357, %359, %cst_182 {dimension_numbers = #tpu.dot_dimension_numbers<[1], [0], [0], [1], [0, 0, 1, 1], [], []>} : vector<8x32xbf16>, vector<32x96xbf16>, vector<8x96xf32> -> vector<8x96xf32>
    %c0_183 = arith.constant 0 : index
    %c0_184 = arith.constant 0 : index
    %c0_185 = arith.constant 0 : index
    %361 = vector.load %arg7[%c0_183, %c0_184, %c0_185] : memref<2x1x96xf32, #tpu.memory_space<vmem>>, vector<1x1x96xf32>
    %362 = vector.shape_cast %361 : vector<1x1x96xf32> to vector<1x96xf32>
    %363 = vector.broadcast %362 : vector<1x96xf32> to vector<8x96xf32>
    %364 = arith.addf %360, %363 : vector<8x96xf32>
    %365 = arith.truncf %364 : vector<8x96xf32> to vector<8x96xbf16>
    %366 = vector.extract_strided_slice %365 {offsets = [0, 0], sizes = [8, 16], strides = [1, 1]} : vector<8x96xbf16> to vector<8x16xbf16>
    %367 = vector.extract_strided_slice %365 {offsets = [0, 32], sizes = [8, 16], strides = [1, 1]} : vector<8x96xbf16> to vector<8x16xbf16>
    %368 = vector.extract_strided_slice %365 {offsets = [0, 64], sizes = [8, 16], strides = [1, 1]} : vector<8x96xbf16> to vector<8x16xbf16>
    %cst_186 = arith.constant dense<0.000000e+00> : vector<8x8xf32>
    %369 = tpu.matmul %366, %367, %cst_186 {dimension_numbers = #tpu.dot_dimension_numbers<[1], [1], [0], [0], [0, 0, 1, 0], [], []>} : vector<8x16xbf16>, vector<8x16xbf16>, vector<8x8xf32> -> vector<8x8xf32>
    %cst_187 = arith.constant 2.500000e-01 : f32
    %370 = vector.broadcast %cst_187 : f32 to vector<8x8xf32>
    %371 = arith.mulf %369, %370 : vector<8x8xf32>
    %372 = vector.broadcast %356 : vector<1x8xf32> to vector<8x8xf32>
    %373 = arith.addf %371, %372 : vector<8x8xf32>
    %cst_188 = arith.constant dense<0xFF800000> : vector<8xf32>
    %374 = vector.multi_reduction <maximumf>, %373, %cst_188 [1] : vector<8x8xf32> to vector<8xf32>
    %375 = vector.shape_cast %374 : vector<8xf32> to vector<8x1xf32>
    %376 = vector.broadcast %375 : vector<8x1xf32> to vector<8x8xf32>
    %377 = arith.subf %373, %376 : vector<8x8xf32>
    %378 = math.exp %377 : vector<8x8xf32>
    %cst_189 = arith.constant dense<0.000000e+00> : vector<8xf32>
    %379 = vector.multi_reduction <add>, %378, %cst_189 [1] : vector<8x8xf32> to vector<8xf32>
    %380 = vector.shape_cast %379 : vector<8xf32> to vector<8x1xf32>
    %381 = tpu.reciprocal %380 {approx = true} : vector<8x1xf32> -> vector<8x1xf32>
    %382 = vector.broadcast %381 : vector<8x1xf32> to vector<8x8xf32>
    %383 = arith.mulf %378, %382 : vector<8x8xf32>
    %384 = arith.truncf %383 : vector<8x8xf32> to vector<8x8xbf16>
    %cst_190 = arith.constant dense<0.000000e+00> : vector<8x16xf32>
    %385 = tpu.matmul %384, %368, %cst_190 {dimension_numbers = #tpu.dot_dimension_numbers<[1], [0], [0], [1], [0, 0, 1, 1], [], []>} : vector<8x8xbf16>, vector<8x16xbf16>, vector<8x16xf32> -> vector<8x16xf32>
    %386 = vector.extract_strided_slice %365 {offsets = [0, 16], sizes = [8, 16], strides = [1, 1]} : vector<8x96xbf16> to vector<8x16xbf16>
    %387 = vector.extract_strided_slice %365 {offsets = [0, 48], sizes = [8, 16], strides = [1, 1]} : vector<8x96xbf16> to vector<8x16xbf16>
    %388 = vector.extract_strided_slice %365 {offsets = [0, 80], sizes = [8, 16], strides = [1, 1]} : vector<8x96xbf16> to vector<8x16xbf16>
    %cst_191 = arith.constant dense<0.000000e+00> : vector<8x8xf32>
    %389 = tpu.matmul %386, %387, %cst_191 {dimension_numbers = #tpu.dot_dimension_numbers<[1], [1], [0], [0], [0, 0, 1, 0], [], []>} : vector<8x16xbf16>, vector<8x16xbf16>, vector<8x8xf32> -> vector<8x8xf32>
    %cst_192 = arith.constant 2.500000e-01 : f32
    %390 = vector.broadcast %cst_192 : f32 to vector<8x8xf32>
    %391 = arith.mulf %389, %390 : vector<8x8xf32>
    %392 = vector.broadcast %356 : vector<1x8xf32> to vector<8x8xf32>
    %393 = arith.addf %391, %392 : vector<8x8xf32>
    %cst_193 = arith.constant dense<0xFF800000> : vector<8xf32>
    %394 = vector.multi_reduction <maximumf>, %393, %cst_193 [1] : vector<8x8xf32> to vector<8xf32>
    %395 = vector.shape_cast %394 : vector<8xf32> to vector<8x1xf32>
    %396 = vector.broadcast %395 : vector<8x1xf32> to vector<8x8xf32>
    %397 = arith.subf %393, %396 : vector<8x8xf32>
    %398 = math.exp %397 : vector<8x8xf32>
    %cst_194 = arith.constant dense<0.000000e+00> : vector<8xf32>
    %399 = vector.multi_reduction <add>, %398, %cst_194 [1] : vector<8x8xf32> to vector<8xf32>
    %400 = vector.shape_cast %399 : vector<8xf32> to vector<8x1xf32>
    %401 = tpu.reciprocal %400 {approx = true} : vector<8x1xf32> -> vector<8x1xf32>
    %402 = vector.broadcast %401 : vector<8x1xf32> to vector<8x8xf32>
    %403 = arith.mulf %398, %402 : vector<8x8xf32>
    %404 = arith.truncf %403 : vector<8x8xf32> to vector<8x8xbf16>
    %cst_195 = arith.constant dense<0.000000e+00> : vector<8x16xf32>
    %405 = tpu.matmul %404, %388, %cst_195 {dimension_numbers = #tpu.dot_dimension_numbers<[1], [0], [0], [1], [0, 0, 1, 1], [], []>} : vector<8x8xbf16>, vector<8x16xbf16>, vector<8x16xf32> -> vector<8x16xf32>
    %406 = tpu.concatenate %385, %405 in 1 : vector<8x16xf32>, vector<8x16xf32> -> vector<8x32xf32>
    %407 = arith.truncf %406 : vector<8x32xf32> to vector<8x32xbf16>
    %c0_196 = arith.constant 0 : index
    %c0_197 = arith.constant 0 : index
    %c0_198 = arith.constant 0 : index
    %408 = vector.load %arg8[%c0_196, %c0_197, %c0_198] : memref<2x32x32xbf16, #tpu.memory_space<vmem>>, vector<1x32x32xbf16>
    %409 = vector.shape_cast %408 : vector<1x32x32xbf16> to vector<32x32xbf16>
    %cst_199 = arith.constant dense<0.000000e+00> : vector<8x32xf32>
    %410 = tpu.matmul %407, %409, %cst_199 {dimension_numbers = #tpu.dot_dimension_numbers<[1], [0], [0], [1], [0, 0, 1, 1], [], []>} : vector<8x32xbf16>, vector<32x32xbf16>, vector<8x32xf32> -> vector<8x32xf32>
    %c0_200 = arith.constant 0 : index
    %c0_201 = arith.constant 0 : index
    %c0_202 = arith.constant 0 : index
    %411 = vector.load %arg9[%c0_200, %c0_201, %c0_202] : memref<2x1x32xf32, #tpu.memory_space<vmem>>, vector<1x1x32xf32>
    %412 = vector.shape_cast %411 : vector<1x1x32xf32> to vector<1x32xf32>
    %413 = vector.broadcast %412 : vector<1x32xf32> to vector<8x32xf32>
    %414 = arith.addf %410, %413 : vector<8x32xf32>
    %415 = arith.addf %414, %354 : vector<8x32xf32>
    %c0_203 = arith.constant 0 : index
    %c0_204 = arith.constant 0 : index
    %c0_205 = arith.constant 0 : index
    %416 = vector.load %arg10[%c0_203, %c0_204, %c0_205] : memref<2x1x32xf32, #tpu.memory_space<vmem>>, vector<1x1x32xf32>
    %417 = vector.shape_cast %416 : vector<1x1x32xf32> to vector<1x32xf32>
    %c0_206 = arith.constant 0 : index
    %c0_207 = arith.constant 0 : index
    %c0_208 = arith.constant 0 : index
    %418 = vector.load %arg11[%c0_206, %c0_207, %c0_208] : memref<2x1x32xf32, #tpu.memory_space<vmem>>, vector<1x1x32xf32>
    %419 = vector.shape_cast %418 : vector<1x1x32xf32> to vector<1x32xf32>
    %cst_209 = arith.constant dense<0.000000e+00> : vector<8xf32>
    %420 = vector.multi_reduction <add>, %415, %cst_209 [1] : vector<8x32xf32> to vector<8xf32>
    %421 = vector.shape_cast %420 : vector<8xf32> to vector<8x1xf32>
    %cst_210 = arith.constant 3.200000e+01 : f32
    %422 = vector.broadcast %cst_210 : f32 to vector<8x1xf32>
    %423 = arith.divf %421, %422 : vector<8x1xf32>
    %424 = vector.broadcast %423 : vector<8x1xf32> to vector<8x32xf32>
    %425 = arith.subf %415, %424 : vector<8x32xf32>
    %426 = arith.mulf %425, %425 : vector<8x32xf32>
    %cst_211 = arith.constant dense<0.000000e+00> : vector<8xf32>
    %427 = vector.multi_reduction <add>, %426, %cst_211 [1] : vector<8x32xf32> to vector<8xf32>
    %428 = vector.shape_cast %427 : vector<8xf32> to vector<8x1xf32>
    %cst_212 = arith.constant 3.200000e+01 : f32
    %429 = vector.broadcast %cst_212 : f32 to vector<8x1xf32>
    %430 = arith.divf %428, %429 : vector<8x1xf32>
    %cst_213 = arith.constant 9.99999996E-13 : f32
    %431 = vector.broadcast %cst_213 : f32 to vector<8x1xf32>
    %432 = arith.addf %430, %431 : vector<8x1xf32>
    %433 = math.rsqrt %432 : vector<8x1xf32>
    %434 = vector.broadcast %433 : vector<8x1xf32> to vector<8x32xf32>
    %435 = arith.mulf %425, %434 : vector<8x32xf32>
    %436 = vector.broadcast %417 : vector<1x32xf32> to vector<8x32xf32>
    %437 = arith.mulf %435, %436 : vector<8x32xf32>
    %438 = vector.broadcast %419 : vector<1x32xf32> to vector<8x32xf32>
    %439 = arith.addf %437, %438 : vector<8x32xf32>
    %440 = arith.truncf %439 : vector<8x32xf32> to vector<8x32xbf16>
    %c0_214 = arith.constant 0 : index
    %c0_215 = arith.constant 0 : index
    %c0_216 = arith.constant 0 : index
    %441 = vector.load %arg12[%c0_214, %c0_215, %c0_216] : memref<2x32x64xbf16, #tpu.memory_space<vmem>>, vector<1x32x64xbf16>
    %442 = vector.shape_cast %441 : vector<1x32x64xbf16> to vector<32x64xbf16>
    %cst_217 = arith.constant dense<0.000000e+00> : vector<8x64xf32>
    %443 = tpu.matmul %440, %442, %cst_217 {dimension_numbers = #tpu.dot_dimension_numbers<[1], [0], [0], [1], [0, 0, 1, 1], [], []>} : vector<8x32xbf16>, vector<32x64xbf16>, vector<8x64xf32> -> vector<8x64xf32>
    %c0_218 = arith.constant 0 : index
    %c0_219 = arith.constant 0 : index
    %c0_220 = arith.constant 0 : index
    %444 = vector.load %arg13[%c0_218, %c0_219, %c0_220] : memref<2x1x64xf32, #tpu.memory_space<vmem>>, vector<1x1x64xf32>
    %445 = vector.shape_cast %444 : vector<1x1x64xf32> to vector<1x64xf32>
    %446 = vector.broadcast %445 : vector<1x64xf32> to vector<8x64xf32>
    %447 = arith.addf %443, %446 : vector<8x64xf32>
    %448 = arith.mulf %447, %447 : vector<8x64xf32>
    %449 = arith.mulf %447, %448 : vector<8x64xf32>
    %cst_221 = arith.constant 4.471500e-02 : f32
    %450 = vector.broadcast %cst_221 : f32 to vector<8x64xf32>
    %451 = arith.mulf %450, %449 : vector<8x64xf32>
    %452 = arith.addf %447, %451 : vector<8x64xf32>
    %cst_222 = arith.constant 0.797884583 : f32
    %453 = vector.broadcast %cst_222 : f32 to vector<8x64xf32>
    %454 = arith.mulf %453, %452 : vector<8x64xf32>
    %455 = math.tanh %454 : vector<8x64xf32>
    %cst_223 = arith.constant 1.000000e+00 : f32
    %456 = vector.broadcast %cst_223 : f32 to vector<8x64xf32>
    %457 = arith.addf %456, %455 : vector<8x64xf32>
    %cst_224 = arith.constant 5.000000e-01 : f32
    %458 = vector.broadcast %cst_224 : f32 to vector<8x64xf32>
    %459 = arith.mulf %458, %457 : vector<8x64xf32>
    %460 = arith.mulf %447, %459 : vector<8x64xf32>
    %461 = arith.truncf %460 : vector<8x64xf32> to vector<8x64xbf16>
    %c0_225 = arith.constant 0 : index
    %c0_226 = arith.constant 0 : index
    %c0_227 = arith.constant 0 : index
    %462 = vector.load %arg14[%c0_225, %c0_226, %c0_227] : memref<2x64x32xbf16, #tpu.memory_space<vmem>>, vector<1x64x32xbf16>
    %463 = vector.shape_cast %462 : vector<1x64x32xbf16> to vector<64x32xbf16>
    %cst_228 = arith.constant dense<0.000000e+00> : vector<8x32xf32>
    %464 = tpu.matmul %461, %463, %cst_228 {dimension_numbers = #tpu.dot_dimension_numbers<[1], [0], [0], [1], [0, 0, 1, 1], [], []>} : vector<8x64xbf16>, vector<64x32xbf16>, vector<8x32xf32> -> vector<8x32xf32>
    %c0_229 = arith.constant 0 : index
    %c0_230 = arith.constant 0 : index
    %c0_231 = arith.constant 0 : index
    %465 = vector.load %arg15[%c0_229, %c0_230, %c0_231] : memref<2x1x32xf32, #tpu.memory_space<vmem>>, vector<1x1x32xf32>
    %466 = vector.shape_cast %465 : vector<1x1x32xf32> to vector<1x32xf32>
    %467 = vector.broadcast %466 : vector<1x32xf32> to vector<8x32xf32>
    %468 = arith.addf %464, %467 : vector<8x32xf32>
    %469 = arith.addf %468, %439 : vector<8x32xf32>
    %c0_232 = arith.constant 0 : index
    %c0_233 = arith.constant 0 : index
    %c0_234 = arith.constant 0 : index
    %470 = vector.load %arg16[%c0_232, %c0_233, %c0_234] : memref<2x1x32xf32, #tpu.memory_space<vmem>>, vector<1x1x32xf32>
    %471 = vector.shape_cast %470 : vector<1x1x32xf32> to vector<1x32xf32>
    %c0_235 = arith.constant 0 : index
    %c0_236 = arith.constant 0 : index
    %c0_237 = arith.constant 0 : index
    %472 = vector.load %arg17[%c0_235, %c0_236, %c0_237] : memref<2x1x32xf32, #tpu.memory_space<vmem>>, vector<1x1x32xf32>
    %473 = vector.shape_cast %472 : vector<1x1x32xf32> to vector<1x32xf32>
    %cst_238 = arith.constant dense<0.000000e+00> : vector<8xf32>
    %474 = vector.multi_reduction <add>, %469, %cst_238 [1] : vector<8x32xf32> to vector<8xf32>
    %475 = vector.shape_cast %474 : vector<8xf32> to vector<8x1xf32>
    %cst_239 = arith.constant 3.200000e+01 : f32
    %476 = vector.broadcast %cst_239 : f32 to vector<8x1xf32>
    %477 = arith.divf %475, %476 : vector<8x1xf32>
    %478 = vector.broadcast %477 : vector<8x1xf32> to vector<8x32xf32>
    %479 = arith.subf %469, %478 : vector<8x32xf32>
    %480 = arith.mulf %479, %479 : vector<8x32xf32>
    %cst_240 = arith.constant dense<0.000000e+00> : vector<8xf32>
    %481 = vector.multi_reduction <add>, %480, %cst_240 [1] : vector<8x32xf32> to vector<8xf32>
    %482 = vector.shape_cast %481 : vector<8xf32> to vector<8x1xf32>
    %cst_241 = arith.constant 3.200000e+01 : f32
    %483 = vector.broadcast %cst_241 : f32 to vector<8x1xf32>
    %484 = arith.divf %482, %483 : vector<8x1xf32>
    %cst_242 = arith.constant 9.99999996E-13 : f32
    %485 = vector.broadcast %cst_242 : f32 to vector<8x1xf32>
    %486 = arith.addf %484, %485 : vector<8x1xf32>
    %487 = math.rsqrt %486 : vector<8x1xf32>
    %488 = vector.broadcast %487 : vector<8x1xf32> to vector<8x32xf32>
    %489 = arith.mulf %479, %488 : vector<8x32xf32>
    %490 = vector.broadcast %471 : vector<1x32xf32> to vector<8x32xf32>
    %491 = arith.mulf %489, %490 : vector<8x32xf32>
    %492 = vector.broadcast %473 : vector<1x32xf32> to vector<8x32xf32>
    %493 = arith.addf %491, %492 : vector<8x32xf32>
    %494 = arith.truncf %493 : vector<8x32xf32> to vector<8x32xbf16>
    %c1_243 = arith.constant 1 : index
    %c0_244 = arith.constant 0 : index
    %c0_245 = arith.constant 0 : index
    %495 = vector.load %arg6[%c1_243, %c0_244, %c0_245] : memref<2x32x96xbf16, #tpu.memory_space<vmem>>, vector<1x32x96xbf16>
    %496 = vector.shape_cast %495 : vector<1x32x96xbf16> to vector<32x96xbf16>
    %cst_246 = arith.constant dense<0.000000e+00> : vector<8x96xf32>
    %497 = tpu.matmul %494, %496, %cst_246 {dimension_numbers = #tpu.dot_dimension_numbers<[1], [0], [0], [1], [0, 0, 1, 1], [], []>} : vector<8x32xbf16>, vector<32x96xbf16>, vector<8x96xf32> -> vector<8x96xf32>
    %c1_247 = arith.constant 1 : index
    %c0_248 = arith.constant 0 : index
    %c0_249 = arith.constant 0 : index
    %498 = vector.load %arg7[%c1_247, %c0_248, %c0_249] : memref<2x1x96xf32, #tpu.memory_space<vmem>>, vector<1x1x96xf32>
    %499 = vector.shape_cast %498 : vector<1x1x96xf32> to vector<1x96xf32>
    %500 = vector.broadcast %499 : vector<1x96xf32> to vector<8x96xf32>
    %501 = arith.addf %497, %500 : vector<8x96xf32>
    %502 = arith.truncf %501 : vector<8x96xf32> to vector<8x96xbf16>
    %503 = vector.extract_strided_slice %502 {offsets = [0, 0], sizes = [8, 16], strides = [1, 1]} : vector<8x96xbf16> to vector<8x16xbf16>
    %504 = vector.extract_strided_slice %502 {offsets = [0, 32], sizes = [8, 16], strides = [1, 1]} : vector<8x96xbf16> to vector<8x16xbf16>
    %505 = vector.extract_strided_slice %502 {offsets = [0, 64], sizes = [8, 16], strides = [1, 1]} : vector<8x96xbf16> to vector<8x16xbf16>
    %cst_250 = arith.constant dense<0.000000e+00> : vector<8x8xf32>
    %506 = tpu.matmul %503, %504, %cst_250 {dimension_numbers = #tpu.dot_dimension_numbers<[1], [1], [0], [0], [0, 0, 1, 0], [], []>} : vector<8x16xbf16>, vector<8x16xbf16>, vector<8x8xf32> -> vector<8x8xf32>
    %cst_251 = arith.constant 2.500000e-01 : f32
    %507 = vector.broadcast %cst_251 : f32 to vector<8x8xf32>
    %508 = arith.mulf %506, %507 : vector<8x8xf32>
    %509 = vector.broadcast %356 : vector<1x8xf32> to vector<8x8xf32>
    %510 = arith.addf %508, %509 : vector<8x8xf32>
    %cst_252 = arith.constant dense<0xFF800000> : vector<8xf32>
    %511 = vector.multi_reduction <maximumf>, %510, %cst_252 [1] : vector<8x8xf32> to vector<8xf32>
    %512 = vector.shape_cast %511 : vector<8xf32> to vector<8x1xf32>
    %513 = vector.broadcast %512 : vector<8x1xf32> to vector<8x8xf32>
    %514 = arith.subf %510, %513 : vector<8x8xf32>
    %515 = math.exp %514 : vector<8x8xf32>
    %cst_253 = arith.constant dense<0.000000e+00> : vector<8xf32>
    %516 = vector.multi_reduction <add>, %515, %cst_253 [1] : vector<8x8xf32> to vector<8xf32>
    %517 = vector.shape_cast %516 : vector<8xf32> to vector<8x1xf32>
    %518 = tpu.reciprocal %517 {approx = true} : vector<8x1xf32> -> vector<8x1xf32>
    %519 = vector.broadcast %518 : vector<8x1xf32> to vector<8x8xf32>
    %520 = arith.mulf %515, %519 : vector<8x8xf32>
    %521 = arith.truncf %520 : vector<8x8xf32> to vector<8x8xbf16>
    %cst_254 = arith.constant dense<0.000000e+00> : vector<8x16xf32>
    %522 = tpu.matmul %521, %505, %cst_254 {dimension_numbers = #tpu.dot_dimension_numbers<[1], [0], [0], [1], [0, 0, 1, 1], [], []>} : vector<8x8xbf16>, vector<8x16xbf16>, vector<8x16xf32> -> vector<8x16xf32>
    %523 = vector.extract_strided_slice %502 {offsets = [0, 16], sizes = [8, 16], strides = [1, 1]} : vector<8x96xbf16> to vector<8x16xbf16>
    %524 = vector.extract_strided_slice %502 {offsets = [0, 48], sizes = [8, 16], strides = [1, 1]} : vector<8x96xbf16> to vector<8x16xbf16>
    %525 = vector.extract_strided_slice %502 {offsets = [0, 80], sizes = [8, 16], strides = [1, 1]} : vector<8x96xbf16> to vector<8x16xbf16>
    %cst_255 = arith.constant dense<0.000000e+00> : vector<8x8xf32>
    %526 = tpu.matmul %523, %524, %cst_255 {dimension_numbers = #tpu.dot_dimension_numbers<[1], [1], [0], [0], [0, 0, 1, 0], [], []>} : vector<8x16xbf16>, vector<8x16xbf16>, vector<8x8xf32> -> vector<8x8xf32>
    %cst_256 = arith.constant 2.500000e-01 : f32
    %527 = vector.broadcast %cst_256 : f32 to vector<8x8xf32>
    %528 = arith.mulf %526, %527 : vector<8x8xf32>
    %529 = vector.broadcast %356 : vector<1x8xf32> to vector<8x8xf32>
    %530 = arith.addf %528, %529 : vector<8x8xf32>
    %cst_257 = arith.constant dense<0xFF800000> : vector<8xf32>
    %531 = vector.multi_reduction <maximumf>, %530, %cst_257 [1] : vector<8x8xf32> to vector<8xf32>
    %532 = vector.shape_cast %531 : vector<8xf32> to vector<8x1xf32>
    %533 = vector.broadcast %532 : vector<8x1xf32> to vector<8x8xf32>
    %534 = arith.subf %530, %533 : vector<8x8xf32>
    %535 = math.exp %534 : vector<8x8xf32>
    %cst_258 = arith.constant dense<0.000000e+00> : vector<8xf32>
    %536 = vector.multi_reduction <add>, %535, %cst_258 [1] : vector<8x8xf32> to vector<8xf32>
    %537 = vector.shape_cast %536 : vector<8xf32> to vector<8x1xf32>
    %538 = tpu.reciprocal %537 {approx = true} : vector<8x1xf32> -> vector<8x1xf32>
    %539 = vector.broadcast %538 : vector<8x1xf32> to vector<8x8xf32>
    %540 = arith.mulf %535, %539 : vector<8x8xf32>
    %541 = arith.truncf %540 : vector<8x8xf32> to vector<8x8xbf16>
    %cst_259 = arith.constant dense<0.000000e+00> : vector<8x16xf32>
    %542 = tpu.matmul %541, %525, %cst_259 {dimension_numbers = #tpu.dot_dimension_numbers<[1], [0], [0], [1], [0, 0, 1, 1], [], []>} : vector<8x8xbf16>, vector<8x16xbf16>, vector<8x16xf32> -> vector<8x16xf32>
    %543 = tpu.concatenate %522, %542 in 1 : vector<8x16xf32>, vector<8x16xf32> -> vector<8x32xf32>
    %544 = arith.truncf %543 : vector<8x32xf32> to vector<8x32xbf16>
    %c1_260 = arith.constant 1 : index
    %c0_261 = arith.constant 0 : index
    %c0_262 = arith.constant 0 : index
    %545 = vector.load %arg8[%c1_260, %c0_261, %c0_262] : memref<2x32x32xbf16, #tpu.memory_space<vmem>>, vector<1x32x32xbf16>
    %546 = vector.shape_cast %545 : vector<1x32x32xbf16> to vector<32x32xbf16>
    %cst_263 = arith.constant dense<0.000000e+00> : vector<8x32xf32>
    %547 = tpu.matmul %544, %546, %cst_263 {dimension_numbers = #tpu.dot_dimension_numbers<[1], [0], [0], [1], [0, 0, 1, 1], [], []>} : vector<8x32xbf16>, vector<32x32xbf16>, vector<8x32xf32> -> vector<8x32xf32>
    %c1_264 = arith.constant 1 : index
    %c0_265 = arith.constant 0 : index
    %c0_266 = arith.constant 0 : index
    %548 = vector.load %arg9[%c1_264, %c0_265, %c0_266] : memref<2x1x32xf32, #tpu.memory_space<vmem>>, vector<1x1x32xf32>
    %549 = vector.shape_cast %548 : vector<1x1x32xf32> to vector<1x32xf32>
    %550 = vector.broadcast %549 : vector<1x32xf32> to vector<8x32xf32>
    %551 = arith.addf %547, %550 : vector<8x32xf32>
    %552 = arith.addf %551, %493 : vector<8x32xf32>
    %c1_267 = arith.constant 1 : index
    %c0_268 = arith.constant 0 : index
    %c0_269 = arith.constant 0 : index
    %553 = vector.load %arg10[%c1_267, %c0_268, %c0_269] : memref<2x1x32xf32, #tpu.memory_space<vmem>>, vector<1x1x32xf32>
    %554 = vector.shape_cast %553 : vector<1x1x32xf32> to vector<1x32xf32>
    %c1_270 = arith.constant 1 : index
    %c0_271 = arith.constant 0 : index
    %c0_272 = arith.constant 0 : index
    %555 = vector.load %arg11[%c1_270, %c0_271, %c0_272] : memref<2x1x32xf32, #tpu.memory_space<vmem>>, vector<1x1x32xf32>
    %556 = vector.shape_cast %555 : vector<1x1x32xf32> to vector<1x32xf32>
    %cst_273 = arith.constant dense<0.000000e+00> : vector<8xf32>
    %557 = vector.multi_reduction <add>, %552, %cst_273 [1] : vector<8x32xf32> to vector<8xf32>
    %558 = vector.shape_cast %557 : vector<8xf32> to vector<8x1xf32>
    %cst_274 = arith.constant 3.200000e+01 : f32
    %559 = vector.broadcast %cst_274 : f32 to vector<8x1xf32>
    %560 = arith.divf %558, %559 : vector<8x1xf32>
    %561 = vector.broadcast %560 : vector<8x1xf32> to vector<8x32xf32>
    %562 = arith.subf %552, %561 : vector<8x32xf32>
    %563 = arith.mulf %562, %562 : vector<8x32xf32>
    %cst_275 = arith.constant dense<0.000000e+00> : vector<8xf32>
    %564 = vector.multi_reduction <add>, %563, %cst_275 [1] : vector<8x32xf32> to vector<8xf32>
    %565 = vector.shape_cast %564 : vector<8xf32> to vector<8x1xf32>
    %cst_276 = arith.constant 3.200000e+01 : f32
    %566 = vector.broadcast %cst_276 : f32 to vector<8x1xf32>
    %567 = arith.divf %565, %566 : vector<8x1xf32>
    %cst_277 = arith.constant 9.99999996E-13 : f32
    %568 = vector.broadcast %cst_277 : f32 to vector<8x1xf32>
    %569 = arith.addf %567, %568 : vector<8x1xf32>
    %570 = math.rsqrt %569 : vector<8x1xf32>
    %571 = vector.broadcast %570 : vector<8x1xf32> to vector<8x32xf32>
    %572 = arith.mulf %562, %571 : vector<8x32xf32>
    %573 = vector.broadcast %554 : vector<1x32xf32> to vector<8x32xf32>
    %574 = arith.mulf %572, %573 : vector<8x32xf32>
    %575 = vector.broadcast %556 : vector<1x32xf32> to vector<8x32xf32>
    %576 = arith.addf %574, %575 : vector<8x32xf32>
    %577 = arith.truncf %576 : vector<8x32xf32> to vector<8x32xbf16>
    %c1_278 = arith.constant 1 : index
    %c0_279 = arith.constant 0 : index
    %c0_280 = arith.constant 0 : index
    %578 = vector.load %arg12[%c1_278, %c0_279, %c0_280] : memref<2x32x64xbf16, #tpu.memory_space<vmem>>, vector<1x32x64xbf16>
    %579 = vector.shape_cast %578 : vector<1x32x64xbf16> to vector<32x64xbf16>
    %cst_281 = arith.constant dense<0.000000e+00> : vector<8x64xf32>
    %580 = tpu.matmul %577, %579, %cst_281 {dimension_numbers = #tpu.dot_dimension_numbers<[1], [0], [0], [1], [0, 0, 1, 1], [], []>} : vector<8x32xbf16>, vector<32x64xbf16>, vector<8x64xf32> -> vector<8x64xf32>
    %c1_282 = arith.constant 1 : index
    %c0_283 = arith.constant 0 : index
    %c0_284 = arith.constant 0 : index
    %581 = vector.load %arg13[%c1_282, %c0_283, %c0_284] : memref<2x1x64xf32, #tpu.memory_space<vmem>>, vector<1x1x64xf32>
    %582 = vector.shape_cast %581 : vector<1x1x64xf32> to vector<1x64xf32>
    %583 = vector.broadcast %582 : vector<1x64xf32> to vector<8x64xf32>
    %584 = arith.addf %580, %583 : vector<8x64xf32>
    %585 = arith.mulf %584, %584 : vector<8x64xf32>
    %586 = arith.mulf %584, %585 : vector<8x64xf32>
    %cst_285 = arith.constant 4.471500e-02 : f32
    %587 = vector.broadcast %cst_285 : f32 to vector<8x64xf32>
    %588 = arith.mulf %587, %586 : vector<8x64xf32>
    %589 = arith.addf %584, %588 : vector<8x64xf32>
    %cst_286 = arith.constant 0.797884583 : f32
    %590 = vector.broadcast %cst_286 : f32 to vector<8x64xf32>
    %591 = arith.mulf %590, %589 : vector<8x64xf32>
    %592 = math.tanh %591 : vector<8x64xf32>
    %cst_287 = arith.constant 1.000000e+00 : f32
    %593 = vector.broadcast %cst_287 : f32 to vector<8x64xf32>
    %594 = arith.addf %593, %592 : vector<8x64xf32>
    %cst_288 = arith.constant 5.000000e-01 : f32
    %595 = vector.broadcast %cst_288 : f32 to vector<8x64xf32>
    %596 = arith.mulf %595, %594 : vector<8x64xf32>
    %597 = arith.mulf %584, %596 : vector<8x64xf32>
    %598 = arith.truncf %597 : vector<8x64xf32> to vector<8x64xbf16>
    %c1_289 = arith.constant 1 : index
    %c0_290 = arith.constant 0 : index
    %c0_291 = arith.constant 0 : index
    %599 = vector.load %arg14[%c1_289, %c0_290, %c0_291] : memref<2x64x32xbf16, #tpu.memory_space<vmem>>, vector<1x64x32xbf16>
    %600 = vector.shape_cast %599 : vector<1x64x32xbf16> to vector<64x32xbf16>
    %cst_292 = arith.constant dense<0.000000e+00> : vector<8x32xf32>
    %601 = tpu.matmul %598, %600, %cst_292 {dimension_numbers = #tpu.dot_dimension_numbers<[1], [0], [0], [1], [0, 0, 1, 1], [], []>} : vector<8x64xbf16>, vector<64x32xbf16>, vector<8x32xf32> -> vector<8x32xf32>
    %c1_293 = arith.constant 1 : index
    %c0_294 = arith.constant 0 : index
    %c0_295 = arith.constant 0 : index
    %602 = vector.load %arg15[%c1_293, %c0_294, %c0_295] : memref<2x1x32xf32, #tpu.memory_space<vmem>>, vector<1x1x32xf32>
    %603 = vector.shape_cast %602 : vector<1x1x32xf32> to vector<1x32xf32>
    %604 = vector.broadcast %603 : vector<1x32xf32> to vector<8x32xf32>
    %605 = arith.addf %601, %604 : vector<8x32xf32>
    %606 = arith.addf %605, %576 : vector<8x32xf32>
    %c1_296 = arith.constant 1 : index
    %c0_297 = arith.constant 0 : index
    %c0_298 = arith.constant 0 : index
    %607 = vector.load %arg16[%c1_296, %c0_297, %c0_298] : memref<2x1x32xf32, #tpu.memory_space<vmem>>, vector<1x1x32xf32>
    %608 = vector.shape_cast %607 : vector<1x1x32xf32> to vector<1x32xf32>
    %c1_299 = arith.constant 1 : index
    %c0_300 = arith.constant 0 : index
    %c0_301 = arith.constant 0 : index
    %609 = vector.load %arg17[%c1_299, %c0_300, %c0_301] : memref<2x1x32xf32, #tpu.memory_space<vmem>>, vector<1x1x32xf32>
    %610 = vector.shape_cast %609 : vector<1x1x32xf32> to vector<1x32xf32>
    %cst_302 = arith.constant dense<0.000000e+00> : vector<8xf32>
    %611 = vector.multi_reduction <add>, %606, %cst_302 [1] : vector<8x32xf32> to vector<8xf32>
    %612 = vector.shape_cast %611 : vector<8xf32> to vector<8x1xf32>
    %cst_303 = arith.constant 3.200000e+01 : f32
    %613 = vector.broadcast %cst_303 : f32 to vector<8x1xf32>
    %614 = arith.divf %612, %613 : vector<8x1xf32>
    %615 = vector.broadcast %614 : vector<8x1xf32> to vector<8x32xf32>
    %616 = arith.subf %606, %615 : vector<8x32xf32>
    %617 = arith.mulf %616, %616 : vector<8x32xf32>
    %cst_304 = arith.constant dense<0.000000e+00> : vector<8xf32>
    %618 = vector.multi_reduction <add>, %617, %cst_304 [1] : vector<8x32xf32> to vector<8xf32>
    %619 = vector.shape_cast %618 : vector<8xf32> to vector<8x1xf32>
    %cst_305 = arith.constant 3.200000e+01 : f32
    %620 = vector.broadcast %cst_305 : f32 to vector<8x1xf32>
    %621 = arith.divf %619, %620 : vector<8x1xf32>
    %cst_306 = arith.constant 9.99999996E-13 : f32
    %622 = vector.broadcast %cst_306 : f32 to vector<8x1xf32>
    %623 = arith.addf %621, %622 : vector<8x1xf32>
    %624 = math.rsqrt %623 : vector<8x1xf32>
    %625 = vector.broadcast %624 : vector<8x1xf32> to vector<8x32xf32>
    %626 = arith.mulf %616, %625 : vector<8x32xf32>
    %627 = vector.broadcast %608 : vector<1x32xf32> to vector<8x32xf32>
    %628 = arith.mulf %626, %627 : vector<8x32xf32>
    %629 = vector.broadcast %610 : vector<1x32xf32> to vector<8x32xf32>
    %630 = arith.addf %628, %629 : vector<8x32xf32>
    %631 = vector.extract_strided_slice %630 {offsets = [0, 0], sizes = [1, 32], strides = [1, 1]} : vector<8x32xf32> to vector<1x32xf32>
    %632 = arith.truncf %631 : vector<1x32xf32> to vector<1x32xbf16>
    %c0_307 = arith.constant 0 : index
    %c0_308 = arith.constant 0 : index
    %633 = vector.load %arg18[%c0_307, %c0_308] : memref<32x128xbf16, #tpu.memory_space<vmem>>, vector<32x128xbf16>
    %cst_309 = arith.constant dense<0.000000e+00> : vector<1x128xf32>
    %634 = tpu.matmul %632, %633, %cst_309 {dimension_numbers = #tpu.dot_dimension_numbers<[1], [0], [0], [1], [0, 0, 1, 1], [], []>} : vector<1x32xbf16>, vector<32x128xbf16>, vector<1x128xf32> -> vector<1x128xf32>
    %c0_310 = arith.constant 0 : index
    %c0_311 = arith.constant 0 : index
    %635 = vector.load %arg19[%c0_310, %c0_311] : memref<1x128xf32, #tpu.memory_space<vmem>>, vector<1x128xf32>
    %636 = arith.addf %634, %635 : vector<1x128xf32>
    %637 = math.tanh %636 : vector<1x128xf32>
    %638 = arith.truncf %637 : vector<1x128xf32> to vector<1x128xbf16>
    %c0_312 = arith.constant 0 : index
    %c0_313 = arith.constant 0 : index
    %639 = vector.load %arg20[%c0_312, %c0_313] : memref<128x128xbf16, #tpu.memory_space<vmem>>, vector<128x128xbf16>
    %cst_314 = arith.constant dense<0.000000e+00> : vector<1x128xf32>
    %640 = tpu.matmul %638, %639, %cst_314 {dimension_numbers = #tpu.dot_dimension_numbers<[1], [0], [0], [1], [0, 0, 1, 1], [], []>} : vector<1x128xbf16>, vector<128x128xbf16>, vector<1x128xf32> -> vector<1x128xf32>
    %c0_315 = arith.constant 0 : index
    %c0_316 = arith.constant 0 : index
    %641 = vector.load %arg21[%c0_315, %c0_316] : memref<1x128xf32, #tpu.memory_space<vmem>>, vector<1x128xf32>
    %642 = arith.addf %640, %641 : vector<1x128xf32>
    %643 = tpu.concatenate %316, %637 in 0 : vector<1x128xf32>, vector<1x128xf32> -> vector<2x128xf32>
    %c0_317 = arith.constant 0 : index
    %c0_318 = arith.constant 0 : index
    %644 = vector.load %arg22[%c0_317, %c0_318] : memref<2x128xf32, #tpu.memory_space<vmem>>, vector<2x128xf32>
    tpu.vector_store %arg22[%c0_317, %c0_318], %643 {strides = array<i32>} : memref<2x128xf32, #tpu.memory_space<vmem>>, vector<2x128xf32>,
    %645 = tpu.concatenate %321, %642 in 0 : vector<1x128xf32>, vector<1x128xf32> -> vector<2x128xf32>
    %c0_319 = arith.constant 0 : index
    %c0_320 = arith.constant 0 : index
    %646 = vector.load %arg23[%c0_319, %c0_320] : memref<2x128xf32, #tpu.memory_space<vmem>>, vector<2x128xf32>
    tpu.vector_store %arg23[%c0_319, %c0_320], %645 {strides = array<i32>} : memref<2x128xf32, #tpu.memory_space<vmem>>, vector<2x128xf32>,
    return
  }
}

</mosaic_0001>

<bundles_post_ra>
// kernel: predict_sentiment.1
= control target key start
LH: loop header
LB: loop body
LE: loop exit
PB: predicated region body
PF: predicated region fallthrough
CT: control target
= control target key end

     0   :  { %s4564_s0 = inlined_call_operand.vmem [shape: s32[2,8,1], index: 0, kind: input, shape index: {}]   ;;  %s4565_s1 = inlined_call_operand.vmem [shape: f32[2,1,8], index: 1, kind: input, shape index: {}]   ;;  %s4566_s2 = inlined_call_operand.hbm [shape: f32[128,32], index: 2, kind: input, shape index: {}]   ;;  %s4567_s3 = inlined_call_operand.vmem [shape: f32[8,32], index: 3, kind: input, shape index: {}]   ;;  %s4568_s4 = inlined_call_operand.vmem [shape: f32[1,32], index: 4, kind: input, shape index: {}]   ;;  %s4569_s5 = inlined_call_operand.vmem [shape: f32[1,32], index: 5, kind: input, shape index: {}]   ;;  %s4570_s6 = inlined_call_operand.hbm [shape: bf16[2,32,96], index: 6, kind: input, shape index: {}]   ;;  %s4571_s7 = inlined_call_operand.vmem [shape: f32[2,1,96], index: 7, kind: input, shape index: {}]   ;;  %s4572_s8 = inlined_call_operand.hbm [shape: bf16[2,32,32], index: 8, kind: input, shape index: {}]   ;;  %s4573_s9 = inlined_call_operand.vmem [shape: f32[2,1,32], index: 9, kind: input, shape index: {}, may-alias: {9,11,15,17}]   ;;  %s4574_s10 = inlined_call_operand.vmem [shape: f32[2,1,32], index: 10, kind: input, shape index: {}, may-alias: {10,16}]   ;;  %s4575_s11 = inlined_call_operand.vmem [shape: f32[2,1,32], index: 11, kind: input, shape index: {}, may-alias: {9,11,15,17}]   ;;  %s4576_s12 = inlined_call_operand.vmem [shape: bf16[2,32,64], index: 12, kind: input, shape index: {}]   ;;  %s4577_s13 = inlined_call_operand.vmem [shape: f32[2,1,64], index: 13, kind: input, shape index: {}]   ;;  %s4578_s14 = inlined_call_operand.hbm [shape: bf16[2,64,32], index: 14, kind: input, shape index: {}]   ;;  %s4579_s15 = inlined_call_operand.vmem [shape: f32[2,1,32], index: 15, kind: input, shape index: {}, may-alias: {9,11,15,17}]   ;;  %s4580_s16 = inlined_call_operand.vmem [shape: f32[2,1,32], index: 16, kind: input, shape index: {}, may-alias: {10,16}]   ;;  %s4581_s17 = inlined_call_operand.vmem [shape: f32[2,1,32], index: 17, kind: input, shape index: {}, may-alias: {9,11,15,17}]   ;;  %s4582_s18 = inlined_call_operand.vmem [shape: bf16[32,128], index: 18, kind: input, shape index: {}]   ;;  %s4583_s19 = inlined_call_operand.vmem [shape: f32[1,128], index: 19, kind: input, shape index: {}, may-alias: {19,21}]   ;;  %s4584_s20 = inlined_call_operand.vmem [shape: bf16[128,128], index: 20, kind: input, shape index: {}]   ;;  %s4585_s21 = inlined_call_operand.vmem [shape: f32[1,128], index: 21, kind: input, shape index: {}, may-alias: {19,21}]   ;;  %s4586_s22 = inlined_call_operand.hbm [shape: f32[2,128], index: 22, kind: output, shape index: {0}]   ;;  %s4587_s23 = inlined_call_operand.hbm [shape: f32[2,128], index: 23, kind: output, shape index: {1}]  }
   0x1   :  { %4598 = sst [smem:[#allocation18_spill]] %s4564_s0 }
   0x2   :  { %4599 = sst [smem:[#allocation19_spill]] %s4565_s1 }
   0x3   :  { %4600 = sst [smem:[#allocation20_spill]] %s4566_s2 }
   0x4   :  { %4601 = sst [smem:[#allocation21_spill]] %s4567_s3 }
   0x5   :  { %4602 = sst [smem:[#allocation22_spill]] %s4568_s4 }
   0x6   :  { %4603 = sst [smem:[#allocation23_spill]] %s4569_s5 }
   0x7   :  { %4604 = sst [smem:[#allocation24_spill]] %s4570_s6 }
   0x8   :  { %4605 = sst [smem:[#allocation25_spill]] %s4571_s7 }
   0x9   :  { %4606 = sst [smem:[#allocation26_spill]] %s4585_s21 }
   0xa   :  { %4607 = sst [smem:[#allocation27_spill]] %s4587_s23 }
   0xb   :  { %29 = vsyncpa [#allocation3], 0 }
   0xc   :  { %30 = vsyncpa [#allocation6], 0 }
   0xd   :  { %31 = vsyncpa [#allocation9], 0 }
   0xe   :  { %32 = vsyncpa [#allocation4], 0 }
   0xf   :  { %33 = vsyncpa [#allocation12], 0  ;;  %s3649_s4 = smov [#allocation5]   ;;  %s4608_s5 = sld [smem:[#allocation24_spill]] }
  0x10   :  { %s61_s30 = sshll.u32 %s3649_s4, 4  ;;  %s62_s30 = int_to_ptr.vmem [resolvable:$true] %s61_s30 }
  0x15   :  { %s3507_s1 = scalar_lea.hbm %s4608_s5, 512 }
  0x16   :  { %p3508_p0 = scmp.ne.s32.totalorder %s4608_s5, %s3507_s1  ;;  %p3511_p1 = scmp.lt.u32.totalorder %s3507_s1, %s4608_s5 }
  0x18   :  { %p3513_p2 = pnand %p3511_p1, %p3508_p0 }
  0x1a   :  { %3516 = shalt.err (!%p3513_p2)
}
  0x1b   :  { %s3517_s7 = scalar_lea.vmem %s62_s30, 512  ;;  %p3522_p4 = scmp.lt.s32.totalorder %s62_s30, %s62_s30 }
  0x1c   :  { %p3518_p3 = scmp.ne.s32.totalorder %s62_s30, %s3517_s7  ;;  %p3523_p5 = scmp.lt.s32.totalorder %s3517_s7, %s3517_s7 }
  0x1e   :  { %p3524_p6 = por %p3523_p5, %p3522_p4 }
  0x20   :  { %p3525_p7 = pnand %p3524_p6, %p3518_p3 }
  0x22   :  { %3528 = shalt.err (!%p3525_p7)
}
  0x23   :  { %s4594_s28 = smov 64   ;;  %s4596_s29 = smov 4  }
  0x24   :  { %67 = dma.hbm_to_vmem [thread:$0]  %s4608_s5, 512, %s62_s30, [#allocation6], %s4594_s28, %s4594_s28, %s4596_s29  }
  0x25   :  { %s3652_s4 = smov [#allocation2]   ;;  %s4609_s26 = sld [smem:[#allocation20_spill]] }
  0x26   :  { %s43_s24 = sshll.u32 %s3652_s4, 4  ;;  %s44_s24 = int_to_ptr.vmem [resolvable:$true] %s43_s24 }
  0x2b   :  { %s3529_s2 = scalar_lea.hbm %s4609_s26, 2048 }
  0x2c   :  { %p3530_p8 = scmp.ne.s32.totalorder %s4609_s26, %s3529_s2  ;;  %p3533_p9 = scmp.lt.u32.totalorder %s3529_s2, %s4609_s26 }
  0x2e   :  { %p3535_p10 = pnand %p3533_p9, %p3530_p8 }
  0x30   :  { %3538 = shalt.err (!%p3535_p10)
}
  0x31   :  { %s3539_s21 = scalar_lea.vmem %s44_s24, 2048  ;;  %p3544_p12 = scmp.lt.s32.totalorder %s44_s24, %s44_s24 }
  0x32   :  { %p3540_p11 = scmp.ne.s32.totalorder %s44_s24, %s3539_s21  ;;  %p3545_p13 = scmp.lt.s32.totalorder %s3539_s21, %s3539_s21 }
  0x34   :  { %p3546_p0 = por %p3545_p13, %p3544_p12 }
  0x36   :  { %p3547_p1 = pnand %p3546_p0, %p3540_p11 }
  0x38   :  { %3550 = shalt.err (!%p3547_p1)
}
  0x39   :  { %s3653_s30 = smov 128   ;;  %s3654_s5 = smov 8  }
  0x3a   :  { %49 = dma.hbm_to_vmem [thread:$0]  %s4609_s26, 2048, %s44_s24, [#allocation3], %s3653_s30, %s3653_s30, %s3654_s5  }
  0x3b   :  { %s3655_s4 = smov [#allocation7]   ;;  %s3656_s1 = smov [#allocation8]  }
  0x3c   :  { %s75_s25 = sshll.u32 %s3655_s4, 4  ;;  %s97_s23 = sshll.u32 %s3656_s1, 4  ;;  %s76_s25 = int_to_ptr.vmem [resolvable:$true] %s75_s25  ;;  %s3816_s23 = int_to_ptr.vmem [resolvable:$true] %s97_s23 }
  0x3d   :  { %s3551_s21 = scalar_lea.hbm %s4572_s8, 512 }
  0x3e   :  { %p3552_p2 = scmp.ne.s32.totalorder %s4572_s8, %s3551_s21  ;;  %p3555_p3 = scmp.lt.u32.totalorder %s3551_s21, %s4572_s8 }
  0x40   :  { %p3557_p4 = pnand %p3555_p3, %p3552_p2 }
  0x42   :  { %3560 = shalt.err (!%p3557_p4)
}
  0x43   :  { %s3561_s24 = scalar_lea.vmem %s76_s25, 512  ;;  %p3566_p6 = scmp.lt.s32.totalorder %s76_s25, %s76_s25 }
  0x44   :  { %p3562_p5 = scmp.ne.s32.totalorder %s76_s25, %s3561_s24  ;;  %p3567_p7 = scmp.lt.s32.totalorder %s3561_s24, %s3561_s24 }
  0x46   :  { %p3568_p8 = por %p3567_p7, %p3566_p6 }
  0x48   :  { %p3569_p9 = pnand %p3568_p8, %p3562_p5 }
  0x4a   :  { %3572 = shalt.err (!%p3569_p9)
}
  0x4b   :  { %s4610_s26 = smov 4   ;;  %s4611_s30 = smov 64  }
  0x4c   :  { %81 = dma.hbm_to_vmem [thread:$0]  %s4572_s8, 512, %s76_s25, [#allocation6], %s4611_s30, %s4611_s30, %s4610_s26  }
  0x4d   :  { %s3573_s28 = scalar_lea.hbm %s4578_s14, 1024 }
  0x4e   :  { %p3574_p10 = scmp.ne.s32.totalorder %s4578_s14, %s3573_s28  ;;  %p3577_p11 = scmp.lt.u32.totalorder %s3573_s28, %s4578_s14 }
  0x50   :  { %p3579_p12 = pnand %p3577_p11, %p3574_p10 }
  0x52   :  { %3582 = shalt.err (!%p3579_p12)
}
  0x53   :  { %s3583_s21 = scalar_lea.vmem %s3816_s23, 1024  ;;  %p3588_p0 = scmp.lt.s32.totalorder %s3816_s23, %s3816_s23 }
  0x54   :  { %p3584_p13 = scmp.ne.s32.totalorder %s3816_s23, %s3583_s21  ;;  %p3589_p1 = scmp.lt.s32.totalorder %s3583_s21, %s3583_s21 }
  0x56   :  { %p3590_p2 = por %p3589_p1, %p3588_p0 }
  0x58   :  { %p3591_p3 = pnand %p3590_p2, %p3584_p13 }
  0x5a   :  { %3594 = shalt.err (!%p3591_p3)
}
  0x5b   :  { %103 = dma.hbm_to_vmem [thread:$0]  %s4578_s14, 1024, %s3816_s23, [#allocation9], %s4611_s30, %s4611_s30, %s4610_s26  }
  0x5c   :  { %3639 = dma.done.wait [#allocation3], 2048  }
  0x5d   :  { %3640 = vsyncadd [#allocation3], 4294965248 }
  0x5e   :  { %3641 = dma.done.wait [#allocation6], 1024  }
  0x5f   :  { %3642 = vsyncadd [#allocation6], 4294966272 }
  0x60   :  { %3643 = dma.done.wait [#allocation9], 1024  }
  0x61   :  { %3644 = vsyncadd [#allocation9], 4294966272  ;;  %v3657_v0 = vmov 0   ;;  %v3658_v1 = vmov 0.0|0.0   ;;  %s4612_s24 = sld [smem:[#allocation18_spill]]  ;;  %v139_v3 = vld [vmem:[#allocation2] sm:$0xff]  ;;  %v131_v28 = vlaneseq }
  0x62   :  { %3412 = vset.pattern.permute.xlu0 %v3657_v0  ;;  %3344 = vmatprep.subr.bf16.mxu0 %v3658_v1  ;;  %v140_v4 = vld [vmem:[#allocation2 + $0x8] sm:$0xff]  ;;  %v141_v6 = vld [vmem:[#allocation2 + $0x10] sm:$0xff]  ;;  %v142_v7 = vld [vmem:[#allocation2 + $0x18] sm:$0xff]  ;;  %vm3659_vm0 = vmmov 0   ;;  %v3660_v8 = vmov 0.0   ;;  %v3661_v31 = vmov 1.0  }
  0x63   :  { %v3857_v5 = vpack.c.bf16 %v140_v4, %v139_v3  ;;  %3010 = vmatprep.mubr.msk.f32.mxu0 %vm3659_vm0, %v3660_v8  ;;  %3013 = vmatprep.subr.bf16.mxu1 %v3660_v8  ;;  %v3865_v9 = vpack.c.bf16 %v142_v7, %v141_v6  ;;  %v143_v10 = vld [vmem:[#allocation2 + $0x20] sm:$0xff]  ;;  %v144_v11 = vld [vmem:[#allocation2 + $0x28] sm:$0xff]  ;;  %v145_v12 = vld [vmem:[#allocation2 + $0x30] sm:$0xff]  ;;  %v3894_v29 = vand.u32 127, %v131_v28  ;;  %s4613_s26 = sld [smem:[#allocation21_spill]]  ;;  %vm228_vm2 = vcmask 261120  }
  0x64   :  { %3017 = vmatprep.mubr.msk.bf16.mxu1 %vm3659_vm0, %v3660_v8  ;;  %v146_v13 = vld [vmem:[#allocation2 + $0x38] sm:$0xff]  ;;  %v3869_v14 = vpack.c.bf16 %v144_v11, %v143_v10  ;;  %v147_v15 = vld [vmem:[#allocation2 + $0x40] sm:$0xff]  ;;  %v148_v16 = vld [vmem:[#allocation2 + $0x48] sm:$0xff]  ;;  %s4614_s0 = sld [smem:[#allocation22_spill]]  ;;  %s4615_s29 = sld [smem:[#allocation23_spill]]  ;;  %vm329_vm3 = vcmask 130048  }
  0x65   :  { %3346 = vmatpush3.bf16.msra.mxu0 %v3857_v5  ;;  %v3873_v17 = vpack.c.bf16 %v146_v13, %v145_v12  ;;  %v149_v18 = vld [vmem:[#allocation2 + $0x50] sm:$0xff]  ;;  %v150_v19 = vld [vmem:[#allocation2 + $0x58] sm:$0xff]  ;;  %v3877_v20 = vpack.c.bf16 %v148_v16, %v147_v15  ;;  %v151_v21 = vld [vmem:[#allocation2 + $0x60] sm:$0xff]  ;;  %s4616_s6 = sld [smem:[#allocation25_spill]]  ;;  %s3662_s21 = smov 96   ;;  %vm384_vm4 = vcmask 64512  }
  0x66   :  { %3347 = vmatprep.subr.bf16.mxu0 %v3658_v1  ;;  %v152_v22 = vld [vmem:[#allocation2 + $0x68] sm:$0xff]  ;;  %v3881_v23 = vpack.c.bf16 %v150_v19, %v149_v18  ;;  %v153_v24 = vld [vmem:[#allocation2 + $0x70] sm:$0xff]  ;;  %v154_v25 = vld [vmem:[#allocation2 + $0x78] sm:$0xff]  ;;  %s4617_s27 = sld [smem:[#allocation19_spill]]  ;;  %s3663_s7 = smov 80   ;;  %vm402_vm5 = vcmask 1043456  }
  0x67   :  { %v133_v2 = vld [vmem:[%s4612_s24] sm:$0xff]  ;;  %v3885_v26 = vpack.c.bf16 %v152_v22, %v151_v21  ;;  %v3889_v27 = vpack.c.bf16 %v154_v25, %v153_v24  ;;  %v3911_v43 = vld [vmem:[#allocation5 + $0x8] sm:$0xff]   ;;  %s3664_s14 = smov 112   ;;  %s3665_s23 = smov 48   ;;  %vm776_vm6 = vcmask 523264   ;;  %vm2693_vm8 = vcmask 1040384  }
  0x68   :  { %135 = vperm.xlu0 %3412, %v133_v2   ;;  %v3908_v42 = vld [vmem:[#allocation5] sm:$0xff]  }
  0x69   :  { %3349 = vmatpush3.bf16.msra.mxu0 %v3865_v9  ;;  %v3903_v32 = vld [vmem:[%s4613_s26] sm:$0xff]  ;;  %3014 = vmatpush3.bf16.msra.mxu1 %v3908_v42  ;;  %s3666_s26 = smov 16  }
  0x6a   :  { %3350 = vmatprep.subr.bf16.mxu0 %v3658_v1  ;;  %3015 = vmatprep.subr.bf16.mxu1 %v3660_v8  ;;  %v3919_v48 = vld [vmem:[%s4614_s0] ss:$0 sm:$0xff] }
  0x6b   :  { %v3924_v50 = vld [vmem:[%s4615_s29] ss:$0 sm:$0xff] }
  0x6c   :  { %v3938_v54 = vld [vmem:[%s4616_s6] ss:$0 sm:$0xff] }
  0x6d   :  { %3352 = vmatpush3.bf16.msra.mxu0 %v3869_v14  ;;  %3016 = vmatpush3.bf16.msra.mxu1 %v3911_v43  ;;  %v3954_v0 = vld [vmem:[%s4617_s27] ss:$0 sm:$0xff] }
  0x6e   :  { %3353 = vmatprep.subr.bf16.mxu0 %v3658_v1  ;;  %3021 = vmatprep.subr.bf16.mxu1 %v3660_v8 }
  0x71   :  { %3355 = vmatpush3.bf16.msra.mxu0 %v3873_v17 }
  0x72   :  { %3356 = vmatprep.subr.bf16.mxu0 %v3658_v1 }
  0x75   :  { %3358 = vmatpush3.bf16.msra.mxu0 %v3877_v20 }
  0x76   :  { %3359 = vmatprep.subr.bf16.mxu0 %v3658_v1 }
  0x79   :  { %3361 = vmatpush3.bf16.msra.mxu0 %v3881_v23 }
  0x7a   :  { %3362 = vmatprep.subr.bf16.mxu0 %v3658_v1 }
  0x7d   :  { %3364 = vmatpush3.bf16.msra.mxu0 %v3885_v26 }
  0x7e   :  { %3365 = vmatprep.subr.bf16.mxu0 %v3658_v1 }
  0x81   :  { %3367 = vmatpush3.bf16.msra.mxu0 %v3889_v27 }
  0x82   :  { %3039 = vmatprep.subr.bf16.mxu0 %v3660_v8 }
  0xe7   :  { %v136_v30 = vpop.permute.xlu0 %135 }
  0xe8   :  { %vm137_vm1 = vcmp.eq.s32.totalorder %v3894_v29, %v136_v30 }
  0xe9   :  { %3011 = vmatmul.mubr.msk.f32.vlgmr.msra.gmra.mrb[0].mxu0 %vm137_vm1, %v3661_v31 }
  0xea   :  { %3041 = vmatprep.mubr.msk.bf16.mxu0 %vm3659_vm0, %v3660_v8 }
 0x1bc   :  { %v222_v33 = vpop.f32.mrb[0].mxu0 }
 0x1bd   :  { %v223_v34 = vadd.f32 %v222_v33, %v3903_v32  ;;  %v3012_v35 = vpop.f32.mrb[1].mxu0 }
 0x1bf   :  { %v229_v36 = vsel %vm228_vm2, %v223_v34, 0.0 }
 0x1c0   :  { %230 = vadd.xlane.f32.xlu0 %v229_v36 }
 0x24d   :  { %v231_v37 = vpop.xlane.xlu0 %230 }
 0x24e   :  { %v233_v38 = vmul.f32 0.03125, %v231_v37 }
 0x250   :  { %v234_v39 = vsub.f32 %v223_v34, %v233_v38 }
 0x252   :  { %v235_v40 = vmul.f32 %v234_v39, %v234_v39 }
 0x254   :  { %v236_v41 = vsel %vm228_vm2, %v235_v40, 0.0 }
 0x255   :  { %237 = vadd.xlane.f32.xlu1 %v236_v41 }
 0x2e2   :  { %v238_v44 = vpop.xlane.xlu1 %237 }
 0x2e3   :  { %v239_v45 = vmul.f32 0.03125, %v238_v44 }
 0x2e5   :  { %v240_v46 = vadd.f32 1e-12, %v239_v45 }
 0x2e7   :  { %3443 = vrsqrt.f32 %v240_v46 }
 0x2f1   :  { %v3444_v47 = vpop.eup %3443 }
 0x2f2   :  { %v242_v49 = vmul.f32 %v3444_v47, %v234_v39 }
 0x2f4   :  { %v249_v51 = vmul.f32 %v3919_v48, %v242_v49 }
 0x2f6   :  { %v3928_v52 = vadd.f32 %v3924_v50, %v249_v51 }
 0x2f8   :  { %v258_v53 = vpack.c.bf16 %v3928_v52, %v3928_v52 }
 0x2fa   :  { %3018 = vmatmul.mubr.msk.bf16.vlgmr.msra.gmra.mrb[0].mxu1 %vm228_vm2, %v258_v53 }
 0x2fb   :  { %3023 = vmatprep.mubr.msk.bf16.mxu1 %vm3659_vm0, %v3660_v8 }
 0x3cd   :  { %v319_v55 = vpop.f32.mrb[0].mxu1 }
 0x3ce   :  { %v320_v56 = vadd.f32 %v3938_v54, %v319_v55  ;;  %v3019_v57 = vpop.f32.mrb[1].mxu1 }
 0x3cf   :  { %v322_v58 = vpop.f32.mrb[2].mxu1 }
 0x3d0   :  { %v3941_v59 = vpack.c.bf16 %v320_v56, %v320_v56  ;;  %v3020_v60 = vpop.f32.mrb[3].mxu1 }
 0x3d2   :  { %327 = vrot.lane.b32.xlu1 %v3941_v59, %s3662_s21 }
 0x444   :  { %v328_v61 = vpop.permute.xlu1 %327 }
 0x445   :  { %v334_v62 = vsel %vm329_vm3, %v328_v61, 0 }
 0x446   :  { %3022 = vmatpush3.bf16.xpose.msra.mxu1 %v334_v62 }
 0x447   :  { %3027 = vmatprep.subr.bf16.mxu1 %v3660_v8 }
 0x44d   :  { %3024 = vmatmul.mubr.msk.bf16.vlgmr.msra.gmra.mrb[4].mxu1 %vm329_vm3, %v3941_v59 }
 0x44e   :  { %3029 = vmatprep.mubr.msk.bf16.mxu1 %vm3659_vm0, %v3660_v8 }
 0x520   :  { %v370_v63 = vpop.f32.mrb[4].mxu1 }
 0x521   :  { %v376_v2 = vmul.f32 0.25, %v370_v63  ;;  %v3025_v3 = vpop.f32.mrb[5].mxu1  ;;  %v3989_v63 = vld [vmem:[#allocation7 + $0x8] sm:$0xff]  }
 0x522   :  { %v373_v4 = vpop.f32.mrb[6].mxu1 }
 0x523   :  { %v3026_v6 = vpop.f32.mrb[7].mxu1  ;;  %v383_v7 = vadd.f32 %v3954_v0, %v376_v2 }
 0x525   :  { %v385_v10 = vsel %vm384_vm4, %v383_v7, -inf }
 0x526   :  { %386 = vmax.xlane.f32.xlu1 %v385_v10 }
 0x537   :  { %448 = vrot.lane.b32.xlu1 %v3941_v59, %s3663_s7 }
 0x5b3   :  { %v387_v11 = vpop.xlane.xlu1 %386 }
 0x5b4   :  { %v388_v12 = vsub.f32 %v383_v7, %v387_v11 }
 0x5b6   :  { %v389_v13 = vmul.f32 1.442695, %v388_v12  ;;  %v4001_v12 = vld [vmem:[%s4573_s9] ss:$0 sm:$0xff] }
 0x5b7   :  { %v449_v25 = vpop.permute.xlu1 %448 }
 0x5b8   :  { %3445 = vpow2.f32 %v389_v13  ;;  %v454_v30 = vsel %vm329_vm3, %v449_v25, 0 }
 0x5c2   :  { %v3446_v15 = vpop.eup %3445 }
 0x5c3   :  { %v391_v16 = vsel %vm384_vm4, %v3446_v15, 0.0 }
 0x5c4   :  { %392 = vadd.xlane.f32.xlu0 %v391_v16 }
 0x5da   :  { %397 = vrot.lane.b32.xlu0 %v3941_v59, %s4611_s30 }
 0x5de   :  { %446 = vrot.lane.b32.xlu0 %v3941_v59, %s3664_s14 }
 0x651   :  { %v393_v18 = vpop.xlane.xlu0 %392 }
 0x652   :  { %3447 = vrcp.f32 %v393_v18 }
 0x655   :  { %v398_v19 = vpop.permute.xlu0 %397 }
 0x656   :  { %v404_v21 = vsel %vm402_vm5, %v398_v19, 0 }
 0x657   :  { %3028 = vmatpush3.bf16.msra.mxu1 %v404_v21 }
 0x658   :  { %3033 = vmatprep.subr.bf16.mxu1 %v3660_v8 }
 0x659   :  { %v447_v33 = vpop.permute.xlu0 %446 }
 0x65c   :  { %v3448_v22 = vpop.eup %3447 }
 0x65d   :  { %v395_v24 = vmul.f32 %v3448_v22, %v3446_v15 }
 0x65f   :  { %v396_v28 = vpack.c.bf16 %v395_v24, %v395_v24 }
 0x661   :  { %3030 = vmatmul.mubr.msk.bf16.vlgmr.msra.gmra.mrb[8].mxu1 %vm384_vm4, %v396_v28 }
 0x662   :  { %3034 = vmatpush3.bf16.xpose.msra.mxu1 %v454_v30  ;;  %3035 = vmatprep.mubr.msk.bf16.mxu1 %vm3659_vm0, %v3660_v8 }
 0x663   :  { %3045 = vmatprep.subr.bf16.mxu1 %v3660_v8 }
 0x669   :  { %3036 = vmatmul.mubr.msk.bf16.vlgmr.msra.gmra.mrb[12].mxu1 %vm329_vm3, %v447_v33 }
 0x66a   :  { %3049 = vmatprep.mubr.msk.bf16.mxu1 %vm3659_vm0, %v3660_v8 }
 0x734   :  { %v440_v34 = vpop.f32.mrb[8].mxu1 }
 0x735   :  { %v3031_v35 = vpop.f32.mrb[9].mxu1 }
 0x736   :  { %v443_v36 = vpop.f32.mrb[10].mxu1 }
 0x737   :  { %v3032_v37 = vpop.f32.mrb[11].mxu1 }
 0x73c   :  { %v490_v38 = vpop.f32.mrb[12].mxu1 }
 0x73d   :  { %v496_v39 = vmul.f32 0.25, %v490_v38  ;;  %v3037_v40 = vpop.f32.mrb[13].mxu1 }
 0x73e   :  { %v493_v41 = vpop.f32.mrb[14].mxu1 }
 0x73f   :  { %v3038_v44 = vpop.f32.mrb[15].mxu1  ;;  %v497_v45 = vadd.f32 %v3954_v0, %v496_v39  ;;  %v4024_v39 = vld [vmem:[%s4574_s10] ss:$0 sm:$0xff] }
 0x740   :  { %v4029_v41 = vld [vmem:[%s4575_s11] ss:$0 sm:$0xff] }
 0x741   :  { %v498_v46 = vsel %vm384_vm4, %v497_v45, -inf }
 0x742   :  { %499 = vmax.xlane.f32.xlu0 %v498_v46 }
 0x758   :  { %510 = vrot.lane.b32.xlu0 %v3941_v59, %s3665_s23  ;;  %v3985_v59 = vld [vmem:[#allocation7] sm:$0xff]  }
 0x759   :  { %3046 = vmatpush3.bf16.msra.mxu1 %v3985_v59 }
 0x75a   :  { %3047 = vmatprep.subr.bf16.mxu1 %v3660_v8 }
 0x75d   :  { %3048 = vmatpush3.bf16.msra.mxu1 %v3989_v63 }
 0x75e   :  { %3061 = vmatprep.subr.bf16.mxu1 %v3660_v8 }
 0x7cf   :  { %v500_v47 = vpop.xlane.xlu0 %499 }
 0x7d0   :  { %v501_v49 = vsub.f32 %v497_v45, %v500_v47  ;;  %v4036_v47 = vld [vmem:[#allocation8] sm:$0xff]  }
 0x7d2   :  { %v502_v51 = vmul.f32 1.442695, %v501_v49  ;;  %v4040_v49 = vld [vmem:[#allocation8 + $0x8] sm:$0xff]  }
 0x7d3   :  { %v511_v53 = vpop.permute.xlu0 %510 }
 0x7d4   :  { %3449 = vpow2.f32 %v502_v51  ;;  %v516_v55 = vsel %vm402_vm5, %v511_v53, 0  ;;  %v4044_v51 = vld [vmem:[#allocation8 + $0x10] sm:$0xff]   ;;  %v4048_v53 = vld [vmem:[#allocation8 + $0x18] sm:$0xff]  }
 0x7d5   :  { %3040 = vmatpush3.bf16.msra.mxu0 %v516_v55  ;;  %v4055_v55 = vld [vmem:[%s4577_s13] ss:$0 sm:$0xff] }
 0x7d6   :  { %3053 = vmatprep.subr.bf16.mxu0 %v3660_v8 }
 0x7de   :  { %v3450_v56 = vpop.eup %3449 }
 0x7df   :  { %v504_v57 = vsel %vm384_vm4, %v3450_v56, 0.0 }
 0x7e0   :  { %505 = vadd.xlane.f32.xlu1 %v504_v57 }
 0x86d   :  { %v506_v58 = vpop.xlane.xlu1 %505 }
 0x86e   :  { %3451 = vrcp.f32 %v506_v58 }
 0x878   :  { %v3452_v60 = vpop.eup %3451 }
 0x879   :  { %v508_v61 = vmul.f32 %v3452_v60, %v3450_v56 }
 0x87b   :  { %v509_v62 = vpack.c.bf16 %v508_v61, %v508_v61 }
 0x87d   :  { %3042 = vmatmul.mubr.msk.bf16.vlgmr.msra.gmra.mrb[4].mxu0 %vm384_vm4, %v509_v62 }
 0x87e   :  { %3057 = vmatprep.mubr.msk.bf16.mxu0 %vm3659_vm0, %v3660_v8 }
 0x950   :  { %v552_v2 = vpop.f32.mrb[4].mxu0 }
 0x951   :  { %559 = vrot.lane.b32.xlu1 %v552_v2, %s3666_s26  ;;  %v3043_v3 = vpop.f32.mrb[5].mxu0 }
 0x952   :  { %v555_v4 = vpop.f32.mrb[6].mxu0 }
 0x953   :  { %v3044_v6 = vpop.f32.mrb[7].mxu0 }
 0x9c3   :  { %v560_v7 = vpop.permute.xlu1 %559 }
 0x9c4   :  { %v562_v10 = vsel %vm329_vm3, %v440_v34, %v560_v7  ;;  %v4010_v34 = vld [vmem:[%s4576_s12] sm:$0xff]  }
 0x9c5   :  { %v563_v11 = vpack.c.bf16 %v562_v10, %v562_v10  ;;  %3054 = vmatpush3.bf16.msra.mxu0 %v4010_v34 }
 0x9c6   :  { %3055 = vmatprep.subr.bf16.mxu0 %v3660_v8 }
 0x9c7   :  { %3050 = vmatmul.mubr.msk.bf16.vlgmr.msra.gmra.mrb[16].mxu1 %vm228_vm2, %v563_v11 }
 0x9c8   :  { %3069 = vmatprep.mubr.msk.bf16.mxu1 %vm3659_vm0, %v3660_v8  ;;  %3062 = vmatpush3.bf16.msra.mxu1 %v4036_v47 }
 0x9c9   :  { %3063 = vmatprep.subr.bf16.mxu1 %v3660_v8 }
 0x9cc   :  { %3064 = vmatpush3.bf16.msra.mxu1 %v4040_v49 }
 0x9cd   :  { %3065 = vmatprep.subr.bf16.mxu1 %v3660_v8 }
 0x9d0   :  { %3066 = vmatpush3.bf16.msra.mxu1 %v4044_v51 }
 0x9d1   :  { %3067 = vmatprep.subr.bf16.mxu1 %v3660_v8 }
 0x9d4   :  { %3068 = vmatpush3.bf16.msra.mxu1 %v4048_v53 }
 0x9d5   :  { %3087 = vmatprep.subr.bf16.mxu1 %v3660_v8 }
 0xa9a   :  { %v624_v13 = vpop.f32.mrb[16].mxu1 }
 0xa9b   :  { %v625_v15 = vadd.f32 %v4001_v12, %v624_v13  ;;  %v3051_v16 = vpop.f32.mrb[17].mxu1 }
 0xa9c   :  { %v627_v18 = vpop.f32.mrb[18].mxu1  ;;  %v4064_v16 = vld [vmem:[%s4579_s15] ss:$0 sm:$0xff] }
 0xa9d   :  { %v3052_v19 = vpop.f32.mrb[19].mxu1  ;;  %v630_v21 = vadd.f32 %v625_v15, %v3928_v52  ;;  %v4016_v52 = vld [vmem:[%s4576_s12 + $0x8] sm:$0xff]  }
 0xa9e   :  { %3056 = vmatpush3.bf16.msra.mxu0 %v4016_v52 }
 0xa9f   :  { %v633_v22 = vsel %vm228_vm2, %v630_v21, 0.0  ;;  %3073 = vmatprep.subr.bf16.mxu0 %v3660_v8 }
 0xaa0   :  { %634 = vadd.xlane.f32.xlu0 %v633_v22 }
 0xb2d   :  { %v635_v24 = vpop.xlane.xlu0 %634 }
 0xb2e   :  { %v636_v25 = vmul.f32 0.03125, %v635_v24 }
 0xb30   :  { %v637_v28 = vsub.f32 %v630_v21, %v636_v25 }
 0xb32   :  { %v638_v30 = vmul.f32 %v637_v28, %v637_v28 }
 0xb34   :  { %v639_v33 = vsel %vm228_vm2, %v638_v30, 0.0 }
 0xb35   :  { %640 = vadd.xlane.f32.xlu1 %v639_v33 }
 0xbc2   :  { %v641_v35 = vpop.xlane.xlu1 %640 }
 0xbc3   :  { %v642_v36 = vmul.f32 0.03125, %v641_v35 }
 0xbc5   :  { %v643_v37 = vadd.f32 1e-12, %v642_v36 }
 0xbc7   :  { %3453 = vrsqrt.f32 %v643_v37 }
 0xbd1   :  { %v3454_v38 = vpop.eup %3453 }
 0xbd2   :  { %v645_v40 = vmul.f32 %v3454_v38, %v637_v28  ;;  %v4069_v38 = vld [vmem:[#allocation5 + $0x10] sm:$0xff]  }
 0xbd4   :  { %v652_v44 = vmul.f32 %v4024_v39, %v645_v40  ;;  %v4072_v40 = vld [vmem:[#allocation5 + $0x18] sm:$0xff]  }
 0xbd6   :  { %v659_v45 = vadd.f32 %v4029_v41, %v652_v44 }
 0xbd8   :  { %v660_v46 = vpack.c.bf16 %v659_v45, %v659_v45 }
 0xbda   :  { %3058 = vmatmul.mubr.msk.bf16.vlgmr.msra.gmra.mrb[8].mxu0 %vm228_vm2, %v660_v46 }
 0xbdb   :  { %3077 = vmatprep.mubr.msk.bf16.mxu0 %vm3659_vm0, %v3660_v8  ;;  %3074 = vmatpush3.bf16.msra.mxu0 %v4069_v38 }
 0xbdc   :  { %3075 = vmatprep.subr.bf16.mxu0 %v3660_v8 }
 0xbdf   :  { %3076 = vmatpush3.bf16.msra.mxu0 %v4072_v40 }
 0xbe0   :  { %3081 = vmatprep.subr.bf16.mxu0 %v3660_v8 }
 0xcad   :  { %v721_v56 = vpop.f32.mrb[8].mxu0 }
 0xcae   :  { %v722_v57 = vadd.f32 %v4055_v55, %v721_v56  ;;  %v3059_v58 = vpop.f32.mrb[9].mxu0 }
 0xcaf   :  { %v724_v60 = vpop.f32.mrb[10].mxu0 }
 0xcb0   :  { %v727_v61 = vmul.f32 %v722_v57, %v722_v57  ;;  %v3060_v62 = vpop.f32.mrb[11].mxu0  ;;  %v4085_v60 = vld [vmem:[%s4581_s17] ss:$0 sm:$0xff] }
 0xcb2   :  { %v728_v2 = vmul.f32 %v727_v61, %v722_v57 }
 0xcb4   :  { %v729_v3 = vmul.f32 0.044715, %v728_v2 }
 0xcb6   :  { %v730_v4 = vadd.f32 %v729_v3, %v722_v57  ;;  %v4099_v3 = vld [vmem:[%s4616_s6 + $0x1] ss:$0 sm:$0xff] }
 0xcb8   :  { %v731_v6 = vmul.f32 0.7978846, %v730_v4 }
 0xcba   :  { %3455 = vtanh.f32 %v731_v6 }
 0xcc4   :  { %v3456_v7 = vpop.eup %3455 }
 0xcc5   :  { %v733_v10 = vadd.f32 1.0, %v3456_v7 }
 0xcc7   :  { %v734_v11 = vmul.f32 0.5, %v733_v10 }
 0xcc9   :  { %v735_v13 = vmul.f32 %v734_v11, %v722_v57  ;;  %v4080_v57 = vld [vmem:[%s4580_s16] ss:$0 sm:$0xff] }
 0xccb   :  { %v736_v15 = vpack.c.bf16 %v735_v13, %v735_v13 }
 0xccd   :  { %3070 = vmatmul.mubr.msk.bf16.vlgmr.msra.gmra.mrb[20].mxu1 %vm776_vm6, %v736_v15 }
 0xcce   :  { %3089 = vmatprep.mubr.msk.bf16.mxu1 %vm3659_vm0, %v3660_v8 }
 0xda0   :  { %v814_v18 = vpop.f32.mrb[20].mxu1 }
 0xda1   :  { %v815_v19 = vadd.f32 %v4064_v16, %v814_v18  ;;  %v3071_v21 = vpop.f32.mrb[21].mxu1 }
 0xda2   :  { %v817_v22 = vpop.f32.mrb[22].mxu1 }
 0xda3   :  { %v3072_v24 = vpop.f32.mrb[23].mxu1  ;;  %v820_v25 = vadd.f32 %v815_v19, %v659_v45 }
 0xda5   :  { %v823_v28 = vsel %vm228_vm2, %v820_v25, 0.0 }
 0xda6   :  { %824 = vadd.xlane.f32.xlu0 %v823_v28 }
 0xe33   :  { %v825_v30 = vpop.xlane.xlu0 %824 }
 0xe34   :  { %v826_v33 = vmul.f32 0.03125, %v825_v30 }
 0xe36   :  { %v827_v35 = vsub.f32 %v820_v25, %v826_v33 }
 0xe38   :  { %v828_v36 = vmul.f32 %v827_v35, %v827_v35 }
 0xe3a   :  { %v829_v37 = vsel %vm228_vm2, %v828_v36, 0.0 }
 0xe3b   :  { %830 = vadd.xlane.f32.xlu0 %v829_v37 }
 0xec8   :  { %v831_v44 = vpop.xlane.xlu0 %830 }
 0xec9   :  { %v832_v45 = vmul.f32 0.03125, %v831_v44 }
 0xecb   :  { %v833_v46 = vadd.f32 1e-12, %v832_v45 }
 0xecd   :  { %3457 = vrsqrt.f32 %v833_v46 }
 0xed7   :  { %v3458_v56 = vpop.eup %3457 }
 0xed8   :  { %v835_v58 = vmul.f32 %v3458_v56, %v827_v35 }
 0xeda   :  { %v842_v61 = vmul.f32 %v4080_v57, %v835_v58 }
 0xedc   :  { %v4089_v62 = vadd.f32 %v4085_v60, %v842_v61 }
 0xede   :  { %v850_v2 = vpack.c.bf16 %v4089_v62, %v4089_v62 }
 0xee0   :  { %3078 = vmatmul.mubr.msk.bf16.vlgmr.msra.gmra.mrb[12].mxu0 %vm228_vm2, %v850_v2 }
 0xee1   :  { %3083 = vmatprep.mubr.msk.bf16.mxu0 %vm3659_vm0, %v3660_v8 }
 0xfb3   :  { %v913_v4 = vpop.f32.mrb[12].mxu0 }
 0xfb4   :  { %v914_v6 = vadd.f32 %v4099_v3, %v913_v4  ;;  %v3079_v7 = vpop.f32.mrb[13].mxu0 }
 0xfb5   :  { %v916_v10 = vpop.f32.mrb[14].mxu0 }
 0xfb6   :  { %v919_v11 = vpack.c.bf16 %v914_v6, %v914_v6  ;;  %v3080_v13 = vpop.f32.mrb[15].mxu0 }
 0xfb8   :  { %1033 = vrot.lane.b32.xlu1 %v919_v11, %s3663_s7  ;;  %921 = vrot.lane.b32.xlu0 %v919_v11, %s3662_s21 }
 0xfbc   :  { %1031 = vrot.lane.b32.xlu0 %v919_v11, %s3664_s14 }
0x102a   :  { %v922_v15 = vpop.permute.xlu0 %921  ;;  %v1034_v19 = vpop.permute.xlu1 %1033 }
0x102b   :  { %v927_v18 = vsel %vm329_vm3, %v922_v15, 0  ;;  %v1039_v21 = vsel %vm329_vm3, %v1034_v19, 0 }
0x102c   :  { %3082 = vmatpush3.bf16.xpose.msra.mxu0 %v927_v18 }
0x102d   :  { %3093 = vmatprep.subr.bf16.mxu0 %v3660_v8 }
0x102e   :  { %v1032_v22 = vpop.permute.xlu0 %1031 }
0x1033   :  { %3084 = vmatmul.mubr.msk.bf16.vlgmr.msra.gmra.mrb[16].mxu0 %vm329_vm3, %v919_v11 }
0x1034   :  { %3094 = vmatpush3.bf16.xpose.msra.mxu0 %v1039_v21  ;;  %3095 = vmatprep.mubr.msk.bf16.mxu0 %vm3659_vm0, %v3660_v8 }
0x1035   :  { %3105 = vmatprep.subr.bf16.mxu0 %v3660_v8 }
0x103b   :  { %3096 = vmatmul.mubr.msk.bf16.vlgmr.msra.gmra.mrb[20].mxu0 %vm329_vm3, %v1032_v22 }
0x103c   :  { %3109 = vmatprep.mubr.msk.bf16.mxu0 %vm3659_vm0, %v3660_v8 }
0x1106   :  { %v963_v24 = vpop.f32.mrb[16].mxu0 }
0x1107   :  { %v969_v25 = vmul.f32 0.25, %v963_v24  ;;  %v3085_v28 = vpop.f32.mrb[17].mxu0 }
0x1108   :  { %v966_v30 = vpop.f32.mrb[18].mxu0 }
0x1109   :  { %v3086_v33 = vpop.f32.mrb[19].mxu0  ;;  %v970_v35 = vadd.f32 %v3954_v0, %v969_v25 }
0x110b   :  { %v971_v36 = vsel %vm384_vm4, %v970_v35, -inf }
0x110c   :  { %972 = vmax.xlane.f32.xlu1 %v971_v36 }
0x110e   :  { %v1075_v37 = vpop.f32.mrb[20].mxu0 }
0x110f   :  { %v1081_v44 = vmul.f32 0.25, %v1075_v37  ;;  %v3097_v45 = vpop.f32.mrb[21].mxu0 }
0x1110   :  { %v1078_v46 = vpop.f32.mrb[22].mxu0  ;;  %v4133_v45 = vld [vmem:[#allocation7 + $0x10] sm:$0xff]  }
0x1111   :  { %v3098_v56 = vpop.f32.mrb[23].mxu0  ;;  %v1082_v58 = vadd.f32 %v3954_v0, %v1081_v44  ;;  %3106 = vmatpush3.bf16.msra.mxu0 %v4133_v45  ;;  %v4137_v46 = vld [vmem:[#allocation7 + $0x18] sm:$0xff]  }
0x1112   :  { %3107 = vmatprep.subr.bf16.mxu0 %v3660_v8 }
0x1113   :  { %v1083_v61 = vsel %vm384_vm4, %v1082_v58, -inf }
0x1114   :  { %1084 = vmax.xlane.f32.xlu0 %v1083_v61 }
0x1115   :  { %3108 = vmatpush3.bf16.msra.mxu0 %v4137_v46 }
0x1116   :  { %3368 = vmatprep.subr.bf16.mxu0 %v3658_v1 }
0x1199   :  { %v973_v2 = vpop.xlane.xlu1 %972 }
0x119a   :  { %v974_v4 = vsub.f32 %v970_v35, %v973_v2 }
0x119c   :  { %v975_v6 = vmul.f32 1.442695, %v974_v4 }
0x119e   :  { %3459 = vpow2.f32 %v975_v6 }
0x11a1   :  { %v1085_v7 = vpop.xlane.xlu0 %1084 }
0x11a2   :  { %v1086_v10 = vsub.f32 %v1082_v58, %v1085_v7 }
0x11a4   :  { %v1087_v13 = vmul.f32 1.442695, %v1086_v10 }
0x11a6   :  { %3461 = vpow2.f32 %v1087_v13 }
0x11a8   :  { %v3460_v15 = vpop.eup %3459 }
0x11a9   :  { %v977_v18 = vsel %vm384_vm4, %v3460_v15, 0.0 }
0x11aa   :  { %978 = vadd.xlane.f32.xlu0 %v977_v18 }
0x11b0   :  { %v3462_v19 = vpop.eup %3461 }
0x11b1   :  { %v1089_v21 = vsel %vm384_vm4, %v3462_v19, 0.0 }
0x11b2   :  { %1090 = vadd.xlane.f32.xlu1 %v1089_v21 }
0x11c0   :  { %983 = vrot.lane.b32.xlu0 %v919_v11, %s4611_s30 }
0x11c3   :  { %1095 = vrot.lane.b32.xlu1 %v919_v11, %s3665_s23 }
0x1237   :  { %v979_v0 = vpop.xlane.xlu0 %978 }
0x1238   :  { %3463 = vrcp.f32 %v979_v0 }
0x123b   :  { %v984_v22 = vpop.permute.xlu0 %983 }
0x123c   :  { %v989_v24 = vsel %vm402_vm5, %v984_v22, 0 }
0x123d   :  { %3088 = vmatpush3.bf16.msra.mxu1 %v989_v24 }
0x123e   :  { %3099 = vmatprep.subr.bf16.mxu1 %v3660_v8 }
0x123f   :  { %v1091_v25 = vpop.xlane.xlu1 %1090 }
0x1240   :  { %3465 = vrcp.f32 %v1091_v25 }
0x1242   :  { %v3464_v28 = vpop.eup %3463 }
0x1243   :  { %v981_v30 = vmul.f32 %v3464_v28, %v3460_v15  ;;  %v1096_v33 = vpop.permute.xlu1 %1095  ;;  %v4187_v28 = vld [vmem:[%s4576_s12 + $0x18] sm:$0xff]  }
0x1244   :  { %v1101_v36 = vsel %vm402_vm5, %v1096_v33, 0 }
0x1245   :  { %v982_v35 = vpack.c.bf16 %v981_v30, %v981_v30 }
0x1247   :  { %3090 = vmatmul.mubr.msk.bf16.vlgmr.msra.gmra.mrb[24].mxu1 %vm384_vm4, %v982_v35  ;;  %v4195_v35 = vld [vmem:[%s4574_s10 + $0x1] ss:$0 sm:$0xff] }
0x1248   :  { %3100 = vmatpush3.bf16.msra.mxu1 %v1101_v36  ;;  %3101 = vmatprep.mubr.msk.bf16.mxu1 %vm3659_vm0, %v3660_v8 }
0x1249   :  { %3113 = vmatprep.subr.bf16.mxu1 %v3660_v8 }
0x124a   :  { %v3466_v11 = vpop.eup %3465 }
0x124b   :  { %v1093_v37 = vmul.f32 %v3466_v11, %v3462_v19  ;;  %v4200_v11 = vld [vmem:[%s4575_s11 + $0x1] ss:$0 sm:$0xff] }
0x124d   :  { %v1094_v44 = vpack.c.bf16 %v1093_v37, %v1093_v37 }
0x124f   :  { %3102 = vmatmul.mubr.msk.bf16.vlgmr.msra.gmra.mrb[28].mxu1 %vm384_vm4, %v1094_v44 }
0x1250   :  { %3117 = vmatprep.mubr.msk.bf16.mxu1 %vm3659_vm0, %v3660_v8 }
0x131a   :  { %v1025_v56 = vpop.f32.mrb[24].mxu1 }
0x131b   :  { %v3091_v58 = vpop.f32.mrb[25].mxu1 }
0x131c   :  { %v1028_v61 = vpop.f32.mrb[26].mxu1 }
0x131d   :  { %v3092_v2 = vpop.f32.mrb[27].mxu1 }
0x131e   :  { %v4207_v2 = vld [vmem:[#allocation8 + $0x20] sm:$0xff]  }
0x1322   :  { %v1137_v4 = vpop.f32.mrb[28].mxu1 }
0x1323   :  { %1144 = vrot.lane.b32.xlu1 %v1137_v4, %s3666_s26  ;;  %v3103_v6 = vpop.f32.mrb[29].mxu1  ;;  %v4211_v4 = vld [vmem:[#allocation8 + $0x28] sm:$0xff]  }
0x1324   :  { %v1140_v7 = vpop.f32.mrb[30].mxu1  ;;  %v4215_v6 = vld [vmem:[#allocation8 + $0x30] sm:$0xff]  }
0x1325   :  { %v3104_v10 = vpop.f32.mrb[31].mxu1  ;;  %v4219_v7 = vld [vmem:[#allocation8 + $0x38] sm:$0xff]  }
0x1326   :  { %v4226_v10 = vld [vmem:[%s4577_s13 + $0x1] ss:$0 sm:$0xff] }
0x1395   :  { %v1145_v13 = vpop.permute.xlu1 %1144 }
0x1396   :  { %v1147_v15 = vsel %vm329_vm3, %v1025_v56, %v1145_v13 }
0x1397   :  { %v1148_v18 = vpack.c.bf16 %v1147_v15, %v1147_v15 }
0x1399   :  { %3110 = vmatmul.mubr.msk.bf16.vlgmr.msra.gmra.mrb[24].mxu0 %vm228_vm2, %v1148_v18 }
0x139a   :  { %3370 = vmatpush3.bf16.msra.mxu0 %v3857_v5  ;;  %3193 = vmatprep.mubr.msk.f32.mxu0 %vm3659_vm0, %v3660_v8  ;;  %v4165_v5 = vld [vmem:[%s4573_s9 + $0x1] ss:$0 sm:$0xff] }
0x139b   :  { %3371 = vmatprep.subr.bf16.mxu0 %v3658_v1 }
0x139e   :  { %3373 = vmatpush3.bf16.msra.mxu0 %v3865_v9 }
0x139f   :  { %3374 = vmatprep.subr.bf16.mxu0 %v3658_v1 }
0x13a2   :  { %3376 = vmatpush3.bf16.msra.mxu0 %v3869_v14 }
0x13a3   :  { %3377 = vmatprep.subr.bf16.mxu0 %v3658_v1 }
0x13a6   :  { %3379 = vmatpush3.bf16.msra.mxu0 %v3873_v17 }
0x13a7   :  { %3380 = vmatprep.subr.bf16.mxu0 %v3658_v1 }
0x13aa   :  { %3382 = vmatpush3.bf16.msra.mxu0 %v3877_v20 }
0x13ab   :  { %3383 = vmatprep.subr.bf16.mxu0 %v3658_v1 }
0x13ae   :  { %3385 = vmatpush3.bf16.msra.mxu0 %v3881_v23 }
0x13af   :  { %3386 = vmatprep.subr.bf16.mxu0 %v3658_v1 }
0x13b2   :  { %3388 = vmatpush3.bf16.msra.mxu0 %v3885_v26 }
0x13b3   :  { %3389 = vmatprep.subr.bf16.mxu0 %v3658_v1  ;;  %v2811_v1 = vld [vmem:[%s4612_s24 + $0x8] sm:$0xff] }
0x13b6   :  { %3391 = vmatpush3.bf16.msra.mxu0 %v3889_v27 }
0x13b7   :  { %3204 = vmatprep.subr.bf16.mxu0 %v3660_v8 }
0x146c   :  { %v1211_v9 = vpop.f32.mrb[24].mxu0 }
0x146d   :  { %v1212_v14 = vadd.f32 %v4165_v5, %v1211_v9  ;;  %v3111_v17 = vpop.f32.mrb[25].mxu0 }
0x146e   :  { %v1214_v20 = vpop.f32.mrb[26].mxu0 }
0x146f   :  { %v3112_v23 = vpop.f32.mrb[27].mxu0  ;;  %v1217_v19 = vadd.f32 %v1212_v14, %v4089_v62  ;;  %v4181_v62 = vld [vmem:[%s4576_s12 + $0x10] sm:$0xff]  }
0x1470   :  { %3114 = vmatpush3.bf16.msra.mxu1 %v4181_v62 }
0x1471   :  { %v1222_v26 = vsel %vm228_vm2, %v1217_v19, 0.0  ;;  %3115 = vmatprep.subr.bf16.mxu1 %v3660_v8 }
0x1472   :  { %1223 = vadd.xlane.f32.xlu0 %v1222_v26 }
0x1474   :  { %3116 = vmatpush3.bf16.msra.mxu1 %v4187_v28 }
0x1475   :  { %3121 = vmatprep.subr.bf16.mxu1 %v3660_v8 }
0x1488   :  { %1615 = vperm.xlu0 %3412, %v2811_v1  }
0x14ff   :  { %v1224_v27 = vpop.xlane.xlu0 %1223 }
0x1500   :  { %v1225_v21 = vmul.f32 0.03125, %v1224_v27 }
0x1502   :  { %v1226_v0 = vsub.f32 %v1217_v19, %v1225_v21 }
0x1504   :  { %v1227_v22 = vmul.f32 %v1226_v0, %v1226_v0 }
0x1506   :  { %v1228_v24 = vsel %vm228_vm2, %v1227_v22, 0.0 }
0x1507   :  { %1229 = vadd.xlane.f32.xlu1 %v1228_v24  ;;  %v1616_v25 = vpop.permute.xlu0 %1615  ;;  %v4235_v24 = vld [vmem:[%s4579_s15 + $0x1] ss:$0 sm:$0xff] }
0x1508   :  { %vm1617_vm7 = vcmp.eq.s32.totalorder %v3894_v29, %v1616_v25 }
0x1509   :  { %3194 = vmatmul.mubr.msk.f32.vlgmr.msra.gmra.mrb[2].mxu0 %vm1617_vm7, %v3661_v31 }
0x150a   :  { %3206 = vmatprep.mubr.msk.bf16.mxu0 %vm3659_vm0, %v3660_v8 }
0x1594   :  { %v1230_v29 = vpop.xlane.xlu1 %1229 }
0x1595   :  { %v1231_v31 = vmul.f32 0.03125, %v1230_v29 }
0x1597   :  { %v1232_v30 = vadd.f32 1e-12, %v1231_v31 }
0x1599   :  { %3467 = vrsqrt.f32 %v1232_v30 }
0x15a3   :  { %v3468_v33 = vpop.eup %3467 }
0x15a4   :  { %v1234_v36 = vmul.f32 %v3468_v33, %v1226_v0 }
0x15a6   :  { %v1241_v37 = vmul.f32 %v4195_v35, %v1234_v36 }
0x15a8   :  { %v1248_v44 = vadd.f32 %v4200_v11, %v1241_v37 }
0x15aa   :  { %v1249_v56 = vpack.c.bf16 %v1248_v44, %v1248_v44 }
0x15ac   :  { %3118 = vmatmul.mubr.msk.bf16.vlgmr.msra.gmra.mrb[32].mxu1 %vm228_vm2, %v1249_v56 }
0x15ad   :  { %3129 = vmatprep.mubr.msk.bf16.mxu1 %vm3659_vm0, %v3660_v8  ;;  %3122 = vmatpush3.bf16.msra.mxu1 %v4207_v2 }
0x15ae   :  { %3123 = vmatprep.subr.bf16.mxu1 %v3660_v8 }
0x15b1   :  { %3124 = vmatpush3.bf16.msra.mxu1 %v4211_v4 }
0x15b2   :  { %3125 = vmatprep.subr.bf16.mxu1 %v3660_v8 }
0x15b5   :  { %3126 = vmatpush3.bf16.msra.mxu1 %v4215_v6 }
0x15b6   :  { %3127 = vmatprep.subr.bf16.mxu1 %v3660_v8 }
0x15b9   :  { %3128 = vmatpush3.bf16.msra.mxu1 %v4219_v7 }
0x15ba   :  { %3133 = vmatprep.subr.bf16.mxu1 %v3660_v8 }
0x15dc   :  { %v1685_v58 = vpop.f32.mrb[2].mxu0 }
0x15dd   :  { %v3195_v61 = vpop.f32.mrb[3].mxu0 }
0x167f   :  { %v1312_v13 = vpop.f32.mrb[32].mxu1 }
0x1680   :  { %v1313_v15 = vadd.f32 %v4226_v10, %v1312_v13  ;;  %v3119_v18 = vpop.f32.mrb[33].mxu1 }
0x1681   :  { %v1315_v9 = vpop.f32.mrb[34].mxu1  ;;  %v1686_v18 = vadd.f32 %v1685_v58, %v3903_v32 }
0x1682   :  { %v1318_v14 = vmul.f32 %v1313_v15, %v1313_v15  ;;  %v3120_v17 = vpop.f32.mrb[35].mxu1 }
0x1683   :  { %v4245_v17 = vld [vmem:[%s4582_s18] sm:$0xff]  }
0x1684   :  { %v1319_v20 = vmul.f32 %v1318_v14, %v1313_v15  ;;  %v1689_v14 = vsel %vm228_vm2, %v1686_v18, 0.0 }
0x1686   :  { %v1320_v23 = vmul.f32 0.044715, %v1319_v20 }
0x1688   :  { %v1321_v19 = vadd.f32 %v1320_v23, %v1313_v15 }
0x168a   :  { %v1322_v26 = vmul.f32 0.7978846, %v1321_v19 }
0x168c   :  { %3469 = vtanh.f32 %v1322_v26 }
0x1696   :  { %v3470_v1 = vpop.eup %3469 }
0x1697   :  { %v1324_v27 = vadd.f32 1.0, %v3470_v1 }
0x1699   :  { %v1325_v21 = vmul.f32 0.5, %v1324_v27 }
0x169b   :  { %v1326_v0 = vmul.f32 %v1325_v21, %v1313_v15 }
0x169d   :  { %v1327_v22 = vpack.c.bf16 %v1326_v0, %v1326_v0  ;;  %v4260_v0 = vld [vmem:[%s4580_s16 + $0x1] ss:$0 sm:$0xff] }
0x169f   :  { %3130 = vmatmul.mubr.msk.bf16.vlgmr.msra.gmra.mrb[36].mxu1 %vm776_vm6, %v1327_v22 }
0x16a0   :  { %3137 = vmatprep.mubr.msk.bf16.mxu1 %vm3659_vm0, %v3660_v8  ;;  %3134 = vmatpush3.bf16.msra.mxu1 %v4245_v17 }
0x16a1   :  { %3135 = vmatprep.subr.bf16.mxu1 %v3660_v8 }
0x1772   :  { %v1406_v25 = vpop.f32.mrb[36].mxu1 }
0x1773   :  { %v1407_v29 = vadd.f32 %v4235_v24, %v1406_v25  ;;  %v3131_v31 = vpop.f32.mrb[37].mxu1  ;;  %v4265_v25 = vld [vmem:[%s4581_s17 + $0x1] ss:$0 sm:$0xff] }
0x1774   :  { %v1409_v30 = vpop.f32.mrb[38].mxu1 }
0x1775   :  { %v3132_v33 = vpop.f32.mrb[39].mxu1  ;;  %v1412_v36 = vadd.f32 %v1407_v29, %v1248_v44  ;;  %v4251_v44 = vld [vmem:[%s4582_s18 + $0x8] sm:$0xff]  }
0x1776   :  { %3136 = vmatpush3.bf16.msra.mxu1 %v4251_v44  ;;  %v4275_v33 = vld [vmem:[%s4584_s20] sm:$0xff]  }
0x1777   :  { %v1417_v37 = vsel %vm228_vm2, %v1412_v36, 0.0  ;;  %3141 = vmatprep.subr.bf16.mxu1 %v3660_v8 }
0x1778   :  { %1418 = vadd.xlane.f32.xlu1 %v1417_v37  ;;  %v4288_v37 = vld [vmem:[%s4584_s20 + $0x10] sm:$0xff]  }
0x1805   :  { %v1419_v56 = vpop.xlane.xlu1 %1418 }
0x1806   :  { %v1420_v61 = vmul.f32 0.03125, %v1419_v56  ;;  %v4295_v56 = vld [vmem:[%s4584_s20 + $0x18] sm:$0xff]  }
0x1808   :  { %v1421_v13 = vsub.f32 %v1412_v36, %v1420_v61  ;;  %v4281_v36 = vld [vmem:[%s4584_s20 + $0x8] sm:$0xff]   ;;  %v4303_v61 = vld [vmem:[%s4584_s20 + $0x20] sm:$0xff]  }
0x180a   :  { %v1422_v15 = vmul.f32 %v1421_v13, %v1421_v13 }
0x180c   :  { %v1423_v9 = vsel %vm228_vm2, %v1422_v15, 0.0  ;;  %v4316_v15 = vld [vmem:[%s4584_s20 + $0x30] sm:$0xff]  }
0x180d   :  { %1424 = vadd.xlane.f32.xlu1 %v1423_v9 }
0x1811   :  { %1690 = vadd.xlane.f32.xlu1 %v1689_v14 }
0x189a   :  { %v1425_v32 = vpop.xlane.xlu1 %1424 }
0x189b   :  { %v1426_v58 = vmul.f32 0.03125, %v1425_v32 }
0x189d   :  { %v1427_v20 = vadd.f32 1e-12, %v1426_v58  ;;  %v4331_v58 = vld [vmem:[%s4583_s19] sm:$0x1] }
0x189e   :  { %v1691_v23 = vpop.xlane.xlu1 %1690 }
0x189f   :  { %3471 = vrsqrt.f32 %v1427_v20  ;;  %v1692_v19 = vmul.f32 0.03125, %v1691_v23 }
0x18a1   :  { %v1693_v26 = vsub.f32 %v1686_v18, %v1692_v19  ;;  %v4323_v18 = vld [vmem:[%s4584_s20 + $0x38] sm:$0xff]  }
0x18a3   :  { %v1694_v1 = vmul.f32 %v1693_v26, %v1693_v26 }
0x18a5   :  { %v1695_v27 = vsel %vm228_vm2, %v1694_v1, 0.0 }
0x18a6   :  { %1696 = vadd.xlane.f32.xlu1 %v1695_v27 }
0x18a9   :  { %v3472_v21 = vpop.eup %3471 }
0x18aa   :  { %v1429_v22 = vmul.f32 %v3472_v21, %v1421_v13  ;;  %v4310_v13 = vld [vmem:[%s4584_s20 + $0x28] sm:$0xff]  }
0x18ac   :  { %v1436_v29 = vmul.f32 %v4260_v0, %v1429_v22 }
0x18ae   :  { %v1443_v31 = vadd.f32 %v4265_v25, %v1436_v29 }
0x18b0   :  { %v1444_v30 = vpack.c.bf16 %v1443_v31, %v1443_v31 }
0x18b2   :  { %3138 = vmatmul.mubr.msk.bf16.vlgmr.msra.gmra.mrb[40].mxu1 %vm228_vm2, %v1444_v30 }
0x18b3   :  { %3157 = vmatprep.mubr.msk.bf16.mxu1 %vm3659_vm0, %v3660_v8  ;;  %3142 = vmatpush3.bf16.msra.mxu1 %v4275_v33 }
0x18b4   :  { %3143 = vmatprep.subr.bf16.mxu1 %v3660_v8 }
0x18b7   :  { %3144 = vmatpush3.bf16.msra.mxu1 %v4281_v36 }
0x18b8   :  { %3145 = vmatprep.subr.bf16.mxu1 %v3660_v8 }
0x18bb   :  { %3146 = vmatpush3.bf16.msra.mxu1 %v4288_v37 }
0x18bc   :  { %3147 = vmatprep.subr.bf16.mxu1 %v3660_v8 }
0x18bf   :  { %3148 = vmatpush3.bf16.msra.mxu1 %v4295_v56 }
0x18c0   :  { %3149 = vmatprep.subr.bf16.mxu1 %v3660_v8 }
0x18c3   :  { %3150 = vmatpush3.bf16.msra.mxu1 %v4303_v61 }
0x18c4   :  { %3151 = vmatprep.subr.bf16.mxu1 %v3660_v8 }
0x18c7   :  { %3152 = vmatpush3.bf16.msra.mxu1 %v4310_v13 }
0x18c8   :  { %3153 = vmatprep.subr.bf16.mxu1 %v3660_v8 }
0x18cb   :  { %3154 = vmatpush3.bf16.msra.mxu1 %v4316_v15 }
0x18cc   :  { %3155 = vmatprep.subr.bf16.mxu1 %v3660_v8 }
0x18cf   :  { %3156 = vmatpush3.bf16.msra.mxu1 %v4323_v18 }
0x18d0   :  { %3196 = vmatprep.subr.bf16.mxu1 %v3660_v8 }
0x1933   :  { %v1697_v9 = vpop.xlane.xlu1 %1696 }
0x1934   :  { %v1698_v14 = vmul.f32 0.03125, %v1697_v9 }
0x1936   :  { %v1699_v32 = vadd.f32 1e-12, %v1698_v14 }
0x1938   :  { %3473 = vrsqrt.f32 %v1699_v32 }
0x1942   :  { %v3474_v21 = vpop.eup %3473 }
0x1943   :  { %v1701_v22 = vmul.f32 %v3474_v21, %v1693_v26 }
0x1945   :  { %v1702_v31 = vmul.f32 %v3919_v48, %v1701_v22 }
0x1947   :  { %v4344_v9 = vadd.f32 %v3924_v50, %v1702_v31 }
0x1949   :  { %v1706_v26 = vpack.c.bf16 %v4344_v9, %v4344_v9 }
0x1985   :  { %v1499_v20 = vpop.f32.mrb[40].mxu1 }
0x1986   :  { %v1500_v23 = vadd.f32 %v1499_v20, %v4331_v58  ;;  %v3139_v19 = vpop.f32.mrb[41].mxu1 }
0x1987   :  { %v1502_v1 = vpop.f32.mrb[42].mxu1 }
0x1988   :  { %3475 = vtanh.f32 %v1500_v23  ;;  %v3140_v27 = vpop.f32.mrb[43].mxu1 }
0x1992   :  { %v4334_v29 = vpop.eup %3475 }
0x1993   :  { %v1506_v30 = vpack.c.bf16 %v4334_v29, %v4334_v29 }
0x1995   :  { %3158 = vmatmul.mubr.bf16.vlgmr.msra.gmra.mrb[44].mxu1 %v1506_v30 }
0x1996   :  { %3197 = vmatpush3.bf16.msra.mxu1 %v3908_v42  ;;  %3200 = vmatprep.mubr.msk.bf16.mxu1 %vm3659_vm0, %v3660_v8 }
0x1997   :  { %3198 = vmatprep.subr.bf16.mxu1 %v3660_v8 }
0x199a   :  { %3199 = vmatpush3.bf16.msra.mxu1 %v3911_v43 }
0x199b   :  { %3210 = vmatprep.subr.bf16.mxu1 %v3660_v8 }
0x199d   :  { %3201 = vmatmul.mubr.msk.bf16.vlgmr.msra.gmra.mrb[48].mxu1 %vm228_vm2, %v1706_v26  ;;  %v4376_v26 = vld [vmem:[%s4617_s27 + $0x1] ss:$0 sm:$0xff] }
0x199e   :  { %3212 = vmatprep.mubr.msk.bf16.mxu1 %vm3659_vm0, %v3660_v8 }
0x1a68   :  { %v4353_v42 = vpop.f32.mrb[44].mxu1 }
0x1a69   :  { %v3159_v48 = vpop.f32.mrb[45].mxu1 }
0x1a6a   :  { %v1609_v14 = vpop.f32.mrb[46].mxu1 }
0x1a6b   :  { %v3160_v32 = vpop.f32.mrb[47].mxu1 }
0x1a70   :  { %v1744_v20 = vpop.f32.mrb[48].mxu1 }
0x1a71   :  { %v1745_v50 = vadd.f32 %v3938_v54, %v1744_v20  ;;  %v3202_v23 = vpop.f32.mrb[49].mxu1 }
0x1a72   :  { %v1747_v43 = vpop.f32.mrb[50].mxu1 }
0x1a73   :  { %v1750_v19 = vpack.c.bf16 %v1745_v50, %v1745_v50  ;;  %v3203_v1 = vpop.f32.mrb[51].mxu1 }
0x1a75   :  { %1870 = vrot.lane.b32.xlu1 %v1750_v19, %s3663_s7  ;;  %1752 = vrot.lane.b32.xlu0 %v1750_v19, %s3662_s21 }
0x1a79   :  { %1868 = vrot.lane.b32.xlu0 %v1750_v19, %s3664_s14 }
0x1ae7   :  { %v1753_v27 = vpop.permute.xlu0 %1752  ;;  %v1871_v22 = vpop.permute.xlu1 %1870 }
0x1ae8   :  { %v1758_v21 = vsel %vm329_vm3, %v1753_v27, 0  ;;  %v1876_v31 = vsel %vm329_vm3, %v1871_v22, 0 }
0x1ae9   :  { %3205 = vmatpush3.bf16.xpose.msra.mxu0 %v1758_v21 }
0x1aea   :  { %3216 = vmatprep.subr.bf16.mxu0 %v3660_v8 }
0x1aeb   :  { %v1869_v54 = vpop.permute.xlu0 %1868 }
0x1af0   :  { %3207 = vmatmul.mubr.msk.bf16.vlgmr.msra.gmra.mrb[28].mxu0 %vm329_vm3, %v1750_v19 }
0x1af1   :  { %3217 = vmatpush3.bf16.xpose.msra.mxu0 %v1876_v31  ;;  %3218 = vmatprep.mubr.msk.bf16.mxu0 %vm3659_vm0, %v3660_v8 }
0x1af2   :  { %3228 = vmatprep.subr.bf16.mxu0 %v3660_v8 }
0x1af8   :  { %3219 = vmatmul.mubr.msk.bf16.vlgmr.msra.gmra.mrb[32].mxu0 %vm329_vm3, %v1869_v54 }
0x1af9   :  { %3229 = vmatpush3.bf16.msra.mxu0 %v3985_v59  ;;  %3232 = vmatprep.mubr.msk.bf16.mxu0 %vm3659_vm0, %v3660_v8 }
0x1afa   :  { %3230 = vmatprep.subr.bf16.mxu0 %v3660_v8 }
0x1afd   :  { %3231 = vmatpush3.bf16.msra.mxu0 %v3989_v63 }
0x1afe   :  { %3244 = vmatprep.subr.bf16.mxu0 %v3660_v8 }
0x1bc3   :  { %v1794_v30 = vpop.f32.mrb[28].mxu0 }
0x1bc4   :  { %v1800_v48 = vmul.f32 0.25, %v1794_v30  ;;  %v3208_v14 = vpop.f32.mrb[29].mxu0 }
0x1bc5   :  { %v1797_v32 = vpop.f32.mrb[30].mxu0 }
0x1bc6   :  { %v3209_v20 = vpop.f32.mrb[31].mxu0  ;;  %v1807_v59 = vadd.f32 %v4376_v26, %v1800_v48 }
0x1bc8   :  { %v1808_v50 = vsel %vm384_vm4, %v1807_v59, -inf }
0x1bc9   :  { %1809 = vmax.xlane.f32.xlu0 %v1808_v50 }
0x1bcb   :  { %v1912_v23 = vpop.f32.mrb[32].mxu0 }
0x1bcc   :  { %v1918_v43 = vmul.f32 0.25, %v1912_v23  ;;  %v3220_v63 = vpop.f32.mrb[33].mxu0 }
0x1bcd   :  { %v1915_v1 = vpop.f32.mrb[34].mxu0 }
0x1bce   :  { %v3221_v27 = vpop.f32.mrb[35].mxu0  ;;  %v1919_v21 = vadd.f32 %v4376_v26, %v1918_v43 }
0x1bd0   :  { %v1920_v22 = vsel %vm384_vm4, %v1919_v21, -inf }
0x1bd1   :  { %1921 = vmax.xlane.f32.xlu1 %v1920_v22 }
0x1be2   :  { %1932 = vrot.lane.b32.xlu1 %v1750_v19, %s3665_s23 }
0x1c56   :  { %v1810_v31 = vpop.xlane.xlu0 %1809 }
0x1c57   :  { %v1811_v54 = vsub.f32 %v1807_v59, %v1810_v31 }
0x1c59   :  { %v1812_v30 = vmul.f32 1.442695, %v1811_v54 }
0x1c5b   :  { %3477 = vpow2.f32 %v1812_v30 }
0x1c5e   :  { %v1922_v48 = vpop.xlane.xlu1 %1921 }
0x1c5f   :  { %v1923_v14 = vsub.f32 %v1919_v21, %v1922_v48 }
0x1c61   :  { %v1924_v32 = vmul.f32 1.442695, %v1923_v14 }
0x1c62   :  { %v1933_v31 = vpop.permute.xlu1 %1932 }
0x1c63   :  { %3479 = vpow2.f32 %v1924_v32  ;;  %v1938_v30 = vsel %vm402_vm5, %v1933_v31, 0 }
0x1c65   :  { %v3478_v20 = vpop.eup %3477 }
0x1c66   :  { %v1814_v50 = vsel %vm384_vm4, %v3478_v20, 0.0 }
0x1c67   :  { %1815 = vadd.xlane.f32.xlu0 %v1814_v50 }
0x1c6d   :  { %v3480_v23 = vpop.eup %3479 }
0x1c6e   :  { %v1926_v43 = vsel %vm384_vm4, %v3480_v23, 0.0 }
0x1c6f   :  { %1927 = vadd.xlane.f32.xlu0 %v1926_v43 }
0x1c85   :  { %1820 = vrot.lane.b32.xlu0 %v1750_v19, %s4611_s30 }
0x1cf4   :  { %v1816_v63 = vpop.xlane.xlu0 %1815 }
0x1cf5   :  { %3481 = vrcp.f32 %v1816_v63 }
0x1cfc   :  { %v1928_v1 = vpop.xlane.xlu0 %1927 }
0x1cfd   :  { %3483 = vrcp.f32 %v1928_v1 }
0x1cff   :  { %v3482_v59 = vpop.eup %3481 }
0x1d00   :  { %v1818_v27 = vmul.f32 %v3482_v59, %v3478_v20  ;;  %v1821_v22 = vpop.permute.xlu0 %1820 }
0x1d01   :  { %v1826_v21 = vsel %vm402_vm5, %v1821_v22, 0 }
0x1d02   :  { %3211 = vmatpush3.bf16.msra.mxu1 %v1826_v21  ;;  %v1819_v54 = vpack.c.bf16 %v1818_v27, %v1818_v27 }
0x1d03   :  { %3222 = vmatprep.subr.bf16.mxu1 %v3660_v8 }
0x1d05   :  { %3213 = vmatmul.mubr.msk.bf16.vlgmr.msra.gmra.mrb[52].mxu1 %vm384_vm4, %v1819_v54 }
0x1d06   :  { %3223 = vmatpush3.bf16.msra.mxu1 %v1938_v30  ;;  %3224 = vmatprep.mubr.msk.bf16.mxu1 %vm3659_vm0, %v3660_v8 }
0x1d07   :  { %v3484_v19 = vpop.eup %3483  ;;  %3236 = vmatprep.subr.bf16.mxu1 %v3660_v8 }
0x1d08   :  { %v1930_v48 = vmul.f32 %v3484_v19, %v3480_v23 }
0x1d0a   :  { %v1931_v14 = vpack.c.bf16 %v1930_v48, %v1930_v48 }
0x1d0d   :  { %3225 = vmatmul.mubr.msk.bf16.vlgmr.msra.gmra.mrb[56].mxu1 %vm384_vm4, %v1931_v14 }
0x1d0e   :  { %3237 = vmatpush3.bf16.msra.mxu1 %v4010_v34  ;;  %3240 = vmatprep.mubr.msk.bf16.mxu1 %vm3659_vm0, %v3660_v8 }
0x1d0f   :  { %3238 = vmatprep.subr.bf16.mxu1 %v3660_v8 }
0x1d12   :  { %3239 = vmatpush3.bf16.msra.mxu1 %v4016_v52 }
0x1d13   :  { %3256 = vmatprep.subr.bf16.mxu1 %v3660_v8 }
0x1dd8   :  { %v1862_v32 = vpop.f32.mrb[52].mxu1 }
0x1dd9   :  { %v3214_v20 = vpop.f32.mrb[53].mxu1 }
0x1dda   :  { %v1865_v50 = vpop.f32.mrb[54].mxu1 }
0x1ddb   :  { %v3215_v43 = vpop.f32.mrb[55].mxu1 }
0x1de0   :  { %v1974_v63 = vpop.f32.mrb[56].mxu1 }
0x1de1   :  { %1981 = vrot.lane.b32.xlu0 %v1974_v63, %s3666_s26  ;;  %v3226_v23 = vpop.f32.mrb[57].mxu1 }
0x1de2   :  { %v1977_v1 = vpop.f32.mrb[58].mxu1 }
0x1de3   :  { %v3227_v59 = vpop.f32.mrb[59].mxu1 }
0x1e53   :  { %v1982_v34 = vpop.permute.xlu0 %1981 }
0x1e54   :  { %v1984_v27 = vsel %vm329_vm3, %v1862_v32, %v1982_v34 }
0x1e55   :  { %v1985_v22 = vpack.c.bf16 %v1984_v27, %v1984_v27 }
0x1e57   :  { %3233 = vmatmul.mubr.msk.bf16.vlgmr.msra.gmra.mrb[36].mxu0 %vm228_vm2, %v1985_v22 }
0x1e58   :  { %3245 = vmatpush3.bf16.msra.mxu0 %v4036_v47  ;;  %3252 = vmatprep.mubr.msk.bf16.mxu0 %vm3659_vm0, %v3660_v8 }
0x1e59   :  { %3246 = vmatprep.subr.bf16.mxu0 %v3660_v8 }
0x1e5c   :  { %3247 = vmatpush3.bf16.msra.mxu0 %v4040_v49 }
0x1e5d   :  { %3248 = vmatprep.subr.bf16.mxu0 %v3660_v8 }
0x1e60   :  { %3249 = vmatpush3.bf16.msra.mxu0 %v4044_v51 }
0x1e61   :  { %3250 = vmatprep.subr.bf16.mxu0 %v3660_v8 }
0x1e64   :  { %3251 = vmatpush3.bf16.msra.mxu0 %v4048_v53 }
0x1e65   :  { %3270 = vmatprep.subr.bf16.mxu0 %v3660_v8 }
0x1f2a   :  { %v2023_v52 = vpop.f32.mrb[36].mxu0 }
0x1f2b   :  { %v2024_v47 = vadd.f32 %v4001_v12, %v2023_v52  ;;  %v3234_v21 = vpop.f32.mrb[37].mxu0 }
0x1f2c   :  { %v2026_v31 = vpop.f32.mrb[38].mxu0 }
0x1f2d   :  { %v3235_v54 = vpop.f32.mrb[39].mxu0  ;;  %v2029_v30 = vadd.f32 %v2024_v47, %v4344_v9 }
0x1f2f   :  { %v2030_v49 = vsel %vm228_vm2, %v2029_v30, 0.0 }
0x1f30   :  { %2031 = vadd.xlane.f32.xlu1 %v2030_v49 }
0x1fbd   :  { %v2032_v19 = vpop.xlane.xlu1 %2031 }
0x1fbe   :  { %v2033_v48 = vmul.f32 0.03125, %v2032_v19 }
0x1fc0   :  { %v2034_v51 = vsub.f32 %v2029_v30, %v2033_v48 }
0x1fc2   :  { %v2035_v14 = vmul.f32 %v2034_v51, %v2034_v51 }
0x1fc4   :  { %v2036_v32 = vsel %vm228_vm2, %v2035_v14, 0.0 }
0x1fc5   :  { %2037 = vadd.xlane.f32.xlu0 %v2036_v32 }
0x2052   :  { %v2038_v53 = vpop.xlane.xlu0 %2037 }
0x2053   :  { %v2039_v20 = vmul.f32 0.03125, %v2038_v53 }
0x2055   :  { %v2040_v50 = vadd.f32 1e-12, %v2039_v20 }
0x2057   :  { %3485 = vrsqrt.f32 %v2040_v50 }
0x2061   :  { %v3486_v12 = vpop.eup %3485 }
0x2062   :  { %v2042_v43 = vmul.f32 %v3486_v12, %v2034_v51 }
0x2064   :  { %v2043_v63 = vmul.f32 %v4024_v39, %v2042_v43 }
0x2066   :  { %v2044_v9 = vadd.f32 %v4029_v41, %v2043_v63 }
0x2068   :  { %v2045_v23 = vpack.c.bf16 %v2044_v9, %v2044_v9 }
0x206a   :  { %3241 = vmatmul.mubr.msk.bf16.vlgmr.msra.gmra.mrb[60].mxu1 %vm228_vm2, %v2045_v23 }
0x206b   :  { %3257 = vmatpush3.bf16.msra.mxu1 %v4069_v38  ;;  %3260 = vmatprep.mubr.msk.bf16.mxu1 %vm3659_vm0, %v3660_v8 }
0x206c   :  { %3258 = vmatprep.subr.bf16.mxu1 %v3660_v8 }
0x206f   :  { %3259 = vmatpush3.bf16.msra.mxu1 %v4072_v40 }
0x2070   :  { %3264 = vmatprep.subr.bf16.mxu1 %v3660_v8 }
0x213d   :  { %v2083_v1 = vpop.f32.mrb[60].mxu1 }
0x213e   :  { %v2084_v59 = vadd.f32 %v4055_v55, %v2083_v1  ;;  %v3242_v39 = vpop.f32.mrb[61].mxu1 }
0x213f   :  { %v2086_v34 = vpop.f32.mrb[62].mxu1 }
0x2140   :  { %v2089_v41 = vmul.f32 %v2084_v59, %v2084_v59  ;;  %v3243_v27 = vpop.f32.mrb[63].mxu1 }
0x2142   :  { %v2090_v22 = vmul.f32 %v2089_v41, %v2084_v59 }
0x2144   :  { %v2091_v52 = vmul.f32 0.044715, %v2090_v22 }
0x2146   :  { %v2092_v47 = vadd.f32 %v2091_v52, %v2084_v59 }
0x2148   :  { %v2093_v38 = vmul.f32 0.7978846, %v2092_v47 }
0x214a   :  { %3487 = vtanh.f32 %v2093_v38 }
0x2154   :  { %v3488_v21 = vpop.eup %3487 }
0x2155   :  { %v2095_v31 = vadd.f32 1.0, %v3488_v21 }
0x2157   :  { %v2096_v54 = vmul.f32 0.5, %v2095_v31 }
0x2159   :  { %v2097_v30 = vmul.f32 %v2096_v54, %v2084_v59 }
0x215b   :  { %v2098_v49 = vpack.c.bf16 %v2097_v30, %v2097_v30 }
0x215d   :  { %3253 = vmatmul.mubr.msk.bf16.vlgmr.msra.gmra.mrb[40].mxu0 %vm776_vm6, %v2098_v49 }
0x215e   :  { %3272 = vmatprep.mubr.msk.bf16.mxu0 %vm3659_vm0, %v3660_v8 }
0x2230   :  { %v2136_v55 = vpop.f32.mrb[40].mxu0 }
0x2231   :  { %v2137_v40 = vadd.f32 %v4064_v16, %v2136_v55  ;;  %v3254_v19 = vpop.f32.mrb[41].mxu0 }
0x2232   :  { %v2139_v48 = vpop.f32.mrb[42].mxu0 }
0x2233   :  { %v3255_v51 = vpop.f32.mrb[43].mxu0  ;;  %v2142_v14 = vadd.f32 %v2137_v40, %v2044_v9 }
0x2235   :  { %v2143_v32 = vsel %vm228_vm2, %v2142_v14, 0.0 }
0x2236   :  { %2144 = vadd.xlane.f32.xlu0 %v2143_v32 }
0x22c3   :  { %v2145_v53 = vpop.xlane.xlu0 %2144 }
0x22c4   :  { %v2146_v20 = vmul.f32 0.03125, %v2145_v53 }
0x22c6   :  { %v2147_v50 = vsub.f32 %v2142_v14, %v2146_v20 }
0x22c8   :  { %v2148_v12 = vmul.f32 %v2147_v50, %v2147_v50 }
0x22ca   :  { %v2149_v43 = vsel %vm228_vm2, %v2148_v12, 0.0 }
0x22cb   :  { %2150 = vadd.xlane.f32.xlu1 %v2149_v43 }
0x2358   :  { %v2151_v63 = vpop.xlane.xlu1 %2150 }
0x2359   :  { %v2152_v23 = vmul.f32 0.03125, %v2151_v63 }
0x235b   :  { %v2153_v1 = vadd.f32 1e-12, %v2152_v23 }
0x235d   :  { %3489 = vrsqrt.f32 %v2153_v1 }
0x2367   :  { %v3490_v59 = vpop.eup %3489 }
0x2368   :  { %v2155_v16 = vmul.f32 %v3490_v59, %v2147_v50 }
0x236a   :  { %v2156_v39 = vmul.f32 %v4080_v57, %v2155_v16 }
0x236c   :  { %v4435_v9 = vadd.f32 %v4085_v60, %v2156_v39 }
0x236e   :  { %v2158_v34 = vpack.c.bf16 %v4435_v9, %v4435_v9 }
0x2370   :  { %3261 = vmatmul.mubr.msk.bf16.vlgmr.msra.gmra.mrb[64].mxu1 %vm228_vm2, %v2158_v34 }
0x2371   :  { %3266 = vmatprep.mubr.msk.bf16.mxu1 %vm3659_vm0, %v3660_v8 }
0x2443   :  { %v2196_v41 = vpop.f32.mrb[64].mxu1 }
0x2444   :  { %v2197_v27 = vadd.f32 %v4099_v3, %v2196_v41  ;;  %v3262_v22 = vpop.f32.mrb[65].mxu1 }
0x2445   :  { %v2199_v52 = vpop.f32.mrb[66].mxu1 }
0x2446   :  { %v2202_v47 = vpack.c.bf16 %v2197_v27, %v2197_v27  ;;  %v3263_v38 = vpop.f32.mrb[67].mxu1 }
0x2448   :  { %2316 = vrot.lane.b32.xlu1 %v2202_v47, %s3663_s7  ;;  %2204 = vrot.lane.b32.xlu0 %v2202_v47, %s3662_s21 }
0x244c   :  { %2314 = vrot.lane.b32.xlu1 %v2202_v47, %s3664_s14 }
0x24ba   :  { %v2205_v57 = vpop.permute.xlu0 %2204  ;;  %v2317_v21 = vpop.permute.xlu1 %2316 }
0x24bb   :  { %v2210_v60 = vsel %vm329_vm3, %v2205_v57, 0  ;;  %v2322_v31 = vsel %vm329_vm3, %v2317_v21, 0 }
0x24bc   :  { %3265 = vmatpush3.bf16.xpose.msra.mxu1 %v2210_v60 }
0x24bd   :  { %3276 = vmatprep.subr.bf16.mxu1 %v3660_v8 }
0x24be   :  { %v2315_v3 = vpop.permute.xlu1 %2314 }
0x24c3   :  { %3267 = vmatmul.mubr.msk.bf16.vlgmr.msra.gmra.mrb[68].mxu1 %vm329_vm3, %v2202_v47 }
0x24c4   :  { %3277 = vmatpush3.bf16.xpose.msra.mxu1 %v2322_v31  ;;  %3278 = vmatprep.mubr.msk.bf16.mxu1 %vm3659_vm0, %v3660_v8 }
0x24c5   :  { %3288 = vmatprep.subr.bf16.mxu1 %v3660_v8 }
0x24cb   :  { %3279 = vmatmul.mubr.msk.bf16.vlgmr.msra.gmra.mrb[72].mxu1 %vm329_vm3, %v2315_v3 }
0x24cc   :  { %3289 = vmatpush3.bf16.msra.mxu1 %v4133_v45  ;;  %3292 = vmatprep.mubr.msk.bf16.mxu1 %vm3659_vm0, %v3660_v8 }
0x24cd   :  { %3290 = vmatprep.subr.bf16.mxu1 %v3660_v8 }
0x24d0   :  { %3291 = vmatpush3.bf16.msra.mxu1 %v4137_v46 }
0x24d1   :  { %3304 = vmatprep.subr.bf16.mxu1 %v3660_v8 }
0x2596   :  { %v2246_v54 = vpop.f32.mrb[68].mxu1 }
0x2597   :  { %v2252_v30 = vmul.f32 0.25, %v2246_v54  ;;  %v3268_v49 = vpop.f32.mrb[69].mxu1 }
0x2598   :  { %v2249_v55 = vpop.f32.mrb[70].mxu1 }
0x2599   :  { %v3269_v40 = vpop.f32.mrb[71].mxu1  ;;  %v2253_v19 = vadd.f32 %v4376_v26, %v2252_v30 }
0x259b   :  { %v2254_v48 = vsel %vm384_vm4, %v2253_v19, -inf }
0x259c   :  { %2255 = vmax.xlane.f32.xlu0 %v2254_v48 }
0x259e   :  { %v2358_v45 = vpop.f32.mrb[72].mxu1 }
0x259f   :  { %v2364_v51 = vmul.f32 0.25, %v2358_v45  ;;  %v3280_v14 = vpop.f32.mrb[73].mxu1 }
0x25a0   :  { %v2361_v32 = vpop.f32.mrb[74].mxu1 }
0x25a1   :  { %v3281_v53 = vpop.f32.mrb[75].mxu1  ;;  %v2365_v20 = vadd.f32 %v4376_v26, %v2364_v51 }
0x25a3   :  { %v2366_v46 = vsel %vm384_vm4, %v2365_v20, -inf }
0x25a4   :  { %2367 = vmax.xlane.f32.xlu1 %v2366_v46 }
0x25b5   :  { %2266 = vrot.lane.b32.xlu1 %v2202_v47, %s4611_s30  ;;  %s3667_s30 = smov [#allocation10]  }
0x25b6   :  { %s2707_s21 = sshll.u32 %s3667_s30, 4  ;;  %s2708_s21 = int_to_ptr.vmem [resolvable:$true] %s2707_s21 }
0x25b7   :  { %s3595_s27 = scalar_lea.vmem %s2708_s21, 32  ;;  %p3600_p5 = scmp.lt.s32.totalorder %s2708_s21, %s2708_s21 }
0x25b8   :  { %p3596_p4 = scmp.ne.s32.totalorder %s2708_s21, %s3595_s27  ;;  %p3601_p6 = scmp.lt.s32.totalorder %s3595_s27, %s3595_s27 }
0x25ba   :  { %p3602_p7 = por %p3601_p6, %p3600_p5 }
0x25bc   :  { %p3603_p8 = pnand %p3602_p7, %p3596_p4 }
0x2629   :  { %v2256_v50 = vpop.xlane.xlu0 %2255 }
0x262a   :  { %v2257_v12 = vsub.f32 %v2253_v19, %v2256_v50 }
0x262c   :  { %v2258_v43 = vmul.f32 1.442695, %v2257_v12 }
0x262e   :  { %3491 = vpow2.f32 %v2258_v43 }
0x2631   :  { %v2368_v63 = vpop.xlane.xlu1 %2367 }
0x2632   :  { %v2369_v23 = vsub.f32 %v2365_v20, %v2368_v63 }
0x2634   :  { %v2370_v1 = vmul.f32 1.442695, %v2369_v23 }
0x2635   :  { %v2267_v59 = vpop.permute.xlu1 %2266 }
0x2636   :  { %3493 = vpow2.f32 %v2370_v1  ;;  %v2272_v16 = vsel %vm402_vm5, %v2267_v59, 0 }
0x2637   :  { %3271 = vmatpush3.bf16.msra.mxu0 %v2272_v16 }
0x2638   :  { %v3492_v39 = vpop.eup %3491  ;;  %3282 = vmatprep.subr.bf16.mxu0 %v3660_v8 }
0x2639   :  { %v2260_v26 = vsel %vm384_vm4, %v3492_v39, 0.0 }
0x263a   :  { %2261 = vadd.xlane.f32.xlu0 %v2260_v26 }
0x2640   :  { %v3494_v34 = vpop.eup %3493 }
0x2641   :  { %v2372_v41 = vsel %vm384_vm4, %v3494_v34, 0.0 }
0x2642   :  { %2373 = vadd.xlane.f32.xlu0 %v2372_v41 }
0x2658   :  { %2378 = vrot.lane.b32.xlu0 %v2202_v47, %s3665_s23 }
0x26c7   :  { %v2262_v27 = vpop.xlane.xlu0 %2261 }
0x26c8   :  { %3495 = vrcp.f32 %v2262_v27 }
0x26cf   :  { %v2374_v22 = vpop.xlane.xlu0 %2373 }
0x26d0   :  { %3497 = vrcp.f32 %v2374_v22 }
0x26d2   :  { %v3496_v52 = vpop.eup %3495 }
0x26d3   :  { %v2264_v38 = vmul.f32 %v3496_v52, %v3492_v39  ;;  %v2379_v57 = vpop.permute.xlu0 %2378 }
0x26d4   :  { %v2384_v21 = vsel %vm402_vm5, %v2379_v57, 0 }
0x26d5   :  { %v2265_v60 = vpack.c.bf16 %v2264_v38, %v2264_v38 }
0x26d7   :  { %3273 = vmatmul.mubr.msk.bf16.vlgmr.msra.gmra.mrb[44].mxu0 %vm384_vm4, %v2265_v60 }
0x26d8   :  { %3283 = vmatpush3.bf16.msra.mxu0 %v2384_v21  ;;  %3284 = vmatprep.mubr.msk.bf16.mxu0 %vm3659_vm0, %v3660_v8 }
0x26d9   :  { %3296 = vmatprep.subr.bf16.mxu0 %v3660_v8 }
0x26da   :  { %v3498_v31 = vpop.eup %3497 }
0x26db   :  { %v2376_v47 = vmul.f32 %v3498_v31, %v3494_v34 }
0x26dd   :  { %v2377_v3 = vpack.c.bf16 %v2376_v47, %v2376_v47 }
0x26df   :  { %3285 = vmatmul.mubr.msk.bf16.vlgmr.msra.gmra.mrb[48].mxu0 %vm384_vm4, %v2377_v3 }
0x26e0   :  { %3297 = vmatpush3.bf16.msra.mxu0 %v4181_v62  ;;  %3300 = vmatprep.mubr.msk.bf16.mxu0 %vm3659_vm0, %v3660_v8 }
0x26e1   :  { %3298 = vmatprep.subr.bf16.mxu0 %v3660_v8 }
0x26e4   :  { %3299 = vmatpush3.bf16.msra.mxu0 %v4187_v28 }
0x26e5   :  { %3316 = vmatprep.subr.bf16.mxu0 %v3660_v8 }
0x27aa   :  { %v2308_v54 = vpop.f32.mrb[44].mxu0 }
0x27ab   :  { %v3274_v30 = vpop.f32.mrb[45].mxu0 }
0x27ac   :  { %v2311_v49 = vpop.f32.mrb[46].mxu0 }
0x27ad   :  { %v3275_v55 = vpop.f32.mrb[47].mxu0 }
0x27b2   :  { %v2420_v40 = vpop.f32.mrb[48].mxu0 }
0x27b3   :  { %2427 = vrot.lane.b32.xlu1 %v2420_v40, %s3666_s26  ;;  %v3286_v19 = vpop.f32.mrb[49].mxu0 }
0x27b4   :  { %v2423_v48 = vpop.f32.mrb[50].mxu0 }
0x27b5   :  { %v3287_v45 = vpop.f32.mrb[51].mxu0 }
0x2825   :  { %v2428_v62 = vpop.permute.xlu1 %2427 }
0x2826   :  { %v2430_v51 = vsel %vm329_vm3, %v2308_v54, %v2428_v62 }
0x2827   :  { %v2431_v14 = vpack.c.bf16 %v2430_v51, %v2430_v51 }
0x2829   :  { %3293 = vmatmul.mubr.msk.bf16.vlgmr.msra.gmra.mrb[76].mxu1 %vm228_vm2, %v2431_v14 }
0x282a   :  { %3305 = vmatpush3.bf16.msra.mxu1 %v4207_v2  ;;  %3312 = vmatprep.mubr.msk.bf16.mxu1 %vm3659_vm0, %v3660_v8 }
0x282b   :  { %3306 = vmatprep.subr.bf16.mxu1 %v3660_v8 }
0x282e   :  { %3307 = vmatpush3.bf16.msra.mxu1 %v4211_v4 }
0x282f   :  { %3308 = vmatprep.subr.bf16.mxu1 %v3660_v8 }
0x2832   :  { %3309 = vmatpush3.bf16.msra.mxu1 %v4215_v6 }
0x2833   :  { %3310 = vmatprep.subr.bf16.mxu1 %v3660_v8 }
0x2836   :  { %3311 = vmatpush3.bf16.msra.mxu1 %v4219_v7 }
0x28fc   :  { %v2469_v28 = vpop.f32.mrb[76].mxu1 }
0x28fd   :  { %v2470_v32 = vadd.f32 %v4165_v5, %v2469_v28  ;;  %v3294_v53 = vpop.f32.mrb[77].mxu1 }
0x28fe   :  { %v2472_v2 = vpop.f32.mrb[78].mxu1 }
0x28ff   :  { %v3295_v20 = vpop.f32.mrb[79].mxu1  ;;  %v2475_v46 = vadd.f32 %v2470_v32, %v4435_v9 }
0x2901   :  { %v2476_v50 = vsel %vm228_vm2, %v2475_v46, 0.0 }
0x2902   :  { %2477 = vadd.xlane.f32.xlu1 %v2476_v50 }
0x298f   :  { %v2478_v4 = vpop.xlane.xlu1 %2477 }
0x2990   :  { %v2479_v12 = vmul.f32 0.03125, %v2478_v4 }
0x2992   :  { %v2480_v43 = vsub.f32 %v2475_v46, %v2479_v12 }
0x2994   :  { %v2481_v63 = vmul.f32 %v2480_v43, %v2480_v43 }
0x2996   :  { %v2482_v6 = vsel %vm228_vm2, %v2481_v63, 0.0 }
0x2997   :  { %2483 = vadd.xlane.f32.xlu0 %v2482_v6 }
0x2a24   :  { %v2484_v23 = vpop.xlane.xlu0 %2483 }
0x2a25   :  { %v2485_v7 = vmul.f32 0.03125, %v2484_v23 }
0x2a27   :  { %v2486_v1 = vadd.f32 1e-12, %v2485_v7 }
0x2a29   :  { %3499 = vrsqrt.f32 %v2486_v1 }
0x2a33   :  { %v3500_v5 = vpop.eup %3499 }
0x2a34   :  { %v2488_v59 = vmul.f32 %v3500_v5, %v2480_v43 }
0x2a36   :  { %v2489_v16 = vmul.f32 %v4195_v35, %v2488_v59 }
0x2a38   :  { %v2490_v9 = vadd.f32 %v4200_v11, %v2489_v16 }
0x2a3a   :  { %v2491_v39 = vpack.c.bf16 %v2490_v9, %v2490_v9 }
0x2a3c   :  { %3301 = vmatmul.mubr.msk.bf16.vlgmr.msra.gmra.mrb[52].mxu0 %vm228_vm2, %v2491_v39 }
0x2a3d   :  { %3317 = vmatpush3.bf16.msra.mxu0 %v4245_v17  ;;  %3320 = vmatprep.mubr.msk.bf16.mxu0 %vm3659_vm0, %v3660_v8 }
0x2a3e   :  { %3318 = vmatprep.subr.bf16.mxu0 %v3660_v8 }
0x2a41   :  { %3319 = vmatpush3.bf16.msra.mxu0 %v4251_v44 }
0x2a42   :  { %3324 = vmatprep.subr.bf16.mxu0 %v3660_v8 }
0x2b0f   :  { %v2529_v26 = vpop.f32.mrb[52].mxu0 }
0x2b10   :  { %v2530_v34 = vadd.f32 %v4226_v10, %v2529_v26  ;;  %v3302_v35 = vpop.f32.mrb[53].mxu0 }
0x2b11   :  { %v2532_v41 = vpop.f32.mrb[54].mxu0 }
0x2b12   :  { %v2535_v11 = vmul.f32 %v2530_v34, %v2530_v34  ;;  %v3303_v27 = vpop.f32.mrb[55].mxu0 }
0x2b14   :  { %v2536_v22 = vmul.f32 %v2535_v11, %v2530_v34 }
0x2b16   :  { %v2537_v52 = vmul.f32 0.044715, %v2536_v22 }
0x2b18   :  { %v2538_v38 = vadd.f32 %v2537_v52, %v2530_v34 }
0x2b1a   :  { %v2539_v17 = vmul.f32 0.7978846, %v2538_v38 }
0x2b1c   :  { %3501 = vtanh.f32 %v2539_v17 }
0x2b26   :  { %v3502_v57 = vpop.eup %3501 }
0x2b27   :  { %v2541_v60 = vadd.f32 1.0, %v3502_v57 }
0x2b29   :  { %v2542_v21 = vmul.f32 0.5, %v2541_v60 }
0x2b2b   :  { %v2543_v31 = vmul.f32 %v2542_v21, %v2530_v34 }
0x2b2d   :  { %v2544_v47 = vpack.c.bf16 %v2543_v31, %v2543_v31 }
0x2b2f   :  { %3313 = vmatmul.mubr.msk.bf16.vlgmr.msra.gmra.mrb[80].mxu1 %vm776_vm6, %v2544_v47 }
0x2c02   :  { %v2582_v44 = vpop.f32.mrb[80].mxu1 }
0x2c03   :  { %v2583_v3 = vadd.f32 %v4235_v24, %v2582_v44  ;;  %v3314_v10 = vpop.f32.mrb[81].mxu1 }
0x2c04   :  { %v2585_v54 = vpop.f32.mrb[82].mxu1 }
0x2c05   :  { %v3315_v30 = vpop.f32.mrb[83].mxu1  ;;  %v2588_v49 = vadd.f32 %v2583_v3, %v2490_v9 }
0x2c07   :  { %v2589_v55 = vsel %vm228_vm2, %v2588_v49, 0.0 }
0x2c08   :  { %2590 = vadd.xlane.f32.xlu0 %v2589_v55 }
0x2c95   :  { %v2591_v40 = vpop.xlane.xlu0 %2590 }
0x2c96   :  { %v2592_v19 = vmul.f32 0.03125, %v2591_v40 }
0x2c98   :  { %v2593_v48 = vsub.f32 %v2588_v49, %v2592_v19 }
0x2c9a   :  { %v2594_v45 = vmul.f32 %v2593_v48, %v2593_v48 }
0x2c9c   :  { %v2595_v62 = vsel %vm228_vm2, %v2594_v45, 0.0 }
0x2c9d   :  { %2596 = vadd.xlane.f32.xlu1 %v2595_v62 }
0x2d2a   :  { %v2597_v51 = vpop.xlane.xlu1 %2596 }
0x2d2b   :  { %v2598_v14 = vmul.f32 0.03125, %v2597_v51 }
0x2d2d   :  { %v2599_v28 = vadd.f32 1e-12, %v2598_v14 }
0x2d2f   :  { %3503 = vrsqrt.f32 %v2599_v28 }
0x2d39   :  { %v3504_v32 = vpop.eup %3503 }
0x2d3a   :  { %v2601_v24 = vmul.f32 %v3504_v32, %v2593_v48 }
0x2d3c   :  { %v2602_v53 = vmul.f32 %v4260_v0, %v2601_v24 }
0x2d3e   :  { %v2603_v2 = vadd.f32 %v4265_v25, %v2602_v53 }
0x2d40   :  { %v2604_v20 = vpack.c.bf16 %v2603_v2, %v2603_v2 }
0x2d42   :  { %3321 = vmatmul.mubr.msk.bf16.vlgmr.msra.gmra.mrb[56].mxu0 %vm228_vm2, %v2604_v20 }
0x2d43   :  { %3325 = vmatpush3.bf16.msra.mxu0 %v4275_v33  ;;  %3340 = vmatprep.mubr.msk.bf16.mxu0 %vm3659_vm0, %v3660_v8 }
0x2d44   :  { %3326 = vmatprep.subr.bf16.mxu0 %v3660_v8 }
0x2d47   :  { %3327 = vmatpush3.bf16.msra.mxu0 %v4281_v36 }
0x2d48   :  { %3328 = vmatprep.subr.bf16.mxu0 %v3660_v8 }
0x2d4b   :  { %3329 = vmatpush3.bf16.msra.mxu0 %v4288_v37 }
0x2d4c   :  { %3330 = vmatprep.subr.bf16.mxu0 %v3660_v8 }
0x2d4f   :  { %3331 = vmatpush3.bf16.msra.mxu0 %v4295_v56 }
0x2d50   :  { %3332 = vmatprep.subr.bf16.mxu0 %v3660_v8 }
0x2d53   :  { %3333 = vmatpush3.bf16.msra.mxu0 %v4303_v61 }
0x2d54   :  { %3334 = vmatprep.subr.bf16.mxu0 %v3660_v8 }
0x2d57   :  { %3335 = vmatpush3.bf16.msra.mxu0 %v4310_v13 }
0x2d58   :  { %3336 = vmatprep.subr.bf16.mxu0 %v3660_v8 }
0x2d5b   :  { %3337 = vmatpush3.bf16.msra.mxu0 %v4316_v15 }
0x2d5c   :  { %3338 = vmatprep.subr.bf16.mxu0 %v3660_v8 }
0x2d5f   :  { %3339 = vmatpush3.bf16.msra.mxu0 %v4323_v18 }
0x2e15   :  { %v2642_v0 = vpop.f32.mrb[56].mxu0 }
0x2e16   :  { %v2643_v25 = vadd.f32 %v2642_v0, %v4331_v58  ;;  %v3322_v33 = vpop.f32.mrb[57].mxu0 }
0x2e17   :  { %v2645_v36 = vpop.f32.mrb[58].mxu0 }
0x2e18   :  { %3505 = vtanh.f32 %v2643_v25  ;;  %v3323_v37 = vpop.f32.mrb[59].mxu0 }
0x2e22   :  { %v3506_v56 = vpop.eup %3505 }
0x2e23   :  { %v2649_v61 = vpack.c.bf16 %v3506_v56, %v3506_v56  ;;  %v2691_v46 = vrot.slane %v3506_v56, 7 }
0x2e25   :  { %3341 = vmatmul.mubr.bf16.vlgmr.msra.gmra.mrb[60].mxu0 %v2649_v61  ;;  %v2694_v13 = vsel %vm2693_vm8, %v4334_v29, %v2691_v46 }
0x2e26   :  { %2695 = vst [vmem:[#allocation10] sm:$0x3] %v2694_v13 }
0x2e27   :  { %3606 = shalt.err (!%p3603_p8)
}
0x2e28   :  { %s3607_s23 = scalar_lea.hbm %s4586_s22, 32 }
0x2e29   :  { %p3608_p9 = scmp.ne.s32.totalorder %s4586_s22, %s3607_s23  ;;  %p3611_p10 = scmp.lt.u32.totalorder %s3607_s23, %s4586_s22 }
0x2e2b   :  { %p3613_p11 = pnand %p3611_p10, %p3608_p9 }
0x2e2d   :  { %3616 = shalt.err (!%p3613_p11)
}
0x2e2e   :  { %2710 = dma.vmem_to_hbm [thread:$0]  %s2708_s21, 32, %s4586_s22, [#allocation4]  }
0x2e2f   :  { %s4618_s28 = sld [smem:[#allocation26_spill]]  ;;  %s3668_s29 = smov [#allocation11]  }
0x2e30   :  { %s2717_s1 = sshll.u32 %s3668_s29, 4  ;;  %s2718_s1 = int_to_ptr.vmem [resolvable:$true] %s2717_s1 }
0x2e31   :  { %s3617_s2 = scalar_lea.vmem %s2718_s1, 32  ;;  %p3622_p13 = scmp.lt.s32.totalorder %s2718_s1, %s2718_s1 }
0x2e32   :  { %p3618_p12 = scmp.ne.s32.totalorder %s2718_s1, %s3617_s2  ;;  %p3623_p0 = scmp.lt.s32.totalorder %s3617_s2, %s3617_s2 }
0x2e34   :  { %p3624_p1 = por %p3623_p0, %p3622_p13 }
0x2e35   :  { %v1523_v8 = vld [vmem:[%s4618_s28] sm:$0x1] }
0x2e36   :  { %v1607_v50 = vadd.f32 %v4353_v42, %v1523_v8  ;;  %p3625_p2 = pnand %p3624_p1, %p3618_p12 }
0x2ef8   :  { %v2684_v15 = vpop.f32.mrb[60].mxu0 }
0x2ef9   :  { %v2685_v18 = vadd.f32 %v2684_v15, %v1523_v8  ;;  %v3342_v58 = vpop.f32.mrb[61].mxu0 }
0x2efa   :  { %v2687_v29 = vpop.f32.mrb[62].mxu0 }
0x2efb   :  { %v2697_v4 = vrot.slane %v2685_v18, 7  ;;  %v3343_v12 = vpop.f32.mrb[63].mxu0 }
0x2efd   :  { %v2699_v43 = vsel %vm2693_vm8, %v1607_v50, %v2697_v4 }
0x2efe   :  { %2700 = vst [vmem:[#allocation11] sm:$0x3] %v2699_v43 }
0x2eff   :  { %3628 = shalt.err (!%p3625_p2)
}
0x2f00   :  { %s4619_s10 = sld [smem:[#allocation27_spill]] }
0x2f06   :  { %s3629_s11 = scalar_lea.hbm %s4619_s10, 32 }
0x2f07   :  { %p3630_p3 = scmp.ne.s32.totalorder %s4619_s10, %s3629_s11  ;;  %p3633_p4 = scmp.lt.u32.totalorder %s3629_s11, %s4619_s10 }
0x2f09   :  { %p3635_p5 = pnand %p3633_p4, %p3630_p3 }
0x2f0b   :  { %3638 = shalt.err (!%p3635_p5)
}
0x2f0c   :  { %2720 = dma.vmem_to_hbm [thread:$0]  %s2718_s1, 32, %s4619_s10, [#allocation12]  }
0x2f0d   :  { %3645 = dma.done.wait [#allocation4], 32  }
0x2f0e   :  { %3646 = vsyncadd [#allocation4], 4294967264 }
0x2f0f   :  { %3647 = dma.done.wait [#allocation12], 32  }
0x2f10   :  { %3648 = vsyncadd [#allocation12], 4294967264 }
0x2f11   :  { %2727 = vsyncpa [#allocation3], 1 }
0x2f12   :  { %2728 = vsyncpa [#allocation6], 1 }
0x2f13   :  { %2729 = vsyncpa [#allocation9], 1 }
0x2f14   :  { %2730 = vsyncpa [#allocation4], 1 }
0x2f15   :  { %2731 = vsyncpa [#allocation12], 1 }

</bundles_post_ra>
